<compile_context>
chip_gen: v6e
topology: v6e:2x2x1
jax: 0.10.0
libtpu: 0.0.40
codegen_flags: <defaults>
</compile_context>

<pallas_src>
import functools

import jax
import jax.numpy as jnp
from jax.experimental import pallas as pl
from jax.experimental.pallas import tpu as pltpu


HIDDEN = 60    # true hidden size (matches the PyTorch module)
HP = 128       # lane-padded hidden size used inside the kernels


# ------------------------------------------------------------------ dense / projection kernel
def _dense_kernel(x_ref, w_ref, b_ref, o_ref, *, relu):
    y = jnp.dot(x_ref[...], w_ref[...], preferred_element_type=jnp.float32)
    y = y + b_ref[...]
    if relu:
        y = jnp.maximum(y, 0.0)
    o_ref[...] = y.astype(o_ref.dtype)


def dense(x, w, b, *, relu=False):
    """x: (M, D) @ w: (D, O) + b: (1, O). Whole arrays in VMEM (small shapes).
    TODO(synk): for large M on v7x (64 MiB VMEM) tile over rows instead of whole-array blocks."""
    M, _ = x.shape
    O = w.shape[1]
    return pl.pallas_call(
        functools.partial(_dense_kernel, relu=relu),
        out_shape=jax.ShapeDtypeStruct((M, O), jnp.float32),
        in_specs=[pl.BlockSpec(memory_space=pltpu.MemorySpace.VMEM)] * 3,
        out_specs=pl.BlockSpec(memory_space=pltpu.MemorySpace.VMEM),
    )(x, w, b)


# ------------------------------------------------------------------ GRU recurrence kernel
def _gru_rec_kernel(gx_ref, whh_ref, bhh_ref, o_ref, *, hp):
    # gx_ref : (T, B, 3*hp) time-major pre-activations x@Wih + b_ih (gate order r|z|n, lane-padded)
    # whh_ref: (hp, 3*hp) fused recurrent weights, bhh_ref: (1, 3*hp)
    # o_ref  : (T, B, hp) full hidden sequence (lane-dense stores)
    T, B, _ = gx_ref.shape
    whh = whh_ref[...]          # hoist: resident for the whole loop
    bhh = bhh_ref[...]

    def step(t, h_prev):
        gh = jnp.dot(h_prev, whh, preferred_element_type=jnp.float32) + bhh   # (B, 3*hp)
        gx = gx_ref[t]                                                        # (B, 3*hp)
        r = jax.nn.sigmoid(gx[:, 0 * hp:1 * hp] + gh[:, 0 * hp:1 * hp])
        z = jax.nn.sigmoid(gx[:, 1 * hp:2 * hp] + gh[:, 1 * hp:2 * hp])
        n = jnp.tanh(gx[:, 2 * hp:3 * hp] + r * gh[:, 2 * hp:3 * hp])
        h = (1.0 - z) * n + z * h_prev
        o_ref[t] = h
        return h

    h0 = jnp.zeros((B, hp), jnp.float32)
    jax.lax.fori_loop(0, T, step, h0, unroll=(T <= 32))


def gru_recurrence(gx, whh_p, bhh_p):
    """gx: (T, B, 3*HP) precomputed input gates (time-major). Returns (T, B, HP)."""
    T, B, _ = gx.shape
    hp = whh_p.shape[0]
    return pl.pallas_call(
        functools.partial(_gru_rec_kernel, hp=hp),
        out_shape=jax.ShapeDtypeStruct((T, B, hp), jnp.float32),
        in_specs=[pl.BlockSpec(memory_space=pltpu.MemorySpace.VMEM)] * 3,
        out_specs=pl.BlockSpec(memory_space=pltpu.MemorySpace.VMEM),
    )(gx, whh_p, bhh_p)


# ------------------------------------------------------------------ fused output head (linear1+linear2)
def _head_kernel(h_ref, w1_ref, b1_ref, w2_ref, b2_ref, o_ref):
    # TODO(synk): F.dropout(p=0.2) in linear1 is stochastic training-mode behavior; omitted (deterministic eval).
    y = jnp.dot(h_ref[...], w1_ref[...], preferred_element_type=jnp.float32) + b1_ref[...]
    y = jnp.maximum(y, 0.0)
    y = jnp.dot(y, w2_ref[...], preferred_element_type=jnp.float32) + b2_ref[...]
    o_ref[...] = y.astype(o_ref.dtype)


def head(h_last, w1, b1, w2, b2):
    B = h_last.shape[0]
    O = w2.shape[1]
    return pl.pallas_call(
        _head_kernel,
        out_shape=jax.ShapeDtypeStruct((B, O), jnp.float32),
        in_specs=[pl.BlockSpec(memory_space=pltpu.MemorySpace.VMEM)] * 5,
        out_specs=pl.BlockSpec(memory_space=pltpu.MemorySpace.VMEM),
    )(h_last, w1, b1, w2, b2)


# ------------------------------------------------------------------ parameters
def init_params(key, input_size, output_size, hidden=HIDDEN):
    """Unpadded parameters, matching PyTorch init distributions.
    GRU weights fused per-layer in gate order (r | z | n): wih (Din, 3H), whh (H, 3H)."""
    ks = jax.random.split(key, 10)
    lim = 1.0 / (hidden ** 0.5)

    def u(k, shape):
        return jax.random.uniform(k, shape, jnp.float32, -lim, lim)

    def xavier(k, shape):
        l = (6.0 / (shape[0] + shape[1])) ** 0.5
        return jax.random.uniform(k, shape, jnp.float32, -l, l)

    return {
        "wih1": u(ks[0], (input_size, 3 * hidden)),
        "whh1": u(ks[1], (hidden, 3 * hidden)),
        "bih1": u(ks[2], (3 * hidden,)),
        "bhh1": u(ks[3], (3 * hidden,)),
        "wih2": u(ks[4], (hidden, 3 * hidden)),
        "whh2": u(ks[5], (hidden, 3 * hidden)),
        "bih2": u(ks[6], (3 * hidden,)),
        "bhh2": u(ks[7], (3 * hidden,)),
        # Dense layers: xavier-uniform weights, zero biases
        "w1": xavier(ks[8], (hidden, hidden)),
        "b1": jnp.zeros((hidden,), jnp.float32),
        "w2": xavier(ks[9], (hidden, output_size)),
        "b2": jnp.zeros((output_size,), jnp.float32),
    }


def _pad_gate_cols(w, h, hp):
    """Place each of the 3 gate blocks (width h) at lane offsets 0, hp, 2*hp; zero pad."""
    parts = []
    for g in range(3):
        blk = w[..., g * h:(g + 1) * h]
        pad = [(0, 0)] * (w.ndim - 1) + [(0, hp - h)]
        parts.append(jnp.pad(blk, pad))
    return jnp.concatenate(parts, axis=-1)


def _pad_rows(w, h, hp):
    return jnp.pad(w, [(0, hp - h)] + [(0, 0)] * (w.ndim - 1))


def prepare_params(p, hidden=HIDDEN, hp=HP):
    """Build the lane-padded / fused layouts the kernels consume. Call once, outside jit."""
    return {
        "wih1": _pad_gate_cols(p["wih1"], hidden, hp),
        "bih1": _pad_gate_cols(p["bih1"], hidden, hp).reshape(1, 3 * hp),
        "whh1": _pad_rows(_pad_gate_cols(p["whh1"], hidden, hp), hidden, hp),
        "bhh1": _pad_gate_cols(p["bhh1"], hidden, hp).reshape(1, 3 * hp),
        "wih2": _pad_rows(_pad_gate_cols(p["wih2"], hidden, hp), hidden, hp),
        "bih2": _pad_gate_cols(p["bih2"], hidden, hp).reshape(1, 3 * hp),
        "whh2": _pad_rows(_pad_gate_cols(p["whh2"], hidden, hp), hidden, hp),
        "bhh2": _pad_gate_cols(p["bhh2"], hidden, hp).reshape(1, 3 * hp),
        "w1": jnp.pad(p["w1"], [(0, hp - hidden), (0, hp - hidden)]),
        "b1": jnp.pad(p["b1"], [(0, hp - hidden)]).reshape(1, hp),
        "w2": jnp.pad(p["w2"], [(0, hp - hidden), (0, 0)]),
        "b2": p["b2"].reshape(1, -1),
    }


# ------------------------------------------------------------------ forward pass
@jax.jit
def gru_forward(x, pp):
    """x: (B, T, input_size) batch-first (like the PyTorch module) -> (B, output_size)."""
    B, T, Din = x.shape
    # time-major rows, flattened: row index = t*B + b
    x_t = jnp.transpose(x, (1, 0, 2)).reshape(T * B, Din)

    # layer 1: hoisted input projection (one big lane-dense matmul), then serial recurrence
    gx1 = dense(x_t, pp["wih1"], pp["bih1"]).reshape(T, B, 3 * HP)
    h1 = gru_recurrence(gx1, pp["whh1"], pp["bhh1"])                       # (T, B, HP)

    # layer 2 (h1 already time-major -> no transpose needed)
    gx2 = dense(h1.reshape(T * B, HP), pp["wih2"], pp["bih2"]).reshape(T, B, 3 * HP)
    h2 = gru_recurrence(gx2, pp["whh2"], pp["bhh2"])                       # (T, B, HP)

    # head only on the last time step (the module discards everything else)
    return head(h2[-1], pp["w1"], pp["b1"], pp["w2"], pp["b2"])


# ------------------------------------------------------------------ pure-JAX reference (unpadded)
def _gru_layer_ref(x_tbf, wih, bih, whh, bhh, h):
    B = x_tbf.shape[1]

    def step(hprev, xt):
        gx = xt @ wih + bih
        gh = hprev @ whh + bhh
        r = jax.nn.sigmoid(gx[:, :h] + gh[:, :h])
        z = jax.nn.sigmoid(gx[:, h:2 * h] + gh[:, h:2 * h])
        n = jnp.tanh(gx[:, 2 * h:] + r * gh[:, 2 * h:])
        hn = (1.0 - z) * n + z * hprev
        return hn, hn

    _, hs = jax.lax.scan(step, jnp.zeros((B, h), jnp.float32), x_tbf)
    return hs


def forward_ref(x, p):
    xt = jnp.transpose(x, (1, 0, 2))
    h1 = _gru_layer_ref(xt, p["wih1"], p["bih1"], p["whh1"], p["bhh1"], HIDDEN)
    h2 = _gru_layer_ref(h1, p["wih2"], p["bih2"], p["whh2"], p["bhh2"], HIDDEN)
    y = jnp.maximum(h2[-1] @ p["w1"] + p["b1"], 0.0)
    return y @ p["w2"] + p["b2"]


# ------------------------------------------------------------------ demo
if __name__ == "__main__":
    B, T = 2, 8
    INPUT_SIZE, OUTPUT_SIZE = 16, 4

    key = jax.random.PRNGKey(0)
    k_x, k_p = jax.random.split(key)
    x = jax.random.normal(k_x, (B, T, INPUT_SIZE), jnp.float32)
    params = init_params(k_p, INPUT_SIZE, OUTPUT_SIZE)
    padded = prepare_params(params)

    out = gru_forward(x, padded)
    jax.block_until_ready(out)
    assert out.shape == (B, OUTPUT_SIZE), out.shape

    ref = forward_ref(x, params)
    err = float(jnp.max(jnp.abs(out - ref)))
    assert err < 5e-2, f"mismatch vs reference: {err}"

    print("KERNEL_OK")
</pallas_src>

<mosaic_0001>
module attributes {stable_mosaic.version = 11 : i64} {
  func.func @_dense_kernel(%arg0: memref<16x16xf32, #tpu.memory_space<vmem>>, %arg1: memref<16x384xf32, #tpu.memory_space<vmem>>, %arg2: memref<1x384xf32, #tpu.memory_space<vmem>>, %arg3: memref<16x384xf32, #tpu.memory_space<vmem>>) attributes {dimension_semantics = [], scalar_prefetch = 0 : i64, scratch_operands = 0 : i64, tpu.core_type = #tpu.core_type<tc>} {
    %c0 = arith.constant 0 : index
    %c0_0 = arith.constant 0 : index
    %0 = vector.load %arg0[%c0, %c0_0] : memref<16x16xf32, #tpu.memory_space<vmem>>, vector<16x16xf32>
    %c0_1 = arith.constant 0 : index
    %c0_2 = arith.constant 0 : index
    %1 = vector.load %arg1[%c0_1, %c0_2] : memref<16x384xf32, #tpu.memory_space<vmem>>, vector<16x384xf32>
    %cst = arith.constant dense<0.000000e+00> : vector<16x384xf32>
    %2 = tpu.matmul %0, %1, %cst {dimension_numbers = #tpu.dot_dimension_numbers<[1], [0], [0], [1], [0, 0, 1, 1], [], []>} : vector<16x16xf32>, vector<16x384xf32>, vector<16x384xf32> -> vector<16x384xf32>
    %c0_3 = arith.constant 0 : index
    %c0_4 = arith.constant 0 : index
    %3 = vector.load %arg2[%c0_3, %c0_4] : memref<1x384xf32, #tpu.memory_space<vmem>>, vector<1x384xf32>
    %4 = vector.broadcast %3 : vector<1x384xf32> to vector<16x384xf32>
    %5 = arith.addf %2, %4 : vector<16x384xf32>
    %c0_5 = arith.constant 0 : index
    %c0_6 = arith.constant 0 : index
    %6 = vector.load %arg3[%c0_5, %c0_6] : memref<16x384xf32, #tpu.memory_space<vmem>>, vector<16x384xf32>
    tpu.vector_store %arg3[%c0_5, %c0_6], %5 {strides = array<i32>} : memref<16x384xf32, #tpu.memory_space<vmem>>, vector<16x384xf32>,
    return
  }
}

module attributes {stable_mosaic.version = 11 : i64} {
  func.func @_gru_rec_kernel(%arg0: memref<8x2x384xf32, #tpu.memory_space<vmem>>, %arg1: memref<128x384xf32, #tpu.memory_space<vmem>>, %arg2: memref<1x384xf32, #tpu.memory_space<vmem>>, %arg3: memref<8x2x128xf32, #tpu.memory_space<vmem>>) attributes {dimension_semantics = [], scalar_prefetch = 0 : i64, scratch_operands = 0 : i64, tpu.core_type = #tpu.core_type<tc>} {
    %c0 = arith.constant 0 : index
    %c0_0 = arith.constant 0 : index
    %0 = vector.load %arg1[%c0, %c0_0] : memref<128x384xf32, #tpu.memory_space<vmem>>, vector<128x384xf32>
    %c0_1 = arith.constant 0 : index
    %c0_2 = arith.constant 0 : index
    %1 = vector.load %arg2[%c0_1, %c0_2] : memref<1x384xf32, #tpu.memory_space<vmem>>, vector<1x384xf32>
    %cst = arith.constant 0.000000e+00 : f32
    %2 = vector.broadcast %cst : f32 to vector<2x128xf32>
    %c0_i32 = arith.constant 0 : i32
    %cst_3 = arith.constant dense<0.000000e+00> : vector<2x384xf32>
    %3 = tpu.matmul %2, %0, %cst_3 {dimension_numbers = #tpu.dot_dimension_numbers<[1], [0], [0], [1], [0, 0, 1, 1], [], []>} : vector<2x128xf32>, vector<128x384xf32>, vector<2x384xf32> -> vector<2x384xf32>
    %4 = vector.broadcast %1 : vector<1x384xf32> to vector<2x384xf32>
    %5 = arith.addf %3, %4 : vector<2x384xf32>
    %6 = arith.index_cast %c0_i32 : i32 to index
    %c0_4 = arith.constant 0 : index
    %c0_5 = arith.constant 0 : index
    %7 = vector.load %arg0[%6, %c0_4, %c0_5] : memref<8x2x384xf32, #tpu.memory_space<vmem>>, vector<1x2x384xf32>
    %8 = vector.shape_cast %7 : vector<1x2x384xf32> to vector<2x384xf32>
    %9 = vector.extract_strided_slice %8 {offsets = [0, 0], sizes = [2, 128], strides = [1, 1]} : vector<2x384xf32> to vector<2x128xf32>
    %10 = vector.extract_strided_slice %5 {offsets = [0, 0], sizes = [2, 128], strides = [1, 1]} : vector<2x384xf32> to vector<2x128xf32>
    %11 = arith.addf %9, %10 : vector<2x128xf32>
    %12 = arith.negf %11 : vector<2x128xf32>
    %13 = math.exp %12 : vector<2x128xf32>
    %cst_6 = arith.constant 1.000000e+00 : f32
    %14 = vector.broadcast %cst_6 : f32 to vector<2x128xf32>
    %15 = arith.addf %14, %13 : vector<2x128xf32>
    %16 = arith.divf %14, %15 : vector<2x128xf32>
    %17 = vector.extract_strided_slice %8 {offsets = [0, 128], sizes = [2, 128], strides = [1, 1]} : vector<2x384xf32> to vector<2x128xf32>
    %18 = vector.extract_strided_slice %5 {offsets = [0, 128], sizes = [2, 128], strides = [1, 1]} : vector<2x384xf32> to vector<2x128xf32>
    %19 = arith.addf %17, %18 : vector<2x128xf32>
    %20 = arith.negf %19 : vector<2x128xf32>
    %21 = math.exp %20 : vector<2x128xf32>
    %cst_7 = arith.constant 1.000000e+00 : f32
    %22 = vector.broadcast %cst_7 : f32 to vector<2x128xf32>
    %23 = arith.addf %22, %21 : vector<2x128xf32>
    %24 = arith.divf %22, %23 : vector<2x128xf32>
    %25 = vector.extract_strided_slice %8 {offsets = [0, 256], sizes = [2, 128], strides = [1, 1]} : vector<2x384xf32> to vector<2x128xf32>
    %26 = vector.extract_strided_slice %5 {offsets = [0, 256], sizes = [2, 128], strides = [1, 1]} : vector<2x384xf32> to vector<2x128xf32>
    %27 = arith.mulf %16, %26 : vector<2x128xf32>
    %28 = arith.addf %25, %27 : vector<2x128xf32>
    %29 = math.tanh %28 : vector<2x128xf32>
    %cst_8 = arith.constant 1.000000e+00 : f32
    %30 = vector.broadcast %cst_8 : f32 to vector<2x128xf32>
    %31 = arith.subf %30, %24 : vector<2x128xf32>
    %32 = arith.mulf %31, %29 : vector<2x128xf32>
    %33 = arith.mulf %24, %2 : vector<2x128xf32>
    %34 = arith.addf %32, %33 : vector<2x128xf32>
    %35 = arith.index_cast %c0_i32 : i32 to index
    %c0_9 = arith.constant 0 : index
    %c0_10 = arith.constant 0 : index
    %36 = vector.load %arg3[%35, %c0_9, %c0_10] : memref<8x2x128xf32, #tpu.memory_space<vmem>>, vector<1x2x128xf32>
    %37 = vector.shape_cast %36 : vector<1x2x128xf32> to vector<2x128xf32>
    %38 = vector.shape_cast %34 : vector<2x128xf32> to vector<1x2x128xf32>
    tpu.vector_store %arg3[%35, %c0_9, %c0_10], %38 {strides = array<i32>} : memref<8x2x128xf32, #tpu.memory_space<vmem>>, vector<1x2x128xf32>,
    %c1_i32 = arith.constant 1 : i32
    %cst_11 = arith.constant dense<0.000000e+00> : vector<2x384xf32>
    %39 = tpu.matmul %34, %0, %cst_11 {dimension_numbers = #tpu.dot_dimension_numbers<[1], [0], [0], [1], [0, 0, 1, 1], [], []>} : vector<2x128xf32>, vector<128x384xf32>, vector<2x384xf32> -> vector<2x384xf32>
    %40 = vector.broadcast %1 : vector<1x384xf32> to vector<2x384xf32>
    %41 = arith.addf %39, %40 : vector<2x384xf32>
    %42 = arith.index_cast %c1_i32 : i32 to index
    %c0_12 = arith.constant 0 : index
    %c0_13 = arith.constant 0 : index
    %43 = vector.load %arg0[%42, %c0_12, %c0_13] : memref<8x2x384xf32, #tpu.memory_space<vmem>>, vector<1x2x384xf32>
    %44 = vector.shape_cast %43 : vector<1x2x384xf32> to vector<2x384xf32>
    %45 = vector.extract_strided_slice %44 {offsets = [0, 0], sizes = [2, 128], strides = [1, 1]} : vector<2x384xf32> to vector<2x128xf32>
    %46 = vector.extract_strided_slice %41 {offsets = [0, 0], sizes = [2, 128], strides = [1, 1]} : vector<2x384xf32> to vector<2x128xf32>
    %47 = arith.addf %45, %46 : vector<2x128xf32>
    %48 = arith.negf %47 : vector<2x128xf32>
    %49 = math.exp %48 : vector<2x128xf32>
    %cst_14 = arith.constant 1.000000e+00 : f32
    %50 = vector.broadcast %cst_14 : f32 to vector<2x128xf32>
    %51 = arith.addf %50, %49 : vector<2x128xf32>
    %52 = arith.divf %50, %51 : vector<2x128xf32>
    %53 = vector.extract_strided_slice %44 {offsets = [0, 128], sizes = [2, 128], strides = [1, 1]} : vector<2x384xf32> to vector<2x128xf32>
    %54 = vector.extract_strided_slice %41 {offsets = [0, 128], sizes = [2, 128], strides = [1, 1]} : vector<2x384xf32> to vector<2x128xf32>
    %55 = arith.addf %53, %54 : vector<2x128xf32>
    %56 = arith.negf %55 : vector<2x128xf32>
    %57 = math.exp %56 : vector<2x128xf32>
    %cst_15 = arith.constant 1.000000e+00 : f32
    %58 = vector.broadcast %cst_15 : f32 to vector<2x128xf32>
    %59 = arith.addf %58, %57 : vector<2x128xf32>
    %60 = arith.divf %58, %59 : vector<2x128xf32>
    %61 = vector.extract_strided_slice %44 {offsets = [0, 256], sizes = [2, 128], strides = [1, 1]} : vector<2x384xf32> to vector<2x128xf32>
    %62 = vector.extract_strided_slice %41 {offsets = [0, 256], sizes = [2, 128], strides = [1, 1]} : vector<2x384xf32> to vector<2x128xf32>
    %63 = arith.mulf %52, %62 : vector<2x128xf32>
    %64 = arith.addf %61, %63 : vector<2x128xf32>
    %65 = math.tanh %64 : vector<2x128xf32>
    %cst_16 = arith.constant 1.000000e+00 : f32
    %66 = vector.broadcast %cst_16 : f32 to vector<2x128xf32>
    %67 = arith.subf %66, %60 : vector<2x128xf32>
    %68 = arith.mulf %67, %65 : vector<2x128xf32>
    %69 = arith.mulf %60, %34 : vector<2x128xf32>
    %70 = arith.addf %68, %69 : vector<2x128xf32>
    %71 = arith.index_cast %c1_i32 : i32 to index
    %c0_17 = arith.constant 0 : index
    %c0_18 = arith.constant 0 : index
    %72 = vector.load %arg3[%71, %c0_17, %c0_18] : memref<8x2x128xf32, #tpu.memory_space<vmem>>, vector<1x2x128xf32>
    %73 = vector.shape_cast %72 : vector<1x2x128xf32> to vector<2x128xf32>
    %74 = vector.shape_cast %70 : vector<2x128xf32> to vector<1x2x128xf32>
    tpu.vector_store %arg3[%71, %c0_17, %c0_18], %74 {strides = array<i32>} : memref<8x2x128xf32, #tpu.memory_space<vmem>>, vector<1x2x128xf32>,
    %c2_i32 = arith.constant 2 : i32
    %cst_19 = arith.constant dense<0.000000e+00> : vector<2x384xf32>
    %75 = tpu.matmul %70, %0, %cst_19 {dimension_numbers = #tpu.dot_dimension_numbers<[1], [0], [0], [1], [0, 0, 1, 1], [], []>} : vector<2x128xf32>, vector<128x384xf32>, vector<2x384xf32> -> vector<2x384xf32>
    %76 = vector.broadcast %1 : vector<1x384xf32> to vector<2x384xf32>
    %77 = arith.addf %75, %76 : vector<2x384xf32>
    %78 = arith.index_cast %c2_i32 : i32 to index
    %c0_20 = arith.constant 0 : index
    %c0_21 = arith.constant 0 : index
    %79 = vector.load %arg0[%78, %c0_20, %c0_21] : memref<8x2x384xf32, #tpu.memory_space<vmem>>, vector<1x2x384xf32>
    %80 = vector.shape_cast %79 : vector<1x2x384xf32> to vector<2x384xf32>
    %81 = vector.extract_strided_slice %80 {offsets = [0, 0], sizes = [2, 128], strides = [1, 1]} : vector<2x384xf32> to vector<2x128xf32>
    %82 = vector.extract_strided_slice %77 {offsets = [0, 0], sizes = [2, 128], strides = [1, 1]} : vector<2x384xf32> to vector<2x128xf32>
    %83 = arith.addf %81, %82 : vector<2x128xf32>
    %84 = arith.negf %83 : vector<2x128xf32>
    %85 = math.exp %84 : vector<2x128xf32>
    %cst_22 = arith.constant 1.000000e+00 : f32
    %86 = vector.broadcast %cst_22 : f32 to vector<2x128xf32>
    %87 = arith.addf %86, %85 : vector<2x128xf32>
    %88 = arith.divf %86, %87 : vector<2x128xf32>
    %89 = vector.extract_strided_slice %80 {offsets = [0, 128], sizes = [2, 128], strides = [1, 1]} : vector<2x384xf32> to vector<2x128xf32>
    %90 = vector.extract_strided_slice %77 {offsets = [0, 128], sizes = [2, 128], strides = [1, 1]} : vector<2x384xf32> to vector<2x128xf32>
    %91 = arith.addf %89, %90 : vector<2x128xf32>
    %92 = arith.negf %91 : vector<2x128xf32>
    %93 = math.exp %92 : vector<2x128xf32>
    %cst_23 = arith.constant 1.000000e+00 : f32
    %94 = vector.broadcast %cst_23 : f32 to vector<2x128xf32>
    %95 = arith.addf %94, %93 : vector<2x128xf32>
    %96 = arith.divf %94, %95 : vector<2x128xf32>
    %97 = vector.extract_strided_slice %80 {offsets = [0, 256], sizes = [2, 128], strides = [1, 1]} : vector<2x384xf32> to vector<2x128xf32>
    %98 = vector.extract_strided_slice %77 {offsets = [0, 256], sizes = [2, 128], strides = [1, 1]} : vector<2x384xf32> to vector<2x128xf32>
    %99 = arith.mulf %88, %98 : vector<2x128xf32>
    %100 = arith.addf %97, %99 : vector<2x128xf32>
    %101 = math.tanh %100 : vector<2x128xf32>
    %cst_24 = arith.constant 1.000000e+00 : f32
    %102 = vector.broadcast %cst_24 : f32 to vector<2x128xf32>
    %103 = arith.subf %102, %96 : vector<2x128xf32>
    %104 = arith.mulf %103, %101 : vector<2x128xf32>
    %105 = arith.mulf %96, %70 : vector<2x128xf32>
    %106 = arith.addf %104, %105 : vector<2x128xf32>
    %107 = arith.index_cast %c2_i32 : i32 to index
    %c0_25 = arith.constant 0 : index
    %c0_26 = arith.constant 0 : index
    %108 = vector.load %arg3[%107, %c0_25, %c0_26] : memref<8x2x128xf32, #tpu.memory_space<vmem>>, vector<1x2x128xf32>
    %109 = vector.shape_cast %108 : vector<1x2x128xf32> to vector<2x128xf32>
    %110 = vector.shape_cast %106 : vector<2x128xf32> to vector<1x2x128xf32>
    tpu.vector_store %arg3[%107, %c0_25, %c0_26], %110 {strides = array<i32>} : memref<8x2x128xf32, #tpu.memory_space<vmem>>, vector<1x2x128xf32>,
    %c3_i32 = arith.constant 3 : i32
    %cst_27 = arith.constant dense<0.000000e+00> : vector<2x384xf32>
    %111 = tpu.matmul %106, %0, %cst_27 {dimension_numbers = #tpu.dot_dimension_numbers<[1], [0], [0], [1], [0, 0, 1, 1], [], []>} : vector<2x128xf32>, vector<128x384xf32>, vector<2x384xf32> -> vector<2x384xf32>
    %112 = vector.broadcast %1 : vector<1x384xf32> to vector<2x384xf32>
    %113 = arith.addf %111, %112 : vector<2x384xf32>
    %114 = arith.index_cast %c3_i32 : i32 to index
    %c0_28 = arith.constant 0 : index
    %c0_29 = arith.constant 0 : index
    %115 = vector.load %arg0[%114, %c0_28, %c0_29] : memref<8x2x384xf32, #tpu.memory_space<vmem>>, vector<1x2x384xf32>
    %116 = vector.shape_cast %115 : vector<1x2x384xf32> to vector<2x384xf32>
    %117 = vector.extract_strided_slice %116 {offsets = [0, 0], sizes = [2, 128], strides = [1, 1]} : vector<2x384xf32> to vector<2x128xf32>
    %118 = vector.extract_strided_slice %113 {offsets = [0, 0], sizes = [2, 128], strides = [1, 1]} : vector<2x384xf32> to vector<2x128xf32>
    %119 = arith.addf %117, %118 : vector<2x128xf32>
    %120 = arith.negf %119 : vector<2x128xf32>
    %121 = math.exp %120 : vector<2x128xf32>
    %cst_30 = arith.constant 1.000000e+00 : f32
    %122 = vector.broadcast %cst_30 : f32 to vector<2x128xf32>
    %123 = arith.addf %122, %121 : vector<2x128xf32>
    %124 = arith.divf %122, %123 : vector<2x128xf32>
    %125 = vector.extract_strided_slice %116 {offsets = [0, 128], sizes = [2, 128], strides = [1, 1]} : vector<2x384xf32> to vector<2x128xf32>
    %126 = vector.extract_strided_slice %113 {offsets = [0, 128], sizes = [2, 128], strides = [1, 1]} : vector<2x384xf32> to vector<2x128xf32>
    %127 = arith.addf %125, %126 : vector<2x128xf32>
    %128 = arith.negf %127 : vector<2x128xf32>
    %129 = math.exp %128 : vector<2x128xf32>
    %cst_31 = arith.constant 1.000000e+00 : f32
    %130 = vector.broadcast %cst_31 : f32 to vector<2x128xf32>
    %131 = arith.addf %130, %129 : vector<2x128xf32>
    %132 = arith.divf %130, %131 : vector<2x128xf32>
    %133 = vector.extract_strided_slice %116 {offsets = [0, 256], sizes = [2, 128], strides = [1, 1]} : vector<2x384xf32> to vector<2x128xf32>
    %134 = vector.extract_strided_slice %113 {offsets = [0, 256], sizes = [2, 128], strides = [1, 1]} : vector<2x384xf32> to vector<2x128xf32>
    %135 = arith.mulf %124, %134 : vector<2x128xf32>
    %136 = arith.addf %133, %135 : vector<2x128xf32>
    %137 = math.tanh %136 : vector<2x128xf32>
    %cst_32 = arith.constant 1.000000e+00 : f32
    %138 = vector.broadcast %cst_32 : f32 to vector<2x128xf32>
    %139 = arith.subf %138, %132 : vector<2x128xf32>
    %140 = arith.mulf %139, %137 : vector<2x128xf32>
    %141 = arith.mulf %132, %106 : vector<2x128xf32>
    %142 = arith.addf %140, %141 : vector<2x128xf32>
    %143 = arith.index_cast %c3_i32 : i32 to index
    %c0_33 = arith.constant 0 : index
    %c0_34 = arith.constant 0 : index
    %144 = vector.load %arg3[%143, %c0_33, %c0_34] : memref<8x2x128xf32, #tpu.memory_space<vmem>>, vector<1x2x128xf32>
    %145 = vector.shape_cast %144 : vector<1x2x128xf32> to vector<2x128xf32>
    %146 = vector.shape_cast %142 : vector<2x128xf32> to vector<1x2x128xf32>
    tpu.vector_store %arg3[%143, %c0_33, %c0_34], %146 {strides = array<i32>} : memref<8x2x128xf32, #tpu.memory_space<vmem>>, vector<1x2x128xf32>,
    %c4_i32 = arith.constant 4 : i32
    %cst_35 = arith.constant dense<0.000000e+00> : vector<2x384xf32>
    %147 = tpu.matmul %142, %0, %cst_35 {dimension_numbers = #tpu.dot_dimension_numbers<[1], [0], [0], [1], [0, 0, 1, 1], [], []>} : vector<2x128xf32>, vector<128x384xf32>, vector<2x384xf32> -> vector<2x384xf32>
    %148 = vector.broadcast %1 : vector<1x384xf32> to vector<2x384xf32>
    %149 = arith.addf %147, %148 : vector<2x384xf32>
    %150 = arith.index_cast %c4_i32 : i32 to index
    %c0_36 = arith.constant 0 : index
    %c0_37 = arith.constant 0 : index
    %151 = vector.load %arg0[%150, %c0_36, %c0_37] : memref<8x2x384xf32, #tpu.memory_space<vmem>>, vector<1x2x384xf32>
    %152 = vector.shape_cast %151 : vector<1x2x384xf32> to vector<2x384xf32>
    %153 = vector.extract_strided_slice %152 {offsets = [0, 0], sizes = [2, 128], strides = [1, 1]} : vector<2x384xf32> to vector<2x128xf32>
    %154 = vector.extract_strided_slice %149 {offsets = [0, 0], sizes = [2, 128], strides = [1, 1]} : vector<2x384xf32> to vector<2x128xf32>
    %155 = arith.addf %153, %154 : vector<2x128xf32>
    %156 = arith.negf %155 : vector<2x128xf32>
    %157 = math.exp %156 : vector<2x128xf32>
    %cst_38 = arith.constant 1.000000e+00 : f32
    %158 = vector.broadcast %cst_38 : f32 to vector<2x128xf32>
    %159 = arith.addf %158, %157 : vector<2x128xf32>
    %160 = arith.divf %158, %159 : vector<2x128xf32>
    %161 = vector.extract_strided_slice %152 {offsets = [0, 128], sizes = [2, 128], strides = [1, 1]} : vector<2x384xf32> to vector<2x128xf32>
    %162 = vector.extract_strided_slice %149 {offsets = [0, 128], sizes = [2, 128], strides = [1, 1]} : vector<2x384xf32> to vector<2x128xf32>
    %163 = arith.addf %161, %162 : vector<2x128xf32>
    %164 = arith.negf %163 : vector<2x128xf32>
    %165 = math.exp %164 : vector<2x128xf32>
    %cst_39 = arith.constant 1.000000e+00 : f32
    %166 = vector.broadcast %cst_39 : f32 to vector<2x128xf32>
    %167 = arith.addf %166, %165 : vector<2x128xf32>
    %168 = arith.divf %166, %167 : vector<2x128xf32>
    %169 = vector.extract_strided_slice %152 {offsets = [0, 256], sizes = [2, 128], strides = [1, 1]} : vector<2x384xf32> to vector<2x128xf32>
    %170 = vector.extract_strided_slice %149 {offsets = [0, 256], sizes = [2, 128], strides = [1, 1]} : vector<2x384xf32> to vector<2x128xf32>
    %171 = arith.mulf %160, %170 : vector<2x128xf32>
    %172 = arith.addf %169, %171 : vector<2x128xf32>
    %173 = math.tanh %172 : vector<2x128xf32>
    %cst_40 = arith.constant 1.000000e+00 : f32
    %174 = vector.broadcast %cst_40 : f32 to vector<2x128xf32>
    %175 = arith.subf %174, %168 : vector<2x128xf32>
    %176 = arith.mulf %175, %173 : vector<2x128xf32>
    %177 = arith.mulf %168, %142 : vector<2x128xf32>
    %178 = arith.addf %176, %177 : vector<2x128xf32>
    %179 = arith.index_cast %c4_i32 : i32 to index
    %c0_41 = arith.constant 0 : index
    %c0_42 = arith.constant 0 : index
    %180 = vector.load %arg3[%179, %c0_41, %c0_42] : memref<8x2x128xf32, #tpu.memory_space<vmem>>, vector<1x2x128xf32>
    %181 = vector.shape_cast %180 : vector<1x2x128xf32> to vector<2x128xf32>
    %182 = vector.shape_cast %178 : vector<2x128xf32> to vector<1x2x128xf32>
    tpu.vector_store %arg3[%179, %c0_41, %c0_42], %182 {strides = array<i32>} : memref<8x2x128xf32, #tpu.memory_space<vmem>>, vector<1x2x128xf32>,
    %c5_i32 = arith.constant 5 : i32
    %cst_43 = arith.constant dense<0.000000e+00> : vector<2x384xf32>
    %183 = tpu.matmul %178, %0, %cst_43 {dimension_numbers = #tpu.dot_dimension_numbers<[1], [0], [0], [1], [0, 0, 1, 1], [], []>} : vector<2x128xf32>, vector<128x384xf32>, vector<2x384xf32> -> vector<2x384xf32>
    %184 = vector.broadcast %1 : vector<1x384xf32> to vector<2x384xf32>
    %185 = arith.addf %183, %184 : vector<2x384xf32>
    %186 = arith.index_cast %c5_i32 : i32 to index
    %c0_44 = arith.constant 0 : index
    %c0_45 = arith.constant 0 : index
    %187 = vector.load %arg0[%186, %c0_44, %c0_45] : memref<8x2x384xf32, #tpu.memory_space<vmem>>, vector<1x2x384xf32>
    %188 = vector.shape_cast %187 : vector<1x2x384xf32> to vector<2x384xf32>
    %189 = vector.extract_strided_slice %188 {offsets = [0, 0], sizes = [2, 128], strides = [1, 1]} : vector<2x384xf32> to vector<2x128xf32>
    %190 = vector.extract_strided_slice %185 {offsets = [0, 0], sizes = [2, 128], strides = [1, 1]} : vector<2x384xf32> to vector<2x128xf32>
    %191 = arith.addf %189, %190 : vector<2x128xf32>
    %192 = arith.negf %191 : vector<2x128xf32>
    %193 = math.exp %192 : vector<2x128xf32>
    %cst_46 = arith.constant 1.000000e+00 : f32
    %194 = vector.broadcast %cst_46 : f32 to vector<2x128xf32>
    %195 = arith.addf %194, %193 : vector<2x128xf32>
    %196 = arith.divf %194, %195 : vector<2x128xf32>
    %197 = vector.extract_strided_slice %188 {offsets = [0, 128], sizes = [2, 128], strides = [1, 1]} : vector<2x384xf32> to vector<2x128xf32>
    %198 = vector.extract_strided_slice %185 {offsets = [0, 128], sizes = [2, 128], strides = [1, 1]} : vector<2x384xf32> to vector<2x128xf32>
    %199 = arith.addf %197, %198 : vector<2x128xf32>
    %200 = arith.negf %199 : vector<2x128xf32>
    %201 = math.exp %200 : vector<2x128xf32>
    %cst_47 = arith.constant 1.000000e+00 : f32
    %202 = vector.broadcast %cst_47 : f32 to vector<2x128xf32>
    %203 = arith.addf %202, %201 : vector<2x128xf32>
    %204 = arith.divf %202, %203 : vector<2x128xf32>
    %205 = vector.extract_strided_slice %188 {offsets = [0, 256], sizes = [2, 128], strides = [1, 1]} : vector<2x384xf32> to vector<2x128xf32>
    %206 = vector.extract_strided_slice %185 {offsets = [0, 256], sizes = [2, 128], strides = [1, 1]} : vector<2x384xf32> to vector<2x128xf32>
    %207 = arith.mulf %196, %206 : vector<2x128xf32>
    %208 = arith.addf %205, %207 : vector<2x128xf32>
    %209 = math.tanh %208 : vector<2x128xf32>
    %cst_48 = arith.constant 1.000000e+00 : f32
    %210 = vector.broadcast %cst_48 : f32 to vector<2x128xf32>
    %211 = arith.subf %210, %204 : vector<2x128xf32>
    %212 = arith.mulf %211, %209 : vector<2x128xf32>
    %213 = arith.mulf %204, %178 : vector<2x128xf32>
    %214 = arith.addf %212, %213 : vector<2x128xf32>
    %215 = arith.index_cast %c5_i32 : i32 to index
    %c0_49 = arith.constant 0 : index
    %c0_50 = arith.constant 0 : index
    %216 = vector.load %arg3[%215, %c0_49, %c0_50] : memref<8x2x128xf32, #tpu.memory_space<vmem>>, vector<1x2x128xf32>
    %217 = vector.shape_cast %216 : vector<1x2x128xf32> to vector<2x128xf32>
    %218 = vector.shape_cast %214 : vector<2x128xf32> to vector<1x2x128xf32>
    tpu.vector_store %arg3[%215, %c0_49, %c0_50], %218 {strides = array<i32>} : memref<8x2x128xf32, #tpu.memory_space<vmem>>, vector<1x2x128xf32>,
    %c6_i32 = arith.constant 6 : i32
    %cst_51 = arith.constant dense<0.000000e+00> : vector<2x384xf32>
    %219 = tpu.matmul %214, %0, %cst_51 {dimension_numbers = #tpu.dot_dimension_numbers<[1], [0], [0], [1], [0, 0, 1, 1], [], []>} : vector<2x128xf32>, vector<128x384xf32>, vector<2x384xf32> -> vector<2x384xf32>
    %220 = vector.broadcast %1 : vector<1x384xf32> to vector<2x384xf32>
    %221 = arith.addf %219, %220 : vector<2x384xf32>
    %222 = arith.index_cast %c6_i32 : i32 to index
    %c0_52 = arith.constant 0 : index
    %c0_53 = arith.constant 0 : index
    %223 = vector.load %arg0[%222, %c0_52, %c0_53] : memref<8x2x384xf32, #tpu.memory_space<vmem>>, vector<1x2x384xf32>
    %224 = vector.shape_cast %223 : vector<1x2x384xf32> to vector<2x384xf32>
    %225 = vector.extract_strided_slice %224 {offsets = [0, 0], sizes = [2, 128], strides = [1, 1]} : vector<2x384xf32> to vector<2x128xf32>
    %226 = vector.extract_strided_slice %221 {offsets = [0, 0], sizes = [2, 128], strides = [1, 1]} : vector<2x384xf32> to vector<2x128xf32>
    %227 = arith.addf %225, %226 : vector<2x128xf32>
    %228 = arith.negf %227 : vector<2x128xf32>
    %229 = math.exp %228 : vector<2x128xf32>
    %cst_54 = arith.constant 1.000000e+00 : f32
    %230 = vector.broadcast %cst_54 : f32 to vector<2x128xf32>
    %231 = arith.addf %230, %229 : vector<2x128xf32>
    %232 = arith.divf %230, %231 : vector<2x128xf32>
    %233 = vector.extract_strided_slice %224 {offsets = [0, 128], sizes = [2, 128], strides = [1, 1]} : vector<2x384xf32> to vector<2x128xf32>
    %234 = vector.extract_strided_slice %221 {offsets = [0, 128], sizes = [2, 128], strides = [1, 1]} : vector<2x384xf32> to vector<2x128xf32>
    %235 = arith.addf %233, %234 : vector<2x128xf32>
    %236 = arith.negf %235 : vector<2x128xf32>
    %237 = math.exp %236 : vector<2x128xf32>
    %cst_55 = arith.constant 1.000000e+00 : f32
    %238 = vector.broadcast %cst_55 : f32 to vector<2x128xf32>
    %239 = arith.addf %238, %237 : vector<2x128xf32>
    %240 = arith.divf %238, %239 : vector<2x128xf32>
    %241 = vector.extract_strided_slice %224 {offsets = [0, 256], sizes = [2, 128], strides = [1, 1]} : vector<2x384xf32> to vector<2x128xf32>
    %242 = vector.extract_strided_slice %221 {offsets = [0, 256], sizes = [2, 128], strides = [1, 1]} : vector<2x384xf32> to vector<2x128xf32>
    %243 = arith.mulf %232, %242 : vector<2x128xf32>
    %244 = arith.addf %241, %243 : vector<2x128xf32>
    %245 = math.tanh %244 : vector<2x128xf32>
    %cst_56 = arith.constant 1.000000e+00 : f32
    %246 = vector.broadcast %cst_56 : f32 to vector<2x128xf32>
    %247 = arith.subf %246, %240 : vector<2x128xf32>
    %248 = arith.mulf %247, %245 : vector<2x128xf32>
    %249 = arith.mulf %240, %214 : vector<2x128xf32>
    %250 = arith.addf %248, %249 : vector<2x128xf32>
    %251 = arith.index_cast %c6_i32 : i32 to index
    %c0_57 = arith.constant 0 : index
    %c0_58 = arith.constant 0 : index
    %252 = vector.load %arg3[%251, %c0_57, %c0_58] : memref<8x2x128xf32, #tpu.memory_space<vmem>>, vector<1x2x128xf32>
    %253 = vector.shape_cast %252 : vector<1x2x128xf32> to vector<2x128xf32>
    %254 = vector.shape_cast %250 : vector<2x128xf32> to vector<1x2x128xf32>
    tpu.vector_store %arg3[%251, %c0_57, %c0_58], %254 {strides = array<i32>} : memref<8x2x128xf32, #tpu.memory_space<vmem>>, vector<1x2x128xf32>,
    %c7_i32 = arith.constant 7 : i32
    %cst_59 = arith.constant dense<0.000000e+00> : vector<2x384xf32>
    %255 = tpu.matmul %250, %0, %cst_59 {dimension_numbers = #tpu.dot_dimension_numbers<[1], [0], [0], [1], [0, 0, 1, 1], [], []>} : vector<2x128xf32>, vector<128x384xf32>, vector<2x384xf32> -> vector<2x384xf32>
    %256 = vector.broadcast %1 : vector<1x384xf32> to vector<2x384xf32>
    %257 = arith.addf %255, %256 : vector<2x384xf32>
    %258 = arith.index_cast %c7_i32 : i32 to index
    %c0_60 = arith.constant 0 : index
    %c0_61 = arith.constant 0 : index
    %259 = vector.load %arg0[%258, %c0_60, %c0_61] : memref<8x2x384xf32, #tpu.memory_space<vmem>>, vector<1x2x384xf32>
    %260 = vector.shape_cast %259 : vector<1x2x384xf32> to vector<2x384xf32>
    %261 = vector.extract_strided_slice %260 {offsets = [0, 0], sizes = [2, 128], strides = [1, 1]} : vector<2x384xf32> to vector<2x128xf32>
    %262 = vector.extract_strided_slice %257 {offsets = [0, 0], sizes = [2, 128], strides = [1, 1]} : vector<2x384xf32> to vector<2x128xf32>
    %263 = arith.addf %261, %262 : vector<2x128xf32>
    %264 = arith.negf %263 : vector<2x128xf32>
    %265 = math.exp %264 : vector<2x128xf32>
    %cst_62 = arith.constant 1.000000e+00 : f32
    %266 = vector.broadcast %cst_62 : f32 to vector<2x128xf32>
    %267 = arith.addf %266, %265 : vector<2x128xf32>
    %268 = arith.divf %266, %267 : vector<2x128xf32>
    %269 = vector.extract_strided_slice %260 {offsets = [0, 128], sizes = [2, 128], strides = [1, 1]} : vector<2x384xf32> to vector<2x128xf32>
    %270 = vector.extract_strided_slice %257 {offsets = [0, 128], sizes = [2, 128], strides = [1, 1]} : vector<2x384xf32> to vector<2x128xf32>
    %271 = arith.addf %269, %270 : vector<2x128xf32>
    %272 = arith.negf %271 : vector<2x128xf32>
    %273 = math.exp %272 : vector<2x128xf32>
    %cst_63 = arith.constant 1.000000e+00 : f32
    %274 = vector.broadcast %cst_63 : f32 to vector<2x128xf32>
    %275 = arith.addf %274, %273 : vector<2x128xf32>
    %276 = arith.divf %274, %275 : vector<2x128xf32>
    %277 = vector.extract_strided_slice %260 {offsets = [0, 256], sizes = [2, 128], strides = [1, 1]} : vector<2x384xf32> to vector<2x128xf32>
    %278 = vector.extract_strided_slice %257 {offsets = [0, 256], sizes = [2, 128], strides = [1, 1]} : vector<2x384xf32> to vector<2x128xf32>
    %279 = arith.mulf %268, %278 : vector<2x128xf32>
    %280 = arith.addf %277, %279 : vector<2x128xf32>
    %281 = math.tanh %280 : vector<2x128xf32>
    %cst_64 = arith.constant 1.000000e+00 : f32
    %282 = vector.broadcast %cst_64 : f32 to vector<2x128xf32>
    %283 = arith.subf %282, %276 : vector<2x128xf32>
    %284 = arith.mulf %283, %281 : vector<2x128xf32>
    %285 = arith.mulf %276, %250 : vector<2x128xf32>
    %286 = arith.addf %284, %285 : vector<2x128xf32>
    %287 = arith.index_cast %c7_i32 : i32 to index
    %c0_65 = arith.constant 0 : index
    %c0_66 = arith.constant 0 : index
    %288 = vector.load %arg3[%287, %c0_65, %c0_66] : memref<8x2x128xf32, #tpu.memory_space<vmem>>, vector<1x2x128xf32>
    %289 = vector.shape_cast %288 : vector<1x2x128xf32> to vector<2x128xf32>
    %290 = vector.shape_cast %286 : vector<2x128xf32> to vector<1x2x128xf32>
    tpu.vector_store %arg3[%287, %c0_65, %c0_66], %290 {strides = array<i32>} : memref<8x2x128xf32, #tpu.memory_space<vmem>>, vector<1x2x128xf32>,
    %c8_i32 = arith.constant 8 : i32
    return
  }
}

module attributes {stable_mosaic.version = 11 : i64} {
  func.func @_dense_kernel(%arg0: memref<16x128xf32, #tpu.memory_space<vmem>>, %arg1: memref<128x384xf32, #tpu.memory_space<vmem>>, %arg2: memref<1x384xf32, #tpu.memory_space<vmem>>, %arg3: memref<16x384xf32, #tpu.memory_space<vmem>>) attributes {dimension_semantics = [], scalar_prefetch = 0 : i64, scratch_operands = 0 : i64, tpu.core_type = #tpu.core_type<tc>} {
    %c0 = arith.constant 0 : index
    %c0_0 = arith.constant 0 : index
    %0 = vector.load %arg0[%c0, %c0_0] : memref<16x128xf32, #tpu.memory_space<vmem>>, vector<16x128xf32>
    %c0_1 = arith.constant 0 : index
    %c0_2 = arith.constant 0 : index
    %1 = vector.load %arg1[%c0_1, %c0_2] : memref<128x384xf32, #tpu.memory_space<vmem>>, vector<128x384xf32>
    %cst = arith.constant dense<0.000000e+00> : vector<16x384xf32>
    %2 = tpu.matmul %0, %1, %cst {dimension_numbers = #tpu.dot_dimension_numbers<[1], [0], [0], [1], [0, 0, 1, 1], [], []>} : vector<16x128xf32>, vector<128x384xf32>, vector<16x384xf32> -> vector<16x384xf32>
    %c0_3 = arith.constant 0 : index
    %c0_4 = arith.constant 0 : index
    %3 = vector.load %arg2[%c0_3, %c0_4] : memref<1x384xf32, #tpu.memory_space<vmem>>, vector<1x384xf32>
    %4 = vector.broadcast %3 : vector<1x384xf32> to vector<16x384xf32>
    %5 = arith.addf %2, %4 : vector<16x384xf32>
    %c0_5 = arith.constant 0 : index
    %c0_6 = arith.constant 0 : index
    %6 = vector.load %arg3[%c0_5, %c0_6] : memref<16x384xf32, #tpu.memory_space<vmem>>, vector<16x384xf32>
    tpu.vector_store %arg3[%c0_5, %c0_6], %5 {strides = array<i32>} : memref<16x384xf32, #tpu.memory_space<vmem>>, vector<16x384xf32>,
    return
  }
}

module attributes {stable_mosaic.version = 11 : i64} {
  func.func @_gru_rec_kernel(%arg0: memref<8x2x384xf32, #tpu.memory_space<vmem>>, %arg1: memref<128x384xf32, #tpu.memory_space<vmem>>, %arg2: memref<1x384xf32, #tpu.memory_space<vmem>>, %arg3: memref<8x2x128xf32, #tpu.memory_space<vmem>>) attributes {dimension_semantics = [], scalar_prefetch = 0 : i64, scratch_operands = 0 : i64, tpu.core_type = #tpu.core_type<tc>} {
    %c0 = arith.constant 0 : index
    %c0_0 = arith.constant 0 : index
    %0 = vector.load %arg1[%c0, %c0_0] : memref<128x384xf32, #tpu.memory_space<vmem>>, vector<128x384xf32>
    %c0_1 = arith.constant 0 : index
    %c0_2 = arith.constant 0 : index
    %1 = vector.load %arg2[%c0_1, %c0_2] : memref<1x384xf32, #tpu.memory_space<vmem>>, vector<1x384xf32>
    %cst = arith.constant 0.000000e+00 : f32
    %2 = vector.broadcast %cst : f32 to vector<2x128xf32>
    %c0_i32 = arith.constant 0 : i32
    %cst_3 = arith.constant dense<0.000000e+00> : vector<2x384xf32>
    %3 = tpu.matmul %2, %0, %cst_3 {dimension_numbers = #tpu.dot_dimension_numbers<[1], [0], [0], [1], [0, 0, 1, 1], [], []>} : vector<2x128xf32>, vector<128x384xf32>, vector<2x384xf32> -> vector<2x384xf32>
    %4 = vector.broadcast %1 : vector<1x384xf32> to vector<2x384xf32>
    %5 = arith.addf %3, %4 : vector<2x384xf32>
    %6 = arith.index_cast %c0_i32 : i32 to index
    %c0_4 = arith.constant 0 : index
    %c0_5 = arith.constant 0 : index
    %7 = vector.load %arg0[%6, %c0_4, %c0_5] : memref<8x2x384xf32, #tpu.memory_space<vmem>>, vector<1x2x384xf32>
    %8 = vector.shape_cast %7 : vector<1x2x384xf32> to vector<2x384xf32>
    %9 = vector.extract_strided_slice %8 {offsets = [0, 0], sizes = [2, 128], strides = [1, 1]} : vector<2x384xf32> to vector<2x128xf32>
    %10 = vector.extract_strided_slice %5 {offsets = [0, 0], sizes = [2, 128], strides = [1, 1]} : vector<2x384xf32> to vector<2x128xf32>
    %11 = arith.addf %9, %10 : vector<2x128xf32>
    %12 = arith.negf %11 : vector<2x128xf32>
    %13 = math.exp %12 : vector<2x128xf32>
    %cst_6 = arith.constant 1.000000e+00 : f32
    %14 = vector.broadcast %cst_6 : f32 to vector<2x128xf32>
    %15 = arith.addf %14, %13 : vector<2x128xf32>
    %16 = arith.divf %14, %15 : vector<2x128xf32>
    %17 = vector.extract_strided_slice %8 {offsets = [0, 128], sizes = [2, 128], strides = [1, 1]} : vector<2x384xf32> to vector<2x128xf32>
    %18 = vector.extract_strided_slice %5 {offsets = [0, 128], sizes = [2, 128], strides = [1, 1]} : vector<2x384xf32> to vector<2x128xf32>
    %19 = arith.addf %17, %18 : vector<2x128xf32>
    %20 = arith.negf %19 : vector<2x128xf32>
    %21 = math.exp %20 : vector<2x128xf32>
    %cst_7 = arith.constant 1.000000e+00 : f32
    %22 = vector.broadcast %cst_7 : f32 to vector<2x128xf32>
    %23 = arith.addf %22, %21 : vector<2x128xf32>
    %24 = arith.divf %22, %23 : vector<2x128xf32>
    %25 = vector.extract_strided_slice %8 {offsets = [0, 256], sizes = [2, 128], strides = [1, 1]} : vector<2x384xf32> to vector<2x128xf32>
    %26 = vector.extract_strided_slice %5 {offsets = [0, 256], sizes = [2, 128], strides = [1, 1]} : vector<2x384xf32> to vector<2x128xf32>
    %27 = arith.mulf %16, %26 : vector<2x128xf32>
    %28 = arith.addf %25, %27 : vector<2x128xf32>
    %29 = math.tanh %28 : vector<2x128xf32>
    %cst_8 = arith.constant 1.000000e+00 : f32
    %30 = vector.broadcast %cst_8 : f32 to vector<2x128xf32>
    %31 = arith.subf %30, %24 : vector<2x128xf32>
    %32 = arith.mulf %31, %29 : vector<2x128xf32>
    %33 = arith.mulf %24, %2 : vector<2x128xf32>
    %34 = arith.addf %32, %33 : vector<2x128xf32>
    %35 = arith.index_cast %c0_i32 : i32 to index
    %c0_9 = arith.constant 0 : index
    %c0_10 = arith.constant 0 : index
    %36 = vector.load %arg3[%35, %c0_9, %c0_10] : memref<8x2x128xf32, #tpu.memory_space<vmem>>, vector<1x2x128xf32>
    %37 = vector.shape_cast %36 : vector<1x2x128xf32> to vector<2x128xf32>
    %38 = vector.shape_cast %34 : vector<2x128xf32> to vector<1x2x128xf32>
    tpu.vector_store %arg3[%35, %c0_9, %c0_10], %38 {strides = array<i32>} : memref<8x2x128xf32, #tpu.memory_space<vmem>>, vector<1x2x128xf32>,
    %c1_i32 = arith.constant 1 : i32
    %cst_11 = arith.constant dense<0.000000e+00> : vector<2x384xf32>
    %39 = tpu.matmul %34, %0, %cst_11 {dimension_numbers = #tpu.dot_dimension_numbers<[1], [0], [0], [1], [0, 0, 1, 1], [], []>} : vector<2x128xf32>, vector<128x384xf32>, vector<2x384xf32> -> vector<2x384xf32>
    %40 = vector.broadcast %1 : vector<1x384xf32> to vector<2x384xf32>
    %41 = arith.addf %39, %40 : vector<2x384xf32>
    %42 = arith.index_cast %c1_i32 : i32 to index
    %c0_12 = arith.constant 0 : index
    %c0_13 = arith.constant 0 : index
    %43 = vector.load %arg0[%42, %c0_12, %c0_13] : memref<8x2x384xf32, #tpu.memory_space<vmem>>, vector<1x2x384xf32>
    %44 = vector.shape_cast %43 : vector<1x2x384xf32> to vector<2x384xf32>
    %45 = vector.extract_strided_slice %44 {offsets = [0, 0], sizes = [2, 128], strides = [1, 1]} : vector<2x384xf32> to vector<2x128xf32>
    %46 = vector.extract_strided_slice %41 {offsets = [0, 0], sizes = [2, 128], strides = [1, 1]} : vector<2x384xf32> to vector<2x128xf32>
    %47 = arith.addf %45, %46 : vector<2x128xf32>
    %48 = arith.negf %47 : vector<2x128xf32>
    %49 = math.exp %48 : vector<2x128xf32>
    %cst_14 = arith.constant 1.000000e+00 : f32
    %50 = vector.broadcast %cst_14 : f32 to vector<2x128xf32>
    %51 = arith.addf %50, %49 : vector<2x128xf32>
    %52 = arith.divf %50, %51 : vector<2x128xf32>
    %53 = vector.extract_strided_slice %44 {offsets = [0, 128], sizes = [2, 128], strides = [1, 1]} : vector<2x384xf32> to vector<2x128xf32>
    %54 = vector.extract_strided_slice %41 {offsets = [0, 128], sizes = [2, 128], strides = [1, 1]} : vector<2x384xf32> to vector<2x128xf32>
    %55 = arith.addf %53, %54 : vector<2x128xf32>
    %56 = arith.negf %55 : vector<2x128xf32>
    %57 = math.exp %56 : vector<2x128xf32>
    %cst_15 = arith.constant 1.000000e+00 : f32
    %58 = vector.broadcast %cst_15 : f32 to vector<2x128xf32>
    %59 = arith.addf %58, %57 : vector<2x128xf32>
    %60 = arith.divf %58, %59 : vector<2x128xf32>
    %61 = vector.extract_strided_slice %44 {offsets = [0, 256], sizes = [2, 128], strides = [1, 1]} : vector<2x384xf32> to vector<2x128xf32>
    %62 = vector.extract_strided_slice %41 {offsets = [0, 256], sizes = [2, 128], strides = [1, 1]} : vector<2x384xf32> to vector<2x128xf32>
    %63 = arith.mulf %52, %62 : vector<2x128xf32>
    %64 = arith.addf %61, %63 : vector<2x128xf32>
    %65 = math.tanh %64 : vector<2x128xf32>
    %cst_16 = arith.constant 1.000000e+00 : f32
    %66 = vector.broadcast %cst_16 : f32 to vector<2x128xf32>
    %67 = arith.subf %66, %60 : vector<2x128xf32>
    %68 = arith.mulf %67, %65 : vector<2x128xf32>
    %69 = arith.mulf %60, %34 : vector<2x128xf32>
    %70 = arith.addf %68, %69 : vector<2x128xf32>
    %71 = arith.index_cast %c1_i32 : i32 to index
    %c0_17 = arith.constant 0 : index
    %c0_18 = arith.constant 0 : index
    %72 = vector.load %arg3[%71, %c0_17, %c0_18] : memref<8x2x128xf32, #tpu.memory_space<vmem>>, vector<1x2x128xf32>
    %73 = vector.shape_cast %72 : vector<1x2x128xf32> to vector<2x128xf32>
    %74 = vector.shape_cast %70 : vector<2x128xf32> to vector<1x2x128xf32>
    tpu.vector_store %arg3[%71, %c0_17, %c0_18], %74 {strides = array<i32>} : memref<8x2x128xf32, #tpu.memory_space<vmem>>, vector<1x2x128xf32>,
    %c2_i32 = arith.constant 2 : i32
    %cst_19 = arith.constant dense<0.000000e+00> : vector<2x384xf32>
    %75 = tpu.matmul %70, %0, %cst_19 {dimension_numbers = #tpu.dot_dimension_numbers<[1], [0], [0], [1], [0, 0, 1, 1], [], []>} : vector<2x128xf32>, vector<128x384xf32>, vector<2x384xf32> -> vector<2x384xf32>
    %76 = vector.broadcast %1 : vector<1x384xf32> to vector<2x384xf32>
    %77 = arith.addf %75, %76 : vector<2x384xf32>
    %78 = arith.index_cast %c2_i32 : i32 to index
    %c0_20 = arith.constant 0 : index
    %c0_21 = arith.constant 0 : index
    %79 = vector.load %arg0[%78, %c0_20, %c0_21] : memref<8x2x384xf32, #tpu.memory_space<vmem>>, vector<1x2x384xf32>
    %80 = vector.shape_cast %79 : vector<1x2x384xf32> to vector<2x384xf32>
    %81 = vector.extract_strided_slice %80 {offsets = [0, 0], sizes = [2, 128], strides = [1, 1]} : vector<2x384xf32> to vector<2x128xf32>
    %82 = vector.extract_strided_slice %77 {offsets = [0, 0], sizes = [2, 128], strides = [1, 1]} : vector<2x384xf32> to vector<2x128xf32>
    %83 = arith.addf %81, %82 : vector<2x128xf32>
    %84 = arith.negf %83 : vector<2x128xf32>
    %85 = math.exp %84 : vector<2x128xf32>
    %cst_22 = arith.constant 1.000000e+00 : f32
    %86 = vector.broadcast %cst_22 : f32 to vector<2x128xf32>
    %87 = arith.addf %86, %85 : vector<2x128xf32>
    %88 = arith.divf %86, %87 : vector<2x128xf32>
    %89 = vector.extract_strided_slice %80 {offsets = [0, 128], sizes = [2, 128], strides = [1, 1]} : vector<2x384xf32> to vector<2x128xf32>
    %90 = vector.extract_strided_slice %77 {offsets = [0, 128], sizes = [2, 128], strides = [1, 1]} : vector<2x384xf32> to vector<2x128xf32>
    %91 = arith.addf %89, %90 : vector<2x128xf32>
    %92 = arith.negf %91 : vector<2x128xf32>
    %93 = math.exp %92 : vector<2x128xf32>
    %cst_23 = arith.constant 1.000000e+00 : f32
    %94 = vector.broadcast %cst_23 : f32 to vector<2x128xf32>
    %95 = arith.addf %94, %93 : vector<2x128xf32>
    %96 = arith.divf %94, %95 : vector<2x128xf32>
    %97 = vector.extract_strided_slice %80 {offsets = [0, 256], sizes = [2, 128], strides = [1, 1]} : vector<2x384xf32> to vector<2x128xf32>
    %98 = vector.extract_strided_slice %77 {offsets = [0, 256], sizes = [2, 128], strides = [1, 1]} : vector<2x384xf32> to vector<2x128xf32>
    %99 = arith.mulf %88, %98 : vector<2x128xf32>
    %100 = arith.addf %97, %99 : vector<2x128xf32>
    %101 = math.tanh %100 : vector<2x128xf32>
    %cst_24 = arith.constant 1.000000e+00 : f32
    %102 = vector.broadcast %cst_24 : f32 to vector<2x128xf32>
    %103 = arith.subf %102, %96 : vector<2x128xf32>
    %104 = arith.mulf %103, %101 : vector<2x128xf32>
    %105 = arith.mulf %96, %70 : vector<2x128xf32>
    %106 = arith.addf %104, %105 : vector<2x128xf32>
    %107 = arith.index_cast %c2_i32 : i32 to index
    %c0_25 = arith.constant 0 : index
    %c0_26 = arith.constant 0 : index
    %108 = vector.load %arg3[%107, %c0_25, %c0_26] : memref<8x2x128xf32, #tpu.memory_space<vmem>>, vector<1x2x128xf32>
    %109 = vector.shape_cast %108 : vector<1x2x128xf32> to vector<2x128xf32>
    %110 = vector.shape_cast %106 : vector<2x128xf32> to vector<1x2x128xf32>
    tpu.vector_store %arg3[%107, %c0_25, %c0_26], %110 {strides = array<i32>} : memref<8x2x128xf32, #tpu.memory_space<vmem>>, vector<1x2x128xf32>,
    %c3_i32 = arith.constant 3 : i32
    %cst_27 = arith.constant dense<0.000000e+00> : vector<2x384xf32>
    %111 = tpu.matmul %106, %0, %cst_27 {dimension_numbers = #tpu.dot_dimension_numbers<[1], [0], [0], [1], [0, 0, 1, 1], [], []>} : vector<2x128xf32>, vector<128x384xf32>, vector<2x384xf32> -> vector<2x384xf32>
    %112 = vector.broadcast %1 : vector<1x384xf32> to vector<2x384xf32>
    %113 = arith.addf %111, %112 : vector<2x384xf32>
    %114 = arith.index_cast %c3_i32 : i32 to index
    %c0_28 = arith.constant 0 : index
    %c0_29 = arith.constant 0 : index
    %115 = vector.load %arg0[%114, %c0_28, %c0_29] : memref<8x2x384xf32, #tpu.memory_space<vmem>>, vector<1x2x384xf32>
    %116 = vector.shape_cast %115 : vector<1x2x384xf32> to vector<2x384xf32>
    %117 = vector.extract_strided_slice %116 {offsets = [0, 0], sizes = [2, 128], strides = [1, 1]} : vector<2x384xf32> to vector<2x128xf32>
    %118 = vector.extract_strided_slice %113 {offsets = [0, 0], sizes = [2, 128], strides = [1, 1]} : vector<2x384xf32> to vector<2x128xf32>
    %119 = arith.addf %117, %118 : vector<2x128xf32>
    %120 = arith.negf %119 : vector<2x128xf32>
    %121 = math.exp %120 : vector<2x128xf32>
    %cst_30 = arith.constant 1.000000e+00 : f32
    %122 = vector.broadcast %cst_30 : f32 to vector<2x128xf32>
    %123 = arith.addf %122, %121 : vector<2x128xf32>
    %124 = arith.divf %122, %123 : vector<2x128xf32>
    %125 = vector.extract_strided_slice %116 {offsets = [0, 128], sizes = [2, 128], strides = [1, 1]} : vector<2x384xf32> to vector<2x128xf32>
    %126 = vector.extract_strided_slice %113 {offsets = [0, 128], sizes = [2, 128], strides = [1, 1]} : vector<2x384xf32> to vector<2x128xf32>
    %127 = arith.addf %125, %126 : vector<2x128xf32>
    %128 = arith.negf %127 : vector<2x128xf32>
    %129 = math.exp %128 : vector<2x128xf32>
    %cst_31 = arith.constant 1.000000e+00 : f32
    %130 = vector.broadcast %cst_31 : f32 to vector<2x128xf32>
    %131 = arith.addf %130, %129 : vector<2x128xf32>
    %132 = arith.divf %130, %131 : vector<2x128xf32>
    %133 = vector.extract_strided_slice %116 {offsets = [0, 256], sizes = [2, 128], strides = [1, 1]} : vector<2x384xf32> to vector<2x128xf32>
    %134 = vector.extract_strided_slice %113 {offsets = [0, 256], sizes = [2, 128], strides = [1, 1]} : vector<2x384xf32> to vector<2x128xf32>
    %135 = arith.mulf %124, %134 : vector<2x128xf32>
    %136 = arith.addf %133, %135 : vector<2x128xf32>
    %137 = math.tanh %136 : vector<2x128xf32>
    %cst_32 = arith.constant 1.000000e+00 : f32
    %138 = vector.broadcast %cst_32 : f32 to vector<2x128xf32>
    %139 = arith.subf %138, %132 : vector<2x128xf32>
    %140 = arith.mulf %139, %137 : vector<2x128xf32>
    %141 = arith.mulf %132, %106 : vector<2x128xf32>
    %142 = arith.addf %140, %141 : vector<2x128xf32>
    %143 = arith.index_cast %c3_i32 : i32 to index
    %c0_33 = arith.constant 0 : index
    %c0_34 = arith.constant 0 : index
    %144 = vector.load %arg3[%143, %c0_33, %c0_34] : memref<8x2x128xf32, #tpu.memory_space<vmem>>, vector<1x2x128xf32>
    %145 = vector.shape_cast %144 : vector<1x2x128xf32> to vector<2x128xf32>
    %146 = vector.shape_cast %142 : vector<2x128xf32> to vector<1x2x128xf32>
    tpu.vector_store %arg3[%143, %c0_33, %c0_34], %146 {strides = array<i32>} : memref<8x2x128xf32, #tpu.memory_space<vmem>>, vector<1x2x128xf32>,
    %c4_i32 = arith.constant 4 : i32
    %cst_35 = arith.constant dense<0.000000e+00> : vector<2x384xf32>
    %147 = tpu.matmul %142, %0, %cst_35 {dimension_numbers = #tpu.dot_dimension_numbers<[1], [0], [0], [1], [0, 0, 1, 1], [], []>} : vector<2x128xf32>, vector<128x384xf32>, vector<2x384xf32> -> vector<2x384xf32>
    %148 = vector.broadcast %1 : vector<1x384xf32> to vector<2x384xf32>
    %149 = arith.addf %147, %148 : vector<2x384xf32>
    %150 = arith.index_cast %c4_i32 : i32 to index
    %c0_36 = arith.constant 0 : index
    %c0_37 = arith.constant 0 : index
    %151 = vector.load %arg0[%150, %c0_36, %c0_37] : memref<8x2x384xf32, #tpu.memory_space<vmem>>, vector<1x2x384xf32>
    %152 = vector.shape_cast %151 : vector<1x2x384xf32> to vector<2x384xf32>
    %153 = vector.extract_strided_slice %152 {offsets = [0, 0], sizes = [2, 128], strides = [1, 1]} : vector<2x384xf32> to vector<2x128xf32>
    %154 = vector.extract_strided_slice %149 {offsets = [0, 0], sizes = [2, 128], strides = [1, 1]} : vector<2x384xf32> to vector<2x128xf32>
    %155 = arith.addf %153, %154 : vector<2x128xf32>
    %156 = arith.negf %155 : vector<2x128xf32>
    %157 = math.exp %156 : vector<2x128xf32>
    %cst_38 = arith.constant 1.000000e+00 : f32
    %158 = vector.broadcast %cst_38 : f32 to vector<2x128xf32>
    %159 = arith.addf %158, %157 : vector<2x128xf32>
    %160 = arith.divf %158, %159 : vector<2x128xf32>
    %161 = vector.extract_strided_slice %152 {offsets = [0, 128], sizes = [2, 128], strides = [1, 1]} : vector<2x384xf32> to vector<2x128xf32>
    %162 = vector.extract_strided_slice %149 {offsets = [0, 128], sizes = [2, 128], strides = [1, 1]} : vector<2x384xf32> to vector<2x128xf32>
    %163 = arith.addf %161, %162 : vector<2x128xf32>
    %164 = arith.negf %163 : vector<2x128xf32>
    %165 = math.exp %164 : vector<2x128xf32>
    %cst_39 = arith.constant 1.000000e+00 : f32
    %166 = vector.broadcast %cst_39 : f32 to vector<2x128xf32>
    %167 = arith.addf %166, %165 : vector<2x128xf32>
    %168 = arith.divf %166, %167 : vector<2x128xf32>
    %169 = vector.extract_strided_slice %152 {offsets = [0, 256], sizes = [2, 128], strides = [1, 1]} : vector<2x384xf32> to vector<2x128xf32>
    %170 = vector.extract_strided_slice %149 {offsets = [0, 256], sizes = [2, 128], strides = [1, 1]} : vector<2x384xf32> to vector<2x128xf32>
    %171 = arith.mulf %160, %170 : vector<2x128xf32>
    %172 = arith.addf %169, %171 : vector<2x128xf32>
    %173 = math.tanh %172 : vector<2x128xf32>
    %cst_40 = arith.constant 1.000000e+00 : f32
    %174 = vector.broadcast %cst_40 : f32 to vector<2x128xf32>
    %175 = arith.subf %174, %168 : vector<2x128xf32>
    %176 = arith.mulf %175, %173 : vector<2x128xf32>
    %177 = arith.mulf %168, %142 : vector<2x128xf32>
    %178 = arith.addf %176, %177 : vector<2x128xf32>
    %179 = arith.index_cast %c4_i32 : i32 to index
    %c0_41 = arith.constant 0 : index
    %c0_42 = arith.constant 0 : index
    %180 = vector.load %arg3[%179, %c0_41, %c0_42] : memref<8x2x128xf32, #tpu.memory_space<vmem>>, vector<1x2x128xf32>
    %181 = vector.shape_cast %180 : vector<1x2x128xf32> to vector<2x128xf32>
    %182 = vector.shape_cast %178 : vector<2x128xf32> to vector<1x2x128xf32>
    tpu.vector_store %arg3[%179, %c0_41, %c0_42], %182 {strides = array<i32>} : memref<8x2x128xf32, #tpu.memory_space<vmem>>, vector<1x2x128xf32>,
    %c5_i32 = arith.constant 5 : i32
    %cst_43 = arith.constant dense<0.000000e+00> : vector<2x384xf32>
    %183 = tpu.matmul %178, %0, %cst_43 {dimension_numbers = #tpu.dot_dimension_numbers<[1], [0], [0], [1], [0, 0, 1, 1], [], []>} : vector<2x128xf32>, vector<128x384xf32>, vector<2x384xf32> -> vector<2x384xf32>
    %184 = vector.broadcast %1 : vector<1x384xf32> to vector<2x384xf32>
    %185 = arith.addf %183, %184 : vector<2x384xf32>
    %186 = arith.index_cast %c5_i32 : i32 to index
    %c0_44 = arith.constant 0 : index
    %c0_45 = arith.constant 0 : index
    %187 = vector.load %arg0[%186, %c0_44, %c0_45] : memref<8x2x384xf32, #tpu.memory_space<vmem>>, vector<1x2x384xf32>
    %188 = vector.shape_cast %187 : vector<1x2x384xf32> to vector<2x384xf32>
    %189 = vector.extract_strided_slice %188 {offsets = [0, 0], sizes = [2, 128], strides = [1, 1]} : vector<2x384xf32> to vector<2x128xf32>
    %190 = vector.extract_strided_slice %185 {offsets = [0, 0], sizes = [2, 128], strides = [1, 1]} : vector<2x384xf32> to vector<2x128xf32>
    %191 = arith.addf %189, %190 : vector<2x128xf32>
    %192 = arith.negf %191 : vector<2x128xf32>
    %193 = math.exp %192 : vector<2x128xf32>
    %cst_46 = arith.constant 1.000000e+00 : f32
    %194 = vector.broadcast %cst_46 : f32 to vector<2x128xf32>
    %195 = arith.addf %194, %193 : vector<2x128xf32>
    %196 = arith.divf %194, %195 : vector<2x128xf32>
    %197 = vector.extract_strided_slice %188 {offsets = [0, 128], sizes = [2, 128], strides = [1, 1]} : vector<2x384xf32> to vector<2x128xf32>
    %198 = vector.extract_strided_slice %185 {offsets = [0, 128], sizes = [2, 128], strides = [1, 1]} : vector<2x384xf32> to vector<2x128xf32>
    %199 = arith.addf %197, %198 : vector<2x128xf32>
    %200 = arith.negf %199 : vector<2x128xf32>
    %201 = math.exp %200 : vector<2x128xf32>
    %cst_47 = arith.constant 1.000000e+00 : f32
    %202 = vector.broadcast %cst_47 : f32 to vector<2x128xf32>
    %203 = arith.addf %202, %201 : vector<2x128xf32>
    %204 = arith.divf %202, %203 : vector<2x128xf32>
    %205 = vector.extract_strided_slice %188 {offsets = [0, 256], sizes = [2, 128], strides = [1, 1]} : vector<2x384xf32> to vector<2x128xf32>
    %206 = vector.extract_strided_slice %185 {offsets = [0, 256], sizes = [2, 128], strides = [1, 1]} : vector<2x384xf32> to vector<2x128xf32>
    %207 = arith.mulf %196, %206 : vector<2x128xf32>
    %208 = arith.addf %205, %207 : vector<2x128xf32>
    %209 = math.tanh %208 : vector<2x128xf32>
    %cst_48 = arith.constant 1.000000e+00 : f32
    %210 = vector.broadcast %cst_48 : f32 to vector<2x128xf32>
    %211 = arith.subf %210, %204 : vector<2x128xf32>
    %212 = arith.mulf %211, %209 : vector<2x128xf32>
    %213 = arith.mulf %204, %178 : vector<2x128xf32>
    %214 = arith.addf %212, %213 : vector<2x128xf32>
    %215 = arith.index_cast %c5_i32 : i32 to index
    %c0_49 = arith.constant 0 : index
    %c0_50 = arith.constant 0 : index
    %216 = vector.load %arg3[%215, %c0_49, %c0_50] : memref<8x2x128xf32, #tpu.memory_space<vmem>>, vector<1x2x128xf32>
    %217 = vector.shape_cast %216 : vector<1x2x128xf32> to vector<2x128xf32>
    %218 = vector.shape_cast %214 : vector<2x128xf32> to vector<1x2x128xf32>
    tpu.vector_store %arg3[%215, %c0_49, %c0_50], %218 {strides = array<i32>} : memref<8x2x128xf32, #tpu.memory_space<vmem>>, vector<1x2x128xf32>,
    %c6_i32 = arith.constant 6 : i32
    %cst_51 = arith.constant dense<0.000000e+00> : vector<2x384xf32>
    %219 = tpu.matmul %214, %0, %cst_51 {dimension_numbers = #tpu.dot_dimension_numbers<[1], [0], [0], [1], [0, 0, 1, 1], [], []>} : vector<2x128xf32>, vector<128x384xf32>, vector<2x384xf32> -> vector<2x384xf32>
    %220 = vector.broadcast %1 : vector<1x384xf32> to vector<2x384xf32>
    %221 = arith.addf %219, %220 : vector<2x384xf32>
    %222 = arith.index_cast %c6_i32 : i32 to index
    %c0_52 = arith.constant 0 : index
    %c0_53 = arith.constant 0 : index
    %223 = vector.load %arg0[%222, %c0_52, %c0_53] : memref<8x2x384xf32, #tpu.memory_space<vmem>>, vector<1x2x384xf32>
    %224 = vector.shape_cast %223 : vector<1x2x384xf32> to vector<2x384xf32>
    %225 = vector.extract_strided_slice %224 {offsets = [0, 0], sizes = [2, 128], strides = [1, 1]} : vector<2x384xf32> to vector<2x128xf32>
    %226 = vector.extract_strided_slice %221 {offsets = [0, 0], sizes = [2, 128], strides = [1, 1]} : vector<2x384xf32> to vector<2x128xf32>
    %227 = arith.addf %225, %226 : vector<2x128xf32>
    %228 = arith.negf %227 : vector<2x128xf32>
    %229 = math.exp %228 : vector<2x128xf32>
    %cst_54 = arith.constant 1.000000e+00 : f32
    %230 = vector.broadcast %cst_54 : f32 to vector<2x128xf32>
    %231 = arith.addf %230, %229 : vector<2x128xf32>
    %232 = arith.divf %230, %231 : vector<2x128xf32>
    %233 = vector.extract_strided_slice %224 {offsets = [0, 128], sizes = [2, 128], strides = [1, 1]} : vector<2x384xf32> to vector<2x128xf32>
    %234 = vector.extract_strided_slice %221 {offsets = [0, 128], sizes = [2, 128], strides = [1, 1]} : vector<2x384xf32> to vector<2x128xf32>
    %235 = arith.addf %233, %234 : vector<2x128xf32>
    %236 = arith.negf %235 : vector<2x128xf32>
    %237 = math.exp %236 : vector<2x128xf32>
    %cst_55 = arith.constant 1.000000e+00 : f32
    %238 = vector.broadcast %cst_55 : f32 to vector<2x128xf32>
    %239 = arith.addf %238, %237 : vector<2x128xf32>
    %240 = arith.divf %238, %239 : vector<2x128xf32>
    %241 = vector.extract_strided_slice %224 {offsets = [0, 256], sizes = [2, 128], strides = [1, 1]} : vector<2x384xf32> to vector<2x128xf32>
    %242 = vector.extract_strided_slice %221 {offsets = [0, 256], sizes = [2, 128], strides = [1, 1]} : vector<2x384xf32> to vector<2x128xf32>
    %243 = arith.mulf %232, %242 : vector<2x128xf32>
    %244 = arith.addf %241, %243 : vector<2x128xf32>
    %245 = math.tanh %244 : vector<2x128xf32>
    %cst_56 = arith.constant 1.000000e+00 : f32
    %246 = vector.broadcast %cst_56 : f32 to vector<2x128xf32>
    %247 = arith.subf %246, %240 : vector<2x128xf32>
    %248 = arith.mulf %247, %245 : vector<2x128xf32>
    %249 = arith.mulf %240, %214 : vector<2x128xf32>
    %250 = arith.addf %248, %249 : vector<2x128xf32>
    %251 = arith.index_cast %c6_i32 : i32 to index
    %c0_57 = arith.constant 0 : index
    %c0_58 = arith.constant 0 : index
    %252 = vector.load %arg3[%251, %c0_57, %c0_58] : memref<8x2x128xf32, #tpu.memory_space<vmem>>, vector<1x2x128xf32>
    %253 = vector.shape_cast %252 : vector<1x2x128xf32> to vector<2x128xf32>
    %254 = vector.shape_cast %250 : vector<2x128xf32> to vector<1x2x128xf32>
    tpu.vector_store %arg3[%251, %c0_57, %c0_58], %254 {strides = array<i32>} : memref<8x2x128xf32, #tpu.memory_space<vmem>>, vector<1x2x128xf32>,
    %c7_i32 = arith.constant 7 : i32
    %cst_59 = arith.constant dense<0.000000e+00> : vector<2x384xf32>
    %255 = tpu.matmul %250, %0, %cst_59 {dimension_numbers = #tpu.dot_dimension_numbers<[1], [0], [0], [1], [0, 0, 1, 1], [], []>} : vector<2x128xf32>, vector<128x384xf32>, vector<2x384xf32> -> vector<2x384xf32>
    %256 = vector.broadcast %1 : vector<1x384xf32> to vector<2x384xf32>
    %257 = arith.addf %255, %256 : vector<2x384xf32>
    %258 = arith.index_cast %c7_i32 : i32 to index
    %c0_60 = arith.constant 0 : index
    %c0_61 = arith.constant 0 : index
    %259 = vector.load %arg0[%258, %c0_60, %c0_61] : memref<8x2x384xf32, #tpu.memory_space<vmem>>, vector<1x2x384xf32>
    %260 = vector.shape_cast %259 : vector<1x2x384xf32> to vector<2x384xf32>
    %261 = vector.extract_strided_slice %260 {offsets = [0, 0], sizes = [2, 128], strides = [1, 1]} : vector<2x384xf32> to vector<2x128xf32>
    %262 = vector.extract_strided_slice %257 {offsets = [0, 0], sizes = [2, 128], strides = [1, 1]} : vector<2x384xf32> to vector<2x128xf32>
    %263 = arith.addf %261, %262 : vector<2x128xf32>
    %264 = arith.negf %263 : vector<2x128xf32>
    %265 = math.exp %264 : vector<2x128xf32>
    %cst_62 = arith.constant 1.000000e+00 : f32
    %266 = vector.broadcast %cst_62 : f32 to vector<2x128xf32>
    %267 = arith.addf %266, %265 : vector<2x128xf32>
    %268 = arith.divf %266, %267 : vector<2x128xf32>
    %269 = vector.extract_strided_slice %260 {offsets = [0, 128], sizes = [2, 128], strides = [1, 1]} : vector<2x384xf32> to vector<2x128xf32>
    %270 = vector.extract_strided_slice %257 {offsets = [0, 128], sizes = [2, 128], strides = [1, 1]} : vector<2x384xf32> to vector<2x128xf32>
    %271 = arith.addf %269, %270 : vector<2x128xf32>
    %272 = arith.negf %271 : vector<2x128xf32>
    %273 = math.exp %272 : vector<2x128xf32>
    %cst_63 = arith.constant 1.000000e+00 : f32
    %274 = vector.broadcast %cst_63 : f32 to vector<2x128xf32>
    %275 = arith.addf %274, %273 : vector<2x128xf32>
    %276 = arith.divf %274, %275 : vector<2x128xf32>
    %277 = vector.extract_strided_slice %260 {offsets = [0, 256], sizes = [2, 128], strides = [1, 1]} : vector<2x384xf32> to vector<2x128xf32>
    %278 = vector.extract_strided_slice %257 {offsets = [0, 256], sizes = [2, 128], strides = [1, 1]} : vector<2x384xf32> to vector<2x128xf32>
    %279 = arith.mulf %268, %278 : vector<2x128xf32>
    %280 = arith.addf %277, %279 : vector<2x128xf32>
    %281 = math.tanh %280 : vector<2x128xf32>
    %cst_64 = arith.constant 1.000000e+00 : f32
    %282 = vector.broadcast %cst_64 : f32 to vector<2x128xf32>
    %283 = arith.subf %282, %276 : vector<2x128xf32>
    %284 = arith.mulf %283, %281 : vector<2x128xf32>
    %285 = arith.mulf %276, %250 : vector<2x128xf32>
    %286 = arith.addf %284, %285 : vector<2x128xf32>
    %287 = arith.index_cast %c7_i32 : i32 to index
    %c0_65 = arith.constant 0 : index
    %c0_66 = arith.constant 0 : index
    %288 = vector.load %arg3[%287, %c0_65, %c0_66] : memref<8x2x128xf32, #tpu.memory_space<vmem>>, vector<1x2x128xf32>
    %289 = vector.shape_cast %288 : vector<1x2x128xf32> to vector<2x128xf32>
    %290 = vector.shape_cast %286 : vector<2x128xf32> to vector<1x2x128xf32>
    tpu.vector_store %arg3[%287, %c0_65, %c0_66], %290 {strides = array<i32>} : memref<8x2x128xf32, #tpu.memory_space<vmem>>, vector<1x2x128xf32>,
    %c8_i32 = arith.constant 8 : i32
    return
  }
}

module attributes {stable_mosaic.version = 11 : i64} {
  func.func @_head_kernel(%arg0: memref<2x128xf32, #tpu.memory_space<vmem>>, %arg1: memref<128x128xf32, #tpu.memory_space<vmem>>, %arg2: memref<1x128xf32, #tpu.memory_space<vmem>>, %arg3: memref<128x4xf32, #tpu.memory_space<vmem>>, %arg4: memref<1x4xf32, #tpu.memory_space<vmem>>, %arg5: memref<2x4xf32, #tpu.memory_space<vmem>>) attributes {dimension_semantics = [], scalar_prefetch = 0 : i64, scratch_operands = 0 : i64, tpu.core_type = #tpu.core_type<tc>} {
    %c0 = arith.constant 0 : index
    %c0_0 = arith.constant 0 : index
    %0 = vector.load %arg0[%c0, %c0_0] : memref<2x128xf32, #tpu.memory_space<vmem>>, vector<2x128xf32>
    %c0_1 = arith.constant 0 : index
    %c0_2 = arith.constant 0 : index
    %1 = vector.load %arg1[%c0_1, %c0_2] : memref<128x128xf32, #tpu.memory_space<vmem>>, vector<128x128xf32>
    %cst = arith.constant dense<0.000000e+00> : vector<2x128xf32>
    %2 = tpu.matmul %0, %1, %cst {dimension_numbers = #tpu.dot_dimension_numbers<[1], [0], [0], [1], [0, 0, 1, 1], [], []>} : vector<2x128xf32>, vector<128x128xf32>, vector<2x128xf32> -> vector<2x128xf32>
    %c0_3 = arith.constant 0 : index
    %c0_4 = arith.constant 0 : index
    %3 = vector.load %arg2[%c0_3, %c0_4] : memref<1x128xf32, #tpu.memory_space<vmem>>, vector<1x128xf32>
    %4 = vector.broadcast %3 : vector<1x128xf32> to vector<2x128xf32>
    %5 = arith.addf %2, %4 : vector<2x128xf32>
    %cst_5 = arith.constant 0.000000e+00 : f32
    %6 = vector.broadcast %cst_5 : f32 to vector<2x128xf32>
    %7 = arith.maximumf %5, %6 : vector<2x128xf32>
    %c0_6 = arith.constant 0 : index
    %c0_7 = arith.constant 0 : index
    %8 = vector.load %arg3[%c0_6, %c0_7] : memref<128x4xf32, #tpu.memory_space<vmem>>, vector<128x4xf32>
    %cst_8 = arith.constant dense<0.000000e+00> : vector<2x4xf32>
    %9 = tpu.matmul %7, %8, %cst_8 {dimension_numbers = #tpu.dot_dimension_numbers<[1], [0], [0], [1], [0, 0, 1, 1], [], []>} : vector<2x128xf32>, vector<128x4xf32>, vector<2x4xf32> -> vector<2x4xf32>
    %c0_9 = arith.constant 0 : index
    %c0_10 = arith.constant 0 : index
    %10 = vector.load %arg4[%c0_9, %c0_10] : memref<1x4xf32, #tpu.memory_space<vmem>>, vector<1x4xf32>
    %11 = vector.broadcast %10 : vector<1x4xf32> to vector<2x4xf32>
    %12 = arith.addf %9, %11 : vector<2x4xf32>
    %c0_11 = arith.constant 0 : index
    %c0_12 = arith.constant 0 : index
    %13 = vector.load %arg5[%c0_11, %c0_12] : memref<2x4xf32, #tpu.memory_space<vmem>>, vector<2x4xf32>
    tpu.vector_store %arg5[%c0_11, %c0_12], %12 {strides = array<i32>} : memref<2x4xf32, #tpu.memory_space<vmem>>, vector<2x4xf32>,
    return
  }
}

</mosaic_0001>

<bundles_post_ra>
// kernel: gru_forward.5
= control target key start
LH: loop header
LB: loop body
LE: loop exit
PB: predicated region body
PF: predicated region fallthrough
CT: control target
= control target key end

     0   :  { %8 = vsyncpa [#allocation3], 0  ;;  %s355_s0 = inlined_call_operand.vmem [shape: f32[16,16], index: 0, kind: input, shape index: {}]   ;;  %s356_s1 = inlined_call_operand.hbm [shape: f32[16,384], index: 1, kind: input, shape index: {}]   ;;  %s357_s2 = inlined_call_operand.hbm [shape: f32[1,384], index: 2, kind: input, shape index: {}]   ;;  %s358_s3 = inlined_call_operand.vmem [shape: f32[16,384], index: 3, kind: output, shape index: {}]  }
   0x1   :  { %9 = vsyncpa [#allocation5], 0  ;;  %s300_s12 = smov [#allocation2]  }
   0x2   :  { %s17_s13 = sshll.u32 %s300_s12, 4  ;;  %s18_s13 = int_to_ptr.vmem [resolvable:$true] %s17_s13 }
   0x3   :  { %s264_s14 = scalar_lea.vmem %s18_s13, 768  ;;  %p269_p1 = scmp.lt.s32.totalorder %s18_s13, %s18_s13 }
   0x4   :  { %p265_p0 = scmp.ne.s32.totalorder %s18_s13, %s264_s14  ;;  %p270_p2 = scmp.lt.s32.totalorder %s264_s14, %s264_s14 }
   0x6   :  { %p271_p3 = por %p270_p2, %p269_p1 }
   0x8   :  { %p272_p4 = pnand %p271_p3, %p265_p0 }
   0xa   :  { %275 = shalt.err (!%p272_p4)
}
   0xb   :  { %s301_s15 = smov 384   ;;  %s302_s16 = smov 24  }
   0xc   :  { %23 = dma.hbm_to_vmem [thread:$0]  %s356_s1, 768, %s18_s13, [#allocation3], %s301_s15, %s301_s15, %s302_s16  }
   0xd   :  { %s303_s19 = smov [#allocation4]  }
   0xe   :  { %s30_s20 = sshll.u32 %s303_s19, 4  ;;  %s31_s20 = int_to_ptr.vmem [resolvable:$true] %s30_s20 }
   0xf   :  { %s284_s21 = scalar_lea.vmem %s31_s20, 48  ;;  %s288_s22 = scalar_lea.vmem %s31_s20, 64 }
  0x10   :  { %p285_p5 = scmp.ne.s32.totalorder %s31_s20, %s284_s21  ;;  %p289_p6 = scmp.lt.s32.totalorder %s31_s20, %s31_s20 }
  0x11   :  { %p290_p7 = scmp.lt.s32.totalorder %s288_s22, %s284_s21 }
  0x13   :  { %p291_p8 = por %p290_p7, %p289_p6 }
  0x15   :  { %p292_p9 = pnand %p291_p8, %p285_p5 }
  0x17   :  { %295 = shalt.err (!%p292_p9)
}
  0x18   :  { %33 = dma.hbm_to_vmem [thread:$0]  %s357_s2, 48, %s31_s20, [#allocation5]  }
  0x19   :  { %296 = dma.done.wait [#allocation3], 768  }
  0x1a   :  { %297 = vsyncadd [#allocation3], 4294966528 }
  0x1b   :  { %298 = dma.done.wait [#allocation5], 48  }
  0x1c   :  { %299 = vsyncadd [#allocation5], 4294967248  ;;  %v304_v0 = vmov 0.0   ;;  %v46_v1 = vld [vmem:[#allocation2 + $0x20] sm:$0xff]  ;;  %v45_v2 = vld [vmem:[#allocation2 + $0x18] sm:$0xff]  ;;  %vm65_vm0 = vcmask 130048   ;;  %v50_v9 = vlaneseq }
  0x1d   :  { %136 = vmatprep.mubr.f32.mxu0 %v304_v0  ;;  %v43_v3 = vld [vmem:[#allocation2 + $0x8] sm:$0xff]  ;;  %100 = vmatprep.subr.mxu0 %v46_v1  ;;  %v42_v5 = vld [vmem:[#allocation2] sm:$0xff]  ;;  %v44_v7 = vld [vmem:[#allocation2 + $0x10] sm:$0xff] }
  0x1e   :  { %v47_v4 = vld [vmem:[#allocation2 + $0x28] sm:$0xff]  ;;  %101 = vmatpush1.msra.mxu0 %v45_v2  ;;  %v40_v6 = vld [vmem:[%s355_s0] sm:$0xff]  ;;  %v51_v10 = vshrl.u32 %v50_v9, 7  ;;  %v48_v12 = vld [vmem:[#allocation4] sm:$0x7] }
  0x1f   :  { %244 = vmatprep.subr.mxu1 %v47_v4  ;;  %102 = vmatprep.subr.mxu0 %v43_v3  ;;  %v41_v8 = vld [vmem:[%s355_s0 + $0x8] sm:$0xff] }
  0x20   :  { %245 = vmatpush3.msra.mxu1 %v47_v4  ;;  %103 = vmatpush1.msra.mxu0 %v42_v5  ;;  %v52_v11 = vsub.s32 0, %v51_v10  ;;  %v56_v13 = vsub.s32 1, %v51_v10  ;;  %v60_v14 = vsub.s32 2, %v51_v10 }
  0x21   :  { %246 = vmatprep.subr.mxu1 %v44_v7  ;;  %236 = vmatmul.mubr.msk.f32.vlgmr.msra.gmra.mxu0 %vm65_vm0, %v40_v6 }
  0x22   :  { %247 = vmatpush3.msra.mxu1 %v44_v7  ;;  %248 = vmatprep.mubr.msk.f32.mxu1 %vm65_vm0, %v40_v6  ;;  %v53_v15 = vrot.slane %v48_v12, %v52_v11  ;;  %v57_v16 = vrot.slane %v48_v12, %v56_v13  ;;  %v61_v17 = vrot.slane %v48_v12, %v60_v14 }
  0x23   :  { %142 = vmatprep.mubr.f32.mxu0 %v304_v0  ;;  %249 = vmatmul.mubr.msk.f32.vlgmr.msra.gmra.mxu1 %vm65_vm0, %v41_v8 }
  0x25   :  { %237 = vmatmul.mubr.msk.f32.gmra.mxu0 %vm65_vm0, %v41_v8 }
  0xe1   :  { %v138_v18 = vpop.f32.mrf.mxu0 }
  0xe2   :  { %v139_v19 = vadd.f32 %v138_v18, %v53_v15 }
  0xe3   :  { %v140_v20 = vpop.f32.mrf.mxu0  ;;  %v250_v21 = vpop.f32.mrf.mxu1 }
  0xe4   :  { %224 = vst [vmem:[%s358_s3] sm:$0xff] %v139_v19  ;;  %v141_v22 = vadd.f32 %v140_v20, %v57_v16  ;;  %v221_v23 = vadd.f32 %v250_v21, %v61_v17 }
  0xe5   :  { %v144_v24 = vpop.f32.mrf.mxu0  ;;  %v215_v25 = vpop.f32.mrf.mxu1 }
  0xe6   :  { %225 = vst [vmem:[%s358_s3 + $0x8] sm:$0xff] %v141_v22  ;;  %229 = vst [vmem:[%s358_s3 + $0x28] sm:$0xff] %v221_v23  ;;  %v145_v26 = vadd.f32 %v144_v24, %v53_v15  ;;  %v216_v27 = vadd.f32 %v215_v25, %v61_v17 }
  0xe7   :  { %v146_v28 = vpop.f32.mrf.mxu0 }
  0xe8   :  { %227 = vst [vmem:[%s358_s3 + $0x18] sm:$0xff] %v145_v26  ;;  %226 = vst [vmem:[%s358_s3 + $0x10] sm:$0xff] %v216_v27  ;;  %v147_v29 = vadd.f32 %v146_v28, %v57_v16 }
  0xea   :  { %228 = vst [vmem:[%s358_s3 + $0x20] sm:$0xff] %v147_v29 }
  0xeb   :  { %234 = vsyncpa [#allocation3], 1 }
  0xec   :  { %235 = vsyncpa [#allocation5], 1 }

// kernel: gru_forward.7
= control target key start
LH: loop header
LB: loop body
LE: loop exit
PB: predicated region body
PF: predicated region fallthrough
CT: control target
= control target key end

     0   :  { %v297_v3 = vmov 0.0   ;;  %v66_v51 = vlaneseq  ;;  %s491_s1 = inlined_call_operand.vmem [shape: f32[128,384], index: 1, kind: input, shape index: {}]   ;;  %s492_s0 = inlined_call_operand.vmem [shape: f32[16,128], index: 0, kind: input, shape index: {}]   ;;  %s493_s2 = inlined_call_operand.vmem [shape: f32[1,384], index: 2, kind: input, shape index: {}]   ;;  %s494_s3 = inlined_call_operand.vmem [shape: f32[16,384], index: 3, kind: output, shape index: {}]  }
   0x1   :  { %v62_v0 = vld [vmem:[%s491_s1 + $0x170] sm:$0xff]  ;;  %v61_v1 = vld [vmem:[%s491_s1 + $0x168] sm:$0xff]  ;;  %v59_v2 = vld [vmem:[%s491_s1 + $0x158] sm:$0xff]  ;;  %145 = vmatprep.mubr.f32.mxu0 %v297_v3 }
   0x2   :  { %81 = vmatprep.subr.mxu0 %v62_v0  ;;  %v63_v4 = vld [vmem:[%s491_s1 + $0x178] sm:$0xff]  ;;  %v58_v5 = vld [vmem:[%s491_s1 + $0x150] sm:$0xff]  ;;  %v56_v6 = vld [vmem:[%s491_s1 + $0x140] sm:$0xff]  ;;  %v67_v52 = vshrl.u32 %v66_v51, 7 }
   0x3   :  { %82 = vmatpush1.msra.mxu0 %v61_v1  ;;  %261 = vmatprep.subr.mxu1 %v63_v4  ;;  %v60_v7 = vld [vmem:[%s491_s1 + $0x160] sm:$0xff]  ;;  %v55_v8 = vld [vmem:[%s491_s1 + $0x138] sm:$0xff]  ;;  %v57_v9 = vld [vmem:[%s491_s1 + $0x148] sm:$0xff] }
   0x4   :  { %83 = vmatprep.subr.mxu0 %v59_v2  ;;  %262 = vmatpush3.msra.mxu1 %v63_v4  ;;  %v53_v10 = vld [vmem:[%s491_s1 + $0x128] sm:$0xff]  ;;  %v52_v11 = vld [vmem:[%s491_s1 + $0x120] sm:$0xff]  ;;  %v54_v12 = vld [vmem:[%s491_s1 + $0x130] sm:$0xff]  ;;  %v68_v53 = vsub.s32 0, %v67_v52  ;;  %v72_v55 = vsub.s32 1, %v67_v52  ;;  %v76_v56 = vsub.s32 2, %v67_v52 }
   0x5   :  { %84 = vmatpush1.msra.mxu0 %v58_v5  ;;  %263 = vmatprep.subr.mxu1 %v60_v7  ;;  %v50_v13 = vld [vmem:[%s491_s1 + $0x110] sm:$0xff]  ;;  %v49_v14 = vld [vmem:[%s491_s1 + $0x108] sm:$0xff]  ;;  %v51_v15 = vld [vmem:[%s491_s1 + $0x118] sm:$0xff] }
   0x6   :  { %85 = vmatprep.subr.mxu0 %v56_v6  ;;  %264 = vmatpush3.msra.mxu1 %v60_v7  ;;  %v47_v16 = vld [vmem:[%s491_s1 + $0xf8] sm:$0xff]  ;;  %v46_v17 = vld [vmem:[%s491_s1 + $0xf0] sm:$0xff]  ;;  %v48_v18 = vld [vmem:[%s491_s1 + $0x100] sm:$0xff] }
   0x7   :  { %86 = vmatpush1.msra.mxu0 %v55_v8  ;;  %265 = vmatprep.subr.mxu1 %v57_v9  ;;  %v44_v19 = vld [vmem:[%s491_s1 + $0xe0] sm:$0xff]  ;;  %v43_v20 = vld [vmem:[%s491_s1 + $0xd8] sm:$0xff]  ;;  %v45_v21 = vld [vmem:[%s491_s1 + $0xe8] sm:$0xff] }
   0x8   :  { %87 = vmatprep.subr.mxu0 %v53_v10  ;;  %266 = vmatpush3.msra.mxu1 %v57_v9  ;;  %v41_v22 = vld [vmem:[%s491_s1 + $0xc8] sm:$0xff]  ;;  %v40_v23 = vld [vmem:[%s491_s1 + $0xc0] sm:$0xff]  ;;  %v42_v24 = vld [vmem:[%s491_s1 + $0xd0] sm:$0xff] }
   0x9   :  { %88 = vmatpush1.msra.mxu0 %v52_v11  ;;  %267 = vmatprep.subr.mxu1 %v54_v12  ;;  %v38_v25 = vld [vmem:[%s491_s1 + $0xb0] sm:$0xff]  ;;  %v37_v26 = vld [vmem:[%s491_s1 + $0xa8] sm:$0xff]  ;;  %v39_v27 = vld [vmem:[%s491_s1 + $0xb8] sm:$0xff] }
   0xa   :  { %89 = vmatprep.subr.mxu0 %v50_v13  ;;  %268 = vmatpush3.msra.mxu1 %v54_v12  ;;  %v35_v28 = vld [vmem:[%s491_s1 + $0x98] sm:$0xff]  ;;  %v34_v29 = vld [vmem:[%s491_s1 + $0x90] sm:$0xff]  ;;  %v36_v30 = vld [vmem:[%s491_s1 + $0xa0] sm:$0xff] }
   0xb   :  { %90 = vmatpush1.msra.mxu0 %v49_v14  ;;  %269 = vmatprep.subr.mxu1 %v51_v15  ;;  %v32_v31 = vld [vmem:[%s491_s1 + $0x80] sm:$0xff]  ;;  %v31_v32 = vld [vmem:[%s491_s1 + $0x78] sm:$0xff]  ;;  %v33_v33 = vld [vmem:[%s491_s1 + $0x88] sm:$0xff] }
   0xc   :  { %91 = vmatprep.subr.mxu0 %v47_v16  ;;  %270 = vmatpush3.msra.mxu1 %v51_v15  ;;  %v29_v34 = vld [vmem:[%s491_s1 + $0x68] sm:$0xff]  ;;  %v28_v35 = vld [vmem:[%s491_s1 + $0x60] sm:$0xff]  ;;  %v30_v36 = vld [vmem:[%s491_s1 + $0x70] sm:$0xff] }
   0xd   :  { %92 = vmatpush1.msra.mxu0 %v46_v17  ;;  %271 = vmatprep.subr.mxu1 %v48_v18  ;;  %v26_v37 = vld [vmem:[%s491_s1 + $0x50] sm:$0xff]  ;;  %v25_v38 = vld [vmem:[%s491_s1 + $0x48] sm:$0xff]  ;;  %v27_v39 = vld [vmem:[%s491_s1 + $0x58] sm:$0xff] }
   0xe   :  { %93 = vmatprep.subr.mxu0 %v44_v19  ;;  %272 = vmatpush3.msra.mxu1 %v48_v18  ;;  %v23_v40 = vld [vmem:[%s491_s1 + $0x38] sm:$0xff]  ;;  %v22_v41 = vld [vmem:[%s491_s1 + $0x30] sm:$0xff]  ;;  %v24_v42 = vld [vmem:[%s491_s1 + $0x40] sm:$0xff] }
   0xf   :  { %94 = vmatpush1.msra.mxu0 %v43_v20  ;;  %273 = vmatprep.subr.mxu1 %v45_v21  ;;  %v20_v43 = vld [vmem:[%s491_s1 + $0x20] sm:$0xff]  ;;  %v19_v44 = vld [vmem:[%s491_s1 + $0x18] sm:$0xff]  ;;  %v21_v45 = vld [vmem:[%s491_s1 + $0x28] sm:$0xff] }
  0x10   :  { %95 = vmatprep.subr.mxu0 %v41_v22  ;;  %274 = vmatpush3.msra.mxu1 %v45_v21  ;;  %v17_v46 = vld [vmem:[%s491_s1 + $0x8] sm:$0xff]  ;;  %v16_v47 = vld [vmem:[%s491_s1] sm:$0xff]  ;;  %v18_v48 = vld [vmem:[%s491_s1 + $0x10] sm:$0xff] }
  0x11   :  { %96 = vmatpush1.msra.mxu0 %v40_v23  ;;  %275 = vmatprep.subr.mxu1 %v42_v24  ;;  %v14_v49 = vld [vmem:[%s492_s0] sm:$0xff]  ;;  %v15_v50 = vld [vmem:[%s492_s0 + $0x8] sm:$0xff] }
  0x12   :  { %97 = vmatprep.subr.mxu0 %v38_v25  ;;  %276 = vmatpush3.msra.mxu1 %v42_v24  ;;  %v64_v54 = vld [vmem:[%s493_s2] sm:$0x7] }
  0x13   :  { %98 = vmatpush1.msra.mxu0 %v37_v26  ;;  %277 = vmatprep.subr.mxu1 %v39_v27  ;;  %v69_v57 = vrot.slane %v64_v54, %v68_v53  ;;  %v73_v58 = vrot.slane %v64_v54, %v72_v55  ;;  %v77_v59 = vrot.slane %v64_v54, %v76_v56 }
  0x14   :  { %99 = vmatprep.subr.mxu0 %v35_v28  ;;  %278 = vmatpush3.msra.mxu1 %v39_v27 }
  0x15   :  { %100 = vmatpush1.msra.mxu0 %v34_v29  ;;  %279 = vmatprep.subr.mxu1 %v36_v30 }
  0x16   :  { %101 = vmatprep.subr.mxu0 %v32_v31  ;;  %280 = vmatpush3.msra.mxu1 %v36_v30 }
  0x17   :  { %102 = vmatpush1.msra.mxu0 %v31_v32  ;;  %281 = vmatprep.subr.mxu1 %v33_v33 }
  0x18   :  { %103 = vmatprep.subr.mxu0 %v29_v34  ;;  %282 = vmatpush3.msra.mxu1 %v33_v33 }
  0x19   :  { %104 = vmatpush1.msra.mxu0 %v28_v35  ;;  %283 = vmatprep.subr.mxu1 %v30_v36 }
  0x1a   :  { %105 = vmatprep.subr.mxu0 %v26_v37  ;;  %284 = vmatpush3.msra.mxu1 %v30_v36 }
  0x1b   :  { %106 = vmatpush1.msra.mxu0 %v25_v38  ;;  %285 = vmatprep.subr.mxu1 %v27_v39 }
  0x1c   :  { %107 = vmatprep.subr.mxu0 %v23_v40  ;;  %286 = vmatpush3.msra.mxu1 %v27_v39 }
  0x1d   :  { %108 = vmatpush1.msra.mxu0 %v22_v41  ;;  %287 = vmatprep.subr.mxu1 %v24_v42 }
  0x1e   :  { %109 = vmatprep.subr.mxu0 %v20_v43  ;;  %288 = vmatpush3.msra.mxu1 %v24_v42 }
  0x1f   :  { %110 = vmatpush1.msra.mxu0 %v19_v44  ;;  %289 = vmatprep.subr.mxu1 %v21_v45 }
  0x20   :  { %111 = vmatprep.subr.mxu0 %v17_v46  ;;  %290 = vmatpush3.msra.mxu1 %v21_v45 }
  0x21   :  { %112 = vmatpush1.msra.mxu0 %v16_v47  ;;  %291 = vmatprep.subr.mxu1 %v18_v48 }
  0x22   :  { %146 = vmatmul.mubr.f32.vlgmr.msra.gmra.mxu0 %v14_v49  ;;  %292 = vmatpush3.msra.mxu1 %v18_v48 }
  0x23   :  { %293 = vmatprep.mubr.f32.mxu1 %v14_v49  ;;  %151 = vmatprep.mubr.f32.mxu0 %v297_v3 }
  0x24   :  { %294 = vmatmul.mubr.f32.vlgmr.msra.gmra.mxu1 %v15_v50 }
  0x26   :  { %152 = vmatmul.mubr.f32.gmra.mxu0 %v15_v50 }
  0xe2   :  { %v147_v60 = vpop.f32.mrf.mxu0 }
  0xe3   :  { %v148_v61 = vadd.f32 %v147_v60, %v69_v57 }
  0xe4   :  { %v149_v62 = vpop.f32.mrf.mxu0  ;;  %v295_v63 = vpop.f32.mrf.mxu1 }
  0xe5   :  { %233 = vst [vmem:[%s494_s3] sm:$0xff] %v148_v61  ;;  %v150_v0 = vadd.f32 %v149_v62, %v73_v58  ;;  %v230_v1 = vadd.f32 %v295_v63, %v77_v59 }
  0xe6   :  { %v153_v2 = vpop.f32.mrf.mxu0  ;;  %v224_v3 = vpop.f32.mrf.mxu1 }
  0xe7   :  { %234 = vst [vmem:[%s494_s3 + $0x8] sm:$0xff] %v150_v0  ;;  %238 = vst [vmem:[%s494_s3 + $0x28] sm:$0xff] %v230_v1  ;;  %v154_v4 = vadd.f32 %v153_v2, %v69_v57  ;;  %v225_v5 = vadd.f32 %v224_v3, %v77_v59 }
  0xe8   :  { %v155_v6 = vpop.f32.mrf.mxu0 }
  0xe9   :  { %236 = vst [vmem:[%s494_s3 + $0x18] sm:$0xff] %v154_v4  ;;  %235 = vst [vmem:[%s494_s3 + $0x10] sm:$0xff] %v225_v5  ;;  %v156_v7 = vadd.f32 %v155_v6, %v73_v58 }
  0xeb   :  { %237 = vst [vmem:[%s494_s3 + $0x20] sm:$0xff] %v156_v7 }

// kernel: gru_forward.6
= control target key start
LH: loop header
LB: loop body
LE: loop exit
PB: predicated region body
PF: predicated region fallthrough
CT: control target
= control target key end

     0   :  { %8 = vsyncpa [#allocation3], 0  ;;  %s2977_s0 = inlined_call_operand.vmem [shape: f32[8,2,384], index: 0, kind: input, shape index: {}]   ;;  %s2978_s1 = inlined_call_operand.hbm [shape: f32[128,384], index: 1, kind: input, shape index: {}]   ;;  %s2979_s2 = inlined_call_operand.hbm [shape: f32[1,384], index: 2, kind: input, shape index: {}]   ;;  %s2980_s3 = inlined_call_operand.vmem [shape: f32[8,2,128], index: 3, kind: output, shape index: {}]  }
   0x1   :  { %9 = vsyncpa [#allocation5], 0  ;;  %s2101_s12 = smov [#allocation2]  }
   0x2   :  { %s17_s13 = sshll.u32 %s2101_s12, 4  ;;  %s18_s13 = int_to_ptr.vmem [resolvable:$true] %s17_s13 }
   0x3   :  { %s2065_s14 = scalar_lea.vmem %s18_s13, 6144  ;;  %p2070_p1 = scmp.lt.s32.totalorder %s18_s13, %s18_s13 }
   0x4   :  { %p2066_p0 = scmp.ne.s32.totalorder %s18_s13, %s2065_s14  ;;  %p2071_p2 = scmp.lt.s32.totalorder %s2065_s14, %s2065_s14 }
   0x6   :  { %p2072_p3 = por %p2071_p2, %p2070_p1 }
   0x8   :  { %p2073_p4 = pnand %p2072_p3, %p2066_p0 }
   0xa   :  { %2076 = shalt.err (!%p2073_p4)
}
   0xb   :  { %s2102_s15 = smov 384   ;;  %s2103_s16 = smov 24  }
   0xc   :  { %23 = dma.hbm_to_vmem [thread:$0]  %s2978_s1, 6144, %s18_s13, [#allocation3], %s2102_s15, %s2102_s15, %s2103_s16  }
   0xd   :  { %s2104_s19 = smov [#allocation4]  }
   0xe   :  { %s30_s20 = sshll.u32 %s2104_s19, 4  ;;  %s31_s20 = int_to_ptr.vmem [resolvable:$true] %s30_s20 }
   0xf   :  { %s2085_s21 = scalar_lea.vmem %s31_s20, 48  ;;  %s2089_s22 = scalar_lea.vmem %s31_s20, 64 }
  0x10   :  { %p2086_p5 = scmp.ne.s32.totalorder %s31_s20, %s2085_s21  ;;  %p2090_p6 = scmp.lt.s32.totalorder %s31_s20, %s31_s20 }
  0x11   :  { %p2091_p7 = scmp.lt.s32.totalorder %s2089_s22, %s2085_s21 }
  0x13   :  { %p2092_p8 = por %p2091_p7, %p2090_p6 }
  0x15   :  { %p2093_p9 = pnand %p2092_p8, %p2086_p5 }
  0x17   :  { %2096 = shalt.err (!%p2093_p9)
}
  0x18   :  { %33 = dma.hbm_to_vmem [thread:$0]  %s2979_s2, 48, %s31_s20, [#allocation5]  }
  0x19   :  { %2097 = dma.done.wait [#allocation3], 6144  }
  0x1a   :  { %2098 = vsyncadd [#allocation3], 4294961152 }
  0x1b   :  { %2099 = dma.done.wait [#allocation5], 48  }
  0x1c   :  { %2100 = vsyncadd [#allocation5], 4294967248  ;;  %v2981_v0 = vmov 0.0   ;;  %vm2106_vm0 = vmmov 0   ;;  %v2137_v1 = vld [vmem:[#allocation2 + $0x170] sm:$0xff]  ;;  %v2139_v2 = vld [vmem:[#allocation2 + $0x168] sm:$0xff]  ;;  %v90_v49 = vlaneseq }
  0x1d   :  { %169 = vmatprep.mubr.f32.mxu0 %v2981_v0  ;;  %1643 = vmatprep.subr.mxu1 %v2981_v0  ;;  %3006 = vst [vmem:[#allocation8_spill] sm:$0xff] %v2137_v1  ;;  %v2141_v3 = vld [vmem:[#allocation2 + $0x158] sm:$0xff]  ;;  %v2144_v4 = vld [vmem:[#allocation2 + $0x150] sm:$0xff]  ;;  %v2147_v5 = vld [vmem:[#allocation2 + $0x140] sm:$0xff] }
  0x1e   :  { %1675 = vmatprep.mubr.msk.f32.mxu1 %vm2106_vm0, %v2981_v0  ;;  %105 = vmatprep.subr.mxu0 %v2137_v1  ;;  %v2150_v6 = vld [vmem:[#allocation2 + $0x138] sm:$0xff]  ;;  %v2153_v7 = vld [vmem:[#allocation2 + $0x128] sm:$0xff]  ;;  %v2156_v8 = vld [vmem:[#allocation2 + $0x120] sm:$0xff]  ;;  %v91_v50 = vshrl.u32 %v90_v49, 7 }
  0x1f   :  { %106 = vmatpush1.msra.mxu0 %v2139_v2  ;;  %v2159_v9 = vld [vmem:[#allocation2 + $0x110] sm:$0xff]  ;;  %v2162_v10 = vld [vmem:[#allocation2 + $0x108] sm:$0xff]  ;;  %v2165_v11 = vld [vmem:[#allocation2 + $0xf8] sm:$0xff] }
  0x20   :  { %107 = vmatprep.subr.mxu0 %v2141_v3  ;;  %v2168_v12 = vld [vmem:[#allocation2 + $0xf0] sm:$0xff]  ;;  %v2171_v13 = vld [vmem:[#allocation2 + $0xe0] sm:$0xff]  ;;  %v2173_v14 = vld [vmem:[#allocation2 + $0x178] sm:$0xff]  ;;  %v92_v51 = vsub.s32 0, %v91_v50  ;;  %v96_v54 = vsub.s32 1, %v91_v50 }
  0x21   :  { %108 = vmatpush1.msra.mxu0 %v2144_v4  ;;  %v2176_v15 = vld [vmem:[#allocation2 + $0xd8] sm:$0xff]  ;;  %1644 = vmatpush3.msra.mxu1 %v2173_v14  ;;  %v2179_v16 = vld [vmem:[#allocation2 + $0x160] sm:$0xff]  ;;  %v2182_v17 = vld [vmem:[#allocation2 + $0xc8] sm:$0xff] }
  0x22   :  { %109 = vmatprep.subr.mxu0 %v2147_v5  ;;  %1645 = vmatprep.subr.mxu1 %v2981_v0  ;;  %v2185_v18 = vld [vmem:[#allocation2 + $0x148] sm:$0xff]  ;;  %v2188_v19 = vld [vmem:[#allocation2 + $0xc0] sm:$0xff]  ;;  %v2192_v20 = vld [vmem:[#allocation2 + $0xb0] sm:$0xff] }
  0x23   :  { %110 = vmatpush1.msra.mxu0 %v2150_v6  ;;  %1646 = vmatpush3.msra.mxu1 %v2179_v16  ;;  %v2195_v21 = vld [vmem:[#allocation2 + $0x130] sm:$0xff]  ;;  %v2198_v22 = vld [vmem:[#allocation2 + $0xa8] sm:$0xff]  ;;  %v2202_v23 = vld [vmem:[#allocation2 + $0x98] sm:$0xff] }
  0x24   :  { %111 = vmatprep.subr.mxu0 %v2153_v7  ;;  %1647 = vmatprep.subr.mxu1 %v2981_v0  ;;  %v2205_v24 = vld [vmem:[#allocation2 + $0x118] sm:$0xff]  ;;  %v2208_v25 = vld [vmem:[#allocation2 + $0x90] sm:$0xff]  ;;  %v2212_v26 = vld [vmem:[#allocation2 + $0x80] sm:$0xff] }
  0x25   :  { %112 = vmatpush1.msra.mxu0 %v2156_v8  ;;  %1648 = vmatpush3.msra.mxu1 %v2185_v18  ;;  %v2215_v27 = vld [vmem:[#allocation2 + $0x100] sm:$0xff]  ;;  %v2218_v28 = vld [vmem:[#allocation2 + $0x78] sm:$0xff]  ;;  %v2222_v29 = vld [vmem:[#allocation2 + $0x68] sm:$0xff] }
  0x26   :  { %113 = vmatprep.subr.mxu0 %v2159_v9  ;;  %1649 = vmatprep.subr.mxu1 %v2981_v0  ;;  %v2225_v30 = vld [vmem:[#allocation2 + $0xe8] sm:$0xff]  ;;  %v2228_v31 = vld [vmem:[#allocation2 + $0x60] sm:$0xff]  ;;  %v2232_v32 = vld [vmem:[#allocation2 + $0x50] sm:$0xff] }
  0x27   :  { %114 = vmatpush1.msra.mxu0 %v2162_v10  ;;  %1650 = vmatpush3.msra.mxu1 %v2195_v21  ;;  %v2235_v33 = vld [vmem:[#allocation2 + $0xd0] sm:$0xff]  ;;  %v2238_v34 = vld [vmem:[#allocation2 + $0x48] sm:$0xff]  ;;  %v2242_v35 = vld [vmem:[#allocation2 + $0x38] sm:$0xff] }
  0x28   :  { %115 = vmatprep.subr.mxu0 %v2165_v11  ;;  %1651 = vmatprep.subr.mxu1 %v2981_v0  ;;  %v2245_v36 = vld [vmem:[#allocation2 + $0xb8] sm:$0xff]  ;;  %v2248_v37 = vld [vmem:[#allocation2 + $0x30] sm:$0xff]  ;;  %v2252_v38 = vld [vmem:[#allocation2 + $0x20] sm:$0xff] }
  0x29   :  { %116 = vmatpush1.msra.mxu0 %v2168_v12  ;;  %1652 = vmatpush3.msra.mxu1 %v2205_v24  ;;  %3007 = vst [vmem:[#allocation9_spill] sm:$0xff] %v2252_v38  ;;  %v2255_v39 = vld [vmem:[#allocation2 + $0xa0] sm:$0xff]  ;;  %v2258_v40 = vld [vmem:[#allocation2 + $0x18] sm:$0xff]  ;;  %v2262_v41 = vld [vmem:[#allocation2 + $0x8] sm:$0xff] }
  0x2a   :  { %117 = vmatprep.subr.mxu0 %v2171_v13  ;;  %1653 = vmatprep.subr.mxu1 %v2981_v0  ;;  %3008 = vst [vmem:[#allocation10_spill] sm:$0xff] %v2258_v40  ;;  %3009 = vst [vmem:[#allocation11_spill] sm:$0xff] %v2262_v41  ;;  %v2265_v42 = vld [vmem:[#allocation2 + $0x88] sm:$0xff]  ;;  %v2268_v43 = vld [vmem:[#allocation2] sm:$0xff] }
  0x2b   :  { %118 = vmatpush1.msra.mxu0 %v2176_v15  ;;  %1654 = vmatpush3.msra.mxu1 %v2215_v27  ;;  %3010 = vst [vmem:[#allocation12_spill] sm:$0xff] %v2268_v43  ;;  %v2273_v44 = vld [vmem:[#allocation2 + $0x70] sm:$0xff]  ;;  %v2279_v45 = vld [vmem:[#allocation2 + $0x58] sm:$0xff]  ;;  %v2284_v46 = vld [vmem:[#allocation2 + $0x40] sm:$0xff] }
  0x2c   :  { %119 = vmatprep.subr.mxu0 %v2182_v17  ;;  %1655 = vmatprep.subr.mxu1 %v2981_v0  ;;  %v2290_v47 = vld [vmem:[#allocation2 + $0x28] sm:$0xff]  ;;  %v2296_v48 = vld [vmem:[#allocation2 + $0x10] sm:$0xff]  ;;  %v88_v52 = vld [vmem:[#allocation4] sm:$0x7] }
  0x2d   :  { %120 = vmatpush1.msra.mxu0 %v2188_v19  ;;  %1656 = vmatpush3.msra.mxu1 %v2225_v30  ;;  %3011 = vst [vmem:[#allocation13_spill] sm:$0xff] %v2290_v47  ;;  %3012 = vst [vmem:[#allocation14_spill] sm:$0xff] %v2296_v48  ;;  %v2367_v53 = vrot.slane %v88_v52, %v92_v51  ;;  %v246_v56 = vld [vmem:[%s2977_s0] sm:$0x3f]  ;;  %v2373_v58 = vrot.slane %v88_v52, %v96_v54 }
  0x2e   :  { %121 = vmatprep.subr.mxu0 %v2192_v20  ;;  %1657 = vmatprep.subr.mxu1 %v2981_v0  ;;  %v255_v63 = vrot.slane %v246_v56, 2 }
  0x2f   :  { %122 = vmatpush1.msra.mxu0 %v2198_v22  ;;  %1658 = vmatpush3.msra.mxu1 %v2235_v33  ;;  %3013 = vst [vmem:[#allocation15_spill] sm:$0xff] %v2367_v53 }
  0x30   :  { %123 = vmatprep.subr.mxu0 %v2202_v23  ;;  %1659 = vmatprep.subr.mxu1 %v2981_v0 }
  0x31   :  { %124 = vmatpush1.msra.mxu0 %v2208_v25  ;;  %1660 = vmatpush3.msra.mxu1 %v2245_v36 }
  0x32   :  { %125 = vmatprep.subr.mxu0 %v2212_v26  ;;  %1661 = vmatprep.subr.mxu1 %v2981_v0 }
  0x33   :  { %126 = vmatpush1.msra.mxu0 %v2218_v28  ;;  %1662 = vmatpush3.msra.mxu1 %v2255_v39 }
  0x34   :  { %127 = vmatprep.subr.mxu0 %v2222_v29  ;;  %1663 = vmatprep.subr.mxu1 %v2981_v0 }
  0x35   :  { %128 = vmatpush1.msra.mxu0 %v2228_v31  ;;  %1664 = vmatpush3.msra.mxu1 %v2265_v42 }
  0x36   :  { %129 = vmatprep.subr.mxu0 %v2232_v32  ;;  %1665 = vmatprep.subr.mxu1 %v2981_v0 }
  0x37   :  { %130 = vmatpush1.msra.mxu0 %v2238_v34  ;;  %1666 = vmatpush3.msra.mxu1 %v2273_v44 }
  0x38   :  { %131 = vmatprep.subr.mxu0 %v2242_v35  ;;  %1667 = vmatprep.subr.mxu1 %v2981_v0 }
  0x39   :  { %132 = vmatpush1.msra.mxu0 %v2248_v37  ;;  %1668 = vmatpush3.msra.mxu1 %v2279_v45 }
  0x3a   :  { %133 = vmatprep.subr.mxu0 %v2252_v38  ;;  %1669 = vmatprep.subr.mxu1 %v2981_v0 }
  0x3b   :  { %134 = vmatpush1.msra.mxu0 %v2258_v40  ;;  %1670 = vmatpush3.msra.mxu1 %v2284_v46 }
  0x3c   :  { %135 = vmatprep.subr.mxu0 %v2262_v41  ;;  %1671 = vmatprep.subr.mxu1 %v2981_v0 }
  0x3d   :  { %136 = vmatpush1.msra.mxu0 %v2268_v43  ;;  %1672 = vmatpush3.msra.mxu1 %v2290_v47 }
  0x3e   :  { %170 = vmatmul.mubr.f32.vlgmr.msra.gmra.mxu0 %v2981_v0  ;;  %274 = vmatprep.subr.mxu0 %v2137_v1 }
  0x3f   :  { %275 = vmatpush1.msra.mxu0 %v2139_v2  ;;  %1673 = vmatprep.subr.mxu1 %v2981_v0 }
  0x40   :  { %276 = vmatprep.subr.mxu0 %v2141_v3  ;;  %1674 = vmatpush3.msra.mxu1 %v2296_v48 }
  0x41   :  { %277 = vmatpush1.msra.mxu0 %v2144_v4  ;;  %1676 = vmatmul.mubr.f32.vlgmr.msra.gmra.mxu1 %v2981_v0 }
  0x42   :  { %278 = vmatprep.subr.mxu0 %v2147_v5  ;;  %1678 = vmatprep.subr.mxu1 %v2981_v0 }
  0x43   :  { %279 = vmatpush1.msra.mxu0 %v2150_v6  ;;  %1679 = vmatpush3.msra.mxu1 %v2173_v14 }
  0x44   :  { %280 = vmatprep.subr.mxu0 %v2153_v7  ;;  %1680 = vmatprep.subr.mxu1 %v2981_v0 }
  0x45   :  { %281 = vmatpush1.msra.mxu0 %v2156_v8  ;;  %1681 = vmatpush3.msra.mxu1 %v2179_v16 }
  0x46   :  { %282 = vmatprep.subr.mxu0 %v2159_v9  ;;  %1682 = vmatprep.subr.mxu1 %v2981_v0 }
  0x47   :  { %283 = vmatpush1.msra.mxu0 %v2162_v10  ;;  %1683 = vmatpush3.msra.mxu1 %v2185_v18 }
  0x48   :  { %284 = vmatprep.subr.mxu0 %v2165_v11  ;;  %1684 = vmatprep.subr.mxu1 %v2981_v0 }
  0x49   :  { %285 = vmatpush1.msra.mxu0 %v2168_v12  ;;  %1685 = vmatpush3.msra.mxu1 %v2195_v21 }
  0x4a   :  { %286 = vmatprep.subr.mxu0 %v2171_v13  ;;  %1686 = vmatprep.subr.mxu1 %v2981_v0 }
  0x4b   :  { %287 = vmatpush1.msra.mxu0 %v2176_v15  ;;  %1687 = vmatpush3.msra.mxu1 %v2205_v24 }
  0x4c   :  { %288 = vmatprep.subr.mxu0 %v2182_v17  ;;  %1688 = vmatprep.subr.mxu1 %v2981_v0 }
  0x4d   :  { %289 = vmatpush1.msra.mxu0 %v2188_v19  ;;  %1689 = vmatpush3.msra.mxu1 %v2215_v27 }
  0x4e   :  { %290 = vmatprep.subr.mxu0 %v2192_v20  ;;  %1690 = vmatprep.subr.mxu1 %v2981_v0 }
  0x4f   :  { %291 = vmatpush1.msra.mxu0 %v2198_v22  ;;  %1691 = vmatpush3.msra.mxu1 %v2225_v30 }
  0x50   :  { %292 = vmatprep.subr.mxu0 %v2202_v23  ;;  %1692 = vmatprep.subr.mxu1 %v2981_v0 }
  0x51   :  { %293 = vmatpush1.msra.mxu0 %v2208_v25  ;;  %1693 = vmatpush3.msra.mxu1 %v2235_v33 }
  0x52   :  { %294 = vmatprep.subr.mxu0 %v2212_v26  ;;  %1694 = vmatprep.subr.mxu1 %v2981_v0 }
  0x53   :  { %295 = vmatpush1.msra.mxu0 %v2218_v28  ;;  %1695 = vmatpush3.msra.mxu1 %v2245_v36 }
  0x54   :  { %296 = vmatprep.subr.mxu0 %v2222_v29  ;;  %1696 = vmatprep.subr.mxu1 %v2981_v0 }
  0x55   :  { %297 = vmatpush1.msra.mxu0 %v2228_v31  ;;  %1697 = vmatpush3.msra.mxu1 %v2255_v39 }
  0x56   :  { %298 = vmatprep.subr.mxu0 %v2232_v32  ;;  %1698 = vmatprep.subr.mxu1 %v2981_v0 }
  0x57   :  { %299 = vmatpush1.msra.mxu0 %v2238_v34  ;;  %1699 = vmatpush3.msra.mxu1 %v2265_v42 }
  0x58   :  { %300 = vmatprep.subr.mxu0 %v2242_v35  ;;  %1700 = vmatprep.subr.mxu1 %v2981_v0 }
  0x59   :  { %301 = vmatpush1.msra.mxu0 %v2248_v37  ;;  %1701 = vmatpush3.msra.mxu1 %v2273_v44 }
  0x5a   :  { %302 = vmatprep.subr.mxu0 %v2252_v38  ;;  %1702 = vmatprep.subr.mxu1 %v2981_v0 }
  0x5b   :  { %303 = vmatpush1.msra.mxu0 %v2258_v40  ;;  %1703 = vmatpush3.msra.mxu1 %v2279_v45 }
  0x5c   :  { %304 = vmatprep.subr.mxu0 %v2262_v41  ;;  %338 = vmatprep.mubr.f32.mxu0 %v2981_v0  ;;  %v100_v41 = vsub.s32 2, %v91_v50  ;;  %v3016_v50 = vld [vmem:[#allocation11_spill] sm:$0xff] }
  0x5d   :  { %305 = vmatpush1.msra.mxu0 %v2268_v43  ;;  %1704 = vmatprep.subr.mxu1 %v2981_v0 }
  0x5e   :  { %1710 = vmatprep.mubr.msk.f32.mxu1 %vm2106_vm0, %v2981_v0  ;;  %1705 = vmatpush3.msra.mxu1 %v2284_v46 }
  0x5f   :  { %445 = vmatprep.subr.mxu0 %v2137_v1  ;;  %1706 = vmatprep.subr.mxu1 %v2981_v0 }
  0x60   :  { %1707 = vmatpush3.msra.mxu1 %v2290_v47  ;;  %v2376_v47 = vrot.slane %v88_v52, %v100_v41  ;;  %v3014_v41 = vmov 0.0   ;;  %v3017_v52 = vld [vmem:[#allocation12_spill] sm:$0xff] }
  0x61   :  { %1708 = vmatprep.subr.mxu1 %v2981_v0 }
  0x62   :  { %1709 = vmatpush3.msra.mxu1 %v2296_v48 }
  0x63   :  { %1713 = vmatprep.subr.mxu1 %v2981_v0 }
  0xfe   :  { %v171_v55 = vpop.f32.mrf.mxu0 }
  0xff   :  { %v172_v57 = vadd.f32 %v171_v55, %v2367_v53 }
 0x100   :  { %v173_v59 = vpop.f32.mrf.mxu0 }
 0x101   :  { %v247_v60 = vadd.f32 %v246_v56, %v172_v57  ;;  %v174_v62 = vadd.f32 %v173_v59, %v2373_v58  ;;  %v242_v51 = vpop.f32.mrf.mxu1 }
 0x102   :  { %v243_v57 = vadd.f32 %v242_v51, %v2376_v47 }
 0x103   :  { %v1477_v61 = vmul.f32 -1.442695, %v247_v60  ;;  %v257_v49 = vadd.f32 %v255_v63, %v174_v62  ;;  %v1677_v0 = vpop.f32.mrf.mxu1  ;;  %v265_v60 = vrot.slane %v246_v56, 4  ;;  %v3019_v56 = vld [vmem:[#allocation8_spill] sm:$0xff] }
 0x105   :  { %1929 = vpow2.f32 %v1477_v61  ;;  %v1478_v1 = vmul.f32 -1.442695, %v257_v49 }
 0x107   :  { %1931 = vpow2.f32 %v1478_v1 }
 0x112   :  { %v1930_v48 = vpop.eup %1929 }
 0x113   :  { %v251_v43 = vadd.f32 1.0, %v1930_v48 }
 0x114   :  { %v1932_v54 = vpop.eup %1931 }
 0x115   :  { %1933 = vrcp.f32 %v251_v43  ;;  %v261_v55 = vadd.f32 1.0, %v1932_v54  ;;  %v3015_v43 = vld [vmem:[#allocation13_spill] sm:$0xff]  ;;  %v1479_v54 = vld [vmem:[%s2977_s0 + $0x6] sm:$0x3f] }
 0x117   :  { %1935 = vrcp.f32 %v261_v55 }
 0x122   :  { %v1934_v53 = vpop.eup %1933 }
 0x123   :  { %v264_v59 = vmul.f32 %v1934_v53, %v243_v57  ;;  %v3018_v53 = vld [vmem:[#allocation14_spill] sm:$0xff]  ;;  %v3020_v57 = vld [vmem:[#allocation15_spill] sm:$0xff] }
 0x124   :  { %v1936_v62 = vpop.eup %1935 }
 0x125   :  { %v267_v61 = vadd.f32 %v265_v60, %v264_v59  ;;  %v269_v0 = vsub.f32 1.0, %v1936_v62  ;;  %v271_v49 = vmul.f32 0.0, %v1936_v62 }
 0x127   :  { %1937 = vtanh.f32 %v267_v61 }
 0x134   :  { %v1938_v63 = vpop.eup %1937 }
 0x135   :  { %v270_v1 = vmul.f32 %v1938_v63, %v269_v0 }
 0x137   :  { %v2379_v48 = vadd.f32 %v271_v49, %v270_v1  ;;  %v425_v1 = vrot.slane %v1479_v54, 2 }
 0x139   :  { %273 = vst [vmem:[%s2980_s3] sm:$0x3] %v2379_v48  ;;  %339 = vmatmul.mubr.f32.vlgmr.msra.gmra.mxu0 %v2379_v48  ;;  %1711 = vmatmul.mubr.f32.vlgmr.msra.gmra.mxu1 %v2379_v48 }
 0x13a   :  { %446 = vmatpush1.msra.mxu0 %v2139_v2  ;;  %1714 = vmatpush3.msra.mxu1 %v2173_v14 }
 0x13b   :  { %447 = vmatprep.subr.mxu0 %v2141_v3  ;;  %1715 = vmatprep.subr.mxu1 %v3014_v41 }
 0x13c   :  { %448 = vmatpush1.msra.mxu0 %v2144_v4  ;;  %1716 = vmatpush3.msra.mxu1 %v2179_v16 }
 0x13d   :  { %449 = vmatprep.subr.mxu0 %v2147_v5  ;;  %1717 = vmatprep.subr.mxu1 %v3014_v41 }
 0x13e   :  { %450 = vmatpush1.msra.mxu0 %v2150_v6  ;;  %1718 = vmatpush3.msra.mxu1 %v2185_v18 }
 0x13f   :  { %451 = vmatprep.subr.mxu0 %v2153_v7  ;;  %1719 = vmatprep.subr.mxu1 %v3014_v41 }
 0x140   :  { %452 = vmatpush1.msra.mxu0 %v2156_v8  ;;  %1720 = vmatpush3.msra.mxu1 %v2195_v21 }
 0x141   :  { %453 = vmatprep.subr.mxu0 %v2159_v9  ;;  %1721 = vmatprep.subr.mxu1 %v3014_v41 }
 0x142   :  { %454 = vmatpush1.msra.mxu0 %v2162_v10  ;;  %1722 = vmatpush3.msra.mxu1 %v2205_v24 }
 0x143   :  { %455 = vmatprep.subr.mxu0 %v2165_v11  ;;  %1723 = vmatprep.subr.mxu1 %v3014_v41 }
 0x144   :  { %456 = vmatpush1.msra.mxu0 %v2168_v12  ;;  %1724 = vmatpush3.msra.mxu1 %v2215_v27 }
 0x145   :  { %457 = vmatprep.subr.mxu0 %v2171_v13  ;;  %1725 = vmatprep.subr.mxu1 %v3014_v41 }
 0x146   :  { %458 = vmatpush1.msra.mxu0 %v2176_v15  ;;  %1726 = vmatpush3.msra.mxu1 %v2225_v30 }
 0x147   :  { %459 = vmatprep.subr.mxu0 %v2182_v17  ;;  %1727 = vmatprep.subr.mxu1 %v3014_v41 }
 0x148   :  { %460 = vmatpush1.msra.mxu0 %v2188_v19  ;;  %1728 = vmatpush3.msra.mxu1 %v2235_v33 }
 0x149   :  { %461 = vmatprep.subr.mxu0 %v2192_v20  ;;  %1729 = vmatprep.subr.mxu1 %v3014_v41 }
 0x14a   :  { %462 = vmatpush1.msra.mxu0 %v2198_v22  ;;  %1730 = vmatpush3.msra.mxu1 %v2245_v36 }
 0x14b   :  { %463 = vmatprep.subr.mxu0 %v2202_v23  ;;  %1731 = vmatprep.subr.mxu1 %v3014_v41 }
 0x14c   :  { %464 = vmatpush1.msra.mxu0 %v2208_v25  ;;  %1732 = vmatpush3.msra.mxu1 %v2255_v39 }
 0x14d   :  { %465 = vmatprep.subr.mxu0 %v2212_v26  ;;  %1733 = vmatprep.subr.mxu1 %v3014_v41 }
 0x14e   :  { %466 = vmatpush1.msra.mxu0 %v2218_v28  ;;  %1734 = vmatpush3.msra.mxu1 %v2265_v42 }
 0x14f   :  { %467 = vmatprep.subr.mxu0 %v2222_v29  ;;  %1735 = vmatprep.subr.mxu1 %v3014_v41 }
 0x150   :  { %468 = vmatpush1.msra.mxu0 %v2228_v31  ;;  %1736 = vmatpush3.msra.mxu1 %v2273_v44 }
 0x151   :  { %469 = vmatprep.subr.mxu0 %v2232_v32  ;;  %1737 = vmatprep.subr.mxu1 %v3014_v41 }
 0x152   :  { %470 = vmatpush1.msra.mxu0 %v2238_v34  ;;  %1738 = vmatpush3.msra.mxu1 %v2279_v45 }
 0x153   :  { %471 = vmatprep.subr.mxu0 %v2242_v35  ;;  %1739 = vmatprep.subr.mxu1 %v3014_v41 }
 0x154   :  { %472 = vmatpush1.msra.mxu0 %v2248_v37  ;;  %1740 = vmatpush3.msra.mxu1 %v2284_v46 }
 0x155   :  { %473 = vmatprep.subr.mxu0 %v2252_v38  ;;  %1741 = vmatprep.subr.mxu1 %v3014_v41  ;;  %v435_v38 = vrot.slane %v1479_v54, 4 }
 0x156   :  { %474 = vmatpush1.msra.mxu0 %v2258_v40  ;;  %1742 = vmatpush3.msra.mxu1 %v3015_v43 }
 0x157   :  { %475 = vmatprep.subr.mxu0 %v3016_v50  ;;  %1743 = vmatprep.subr.mxu1 %v3014_v41 }
 0x158   :  { %476 = vmatpush1.msra.mxu0 %v3017_v52  ;;  %509 = vmatprep.mubr.f32.mxu0 %v3014_v41 }
 0x159   :  { %1744 = vmatpush3.msra.mxu1 %v3018_v53  ;;  %1745 = vmatprep.mubr.msk.f32.mxu1 %vm2106_vm0, %v3014_v41 }
 0x15a   :  { %616 = vmatprep.subr.mxu0 %v3019_v56  ;;  %1748 = vmatprep.subr.mxu1 %v3014_v41 }
 0x1f9   :  { %v340_v51 = vpop.f32.mrf.mxu0  ;;  %v411_v55 = vpop.f32.mrf.mxu1 }
 0x1fa   :  { %v341_v60 = vadd.f32 %v340_v51, %v3020_v57  ;;  %v412_v40 = vadd.f32 %v411_v55, %v2376_v47  ;;  %v1483_v55 = vld [vmem:[%s2977_s0 + $0xc] sm:$0x3f] }
 0x1fb   :  { %v342_v59 = vpop.f32.mrf.mxu0  ;;  %v1712_v61 = vpop.f32.mrf.mxu1 }
 0x1fc   :  { %v417_v62 = vadd.f32 %v1479_v54, %v341_v60  ;;  %v343_v63 = vadd.f32 %v342_v59, %v2373_v58 }
 0x1fe   :  { %v1480_v0 = vmul.f32 -1.442695, %v417_v62  ;;  %v427_v49 = vadd.f32 %v425_v1, %v343_v63  ;;  %v3028_v1 = vld [vmem:[#allocation15_spill] sm:$0xff] }
 0x200   :  { %1939 = vpow2.f32 %v1480_v0  ;;  %v1481_v56 = vmul.f32 -1.442695, %v427_v49 }
 0x202   :  { %1941 = vpow2.f32 %v1481_v56 }
 0x20d   :  { %v1940_v53 = vpop.eup %1939 }
 0x20e   :  { %v421_v52 = vadd.f32 1.0, %v1940_v53  ;;  %v3027_v53 = vld [vmem:[#allocation8_spill] sm:$0xff] }
 0x20f   :  { %v1942_v50 = vpop.eup %1941 }
 0x210   :  { %1943 = vrcp.f32 %v421_v52  ;;  %v431_v43 = vadd.f32 1.0, %v1942_v50  ;;  %v3025_v50 = vld [vmem:[#allocation12_spill] sm:$0xff]  ;;  %v3026_v52 = vld [vmem:[#allocation14_spill] sm:$0xff] }
 0x212   :  { %1945 = vrcp.f32 %v431_v43  ;;  %v3024_v43 = vld [vmem:[#allocation11_spill] sm:$0xff] }
 0x21d   :  { %v1944_v51 = vpop.eup %1943 }
 0x21e   :  { %v434_v57 = vmul.f32 %v1944_v51, %v412_v40  ;;  %v3022_v40 = vld [vmem:[#allocation10_spill] sm:$0xff] }
 0x21f   :  { %v1946_v61 = vpop.eup %1945 }
 0x220   :  { %v437_v60 = vadd.f32 %v435_v38, %v434_v57  ;;  %v439_v59 = vsub.f32 1.0, %v1946_v61  ;;  %v441_v63 = vmul.f32 %v1946_v61, %v2379_v48  ;;  %v3021_v38 = vld [vmem:[#allocation9_spill] sm:$0xff] }
 0x221   :  { %v3023_v48 = vld [vmem:[#allocation13_spill] sm:$0xff] }
 0x222   :  { %1947 = vtanh.f32 %v437_v60 }
 0x22f   :  { %v1948_v62 = vpop.eup %1947 }
 0x230   :  { %v440_v0 = vmul.f32 %v1948_v62, %v439_v59 }
 0x232   :  { %v2461_v56 = vadd.f32 %v441_v63, %v440_v0  ;;  %v596_v0 = vrot.slane %v1483_v55, 2 }
 0x234   :  { %1482 = vst [vmem:[%s2980_s3 + $0x2] sm:$0x3] %v2461_v56  ;;  %510 = vmatmul.mubr.f32.vlgmr.msra.gmra.mxu0 %v2461_v56  ;;  %1746 = vmatmul.mubr.f32.vlgmr.msra.gmra.mxu1 %v2461_v56 }
 0x235   :  { %617 = vmatpush1.msra.mxu0 %v2139_v2  ;;  %1749 = vmatpush3.msra.mxu1 %v2173_v14 }
 0x236   :  { %618 = vmatprep.subr.mxu0 %v2141_v3  ;;  %1750 = vmatprep.subr.mxu1 %v3014_v41 }
 0x237   :  { %619 = vmatpush1.msra.mxu0 %v2144_v4  ;;  %1751 = vmatpush3.msra.mxu1 %v2179_v16 }
 0x238   :  { %620 = vmatprep.subr.mxu0 %v2147_v5  ;;  %1752 = vmatprep.subr.mxu1 %v3014_v41 }
 0x239   :  { %621 = vmatpush1.msra.mxu0 %v2150_v6  ;;  %1753 = vmatpush3.msra.mxu1 %v2185_v18 }
 0x23a   :  { %622 = vmatprep.subr.mxu0 %v2153_v7  ;;  %1754 = vmatprep.subr.mxu1 %v3014_v41 }
 0x23b   :  { %623 = vmatpush1.msra.mxu0 %v2156_v8  ;;  %1755 = vmatpush3.msra.mxu1 %v2195_v21 }
 0x23c   :  { %624 = vmatprep.subr.mxu0 %v2159_v9  ;;  %1756 = vmatprep.subr.mxu1 %v3014_v41 }
 0x23d   :  { %625 = vmatpush1.msra.mxu0 %v2162_v10  ;;  %1757 = vmatpush3.msra.mxu1 %v2205_v24 }
 0x23e   :  { %626 = vmatprep.subr.mxu0 %v2165_v11  ;;  %1758 = vmatprep.subr.mxu1 %v3014_v41 }
 0x23f   :  { %627 = vmatpush1.msra.mxu0 %v2168_v12  ;;  %1759 = vmatpush3.msra.mxu1 %v2215_v27 }
 0x240   :  { %628 = vmatprep.subr.mxu0 %v2171_v13  ;;  %1760 = vmatprep.subr.mxu1 %v3014_v41 }
 0x241   :  { %629 = vmatpush1.msra.mxu0 %v2176_v15  ;;  %1761 = vmatpush3.msra.mxu1 %v2225_v30 }
 0x242   :  { %630 = vmatprep.subr.mxu0 %v2182_v17  ;;  %1762 = vmatprep.subr.mxu1 %v3014_v41 }
 0x243   :  { %631 = vmatpush1.msra.mxu0 %v2188_v19  ;;  %1763 = vmatpush3.msra.mxu1 %v2235_v33 }
 0x244   :  { %632 = vmatprep.subr.mxu0 %v2192_v20  ;;  %1764 = vmatprep.subr.mxu1 %v3014_v41 }
 0x245   :  { %633 = vmatpush1.msra.mxu0 %v2198_v22  ;;  %1765 = vmatpush3.msra.mxu1 %v2245_v36 }
 0x246   :  { %634 = vmatprep.subr.mxu0 %v2202_v23  ;;  %1766 = vmatprep.subr.mxu1 %v3014_v41 }
 0x247   :  { %635 = vmatpush1.msra.mxu0 %v2208_v25  ;;  %1767 = vmatpush3.msra.mxu1 %v2255_v39 }
 0x248   :  { %636 = vmatprep.subr.mxu0 %v2212_v26  ;;  %1768 = vmatprep.subr.mxu1 %v3014_v41 }
 0x249   :  { %637 = vmatpush1.msra.mxu0 %v2218_v28  ;;  %1769 = vmatpush3.msra.mxu1 %v2265_v42 }
 0x24a   :  { %638 = vmatprep.subr.mxu0 %v2222_v29  ;;  %1770 = vmatprep.subr.mxu1 %v3014_v41 }
 0x24b   :  { %639 = vmatpush1.msra.mxu0 %v2228_v31  ;;  %1771 = vmatpush3.msra.mxu1 %v2273_v44 }
 0x24c   :  { %640 = vmatprep.subr.mxu0 %v2232_v32  ;;  %1772 = vmatprep.subr.mxu1 %v3014_v41 }
 0x24d   :  { %641 = vmatpush1.msra.mxu0 %v2238_v34  ;;  %1773 = vmatpush3.msra.mxu1 %v2279_v45 }
 0x24e   :  { %642 = vmatprep.subr.mxu0 %v2242_v35  ;;  %1774 = vmatprep.subr.mxu1 %v3014_v41 }
 0x24f   :  { %643 = vmatpush1.msra.mxu0 %v2248_v37  ;;  %1775 = vmatpush3.msra.mxu1 %v2284_v46 }
 0x250   :  { %644 = vmatprep.subr.mxu0 %v3021_v38  ;;  %1776 = vmatprep.subr.mxu1 %v3014_v41  ;;  %v606_v38 = vrot.slane %v1483_v55, 4 }
 0x251   :  { %645 = vmatpush1.msra.mxu0 %v3022_v40  ;;  %1777 = vmatpush3.msra.mxu1 %v3023_v48 }
 0x252   :  { %646 = vmatprep.subr.mxu0 %v3024_v43  ;;  %1778 = vmatprep.subr.mxu1 %v3014_v41 }
 0x253   :  { %647 = vmatpush1.msra.mxu0 %v3025_v50  ;;  %680 = vmatprep.mubr.f32.mxu0 %v3014_v41 }
 0x254   :  { %1779 = vmatpush3.msra.mxu1 %v3026_v52  ;;  %1780 = vmatprep.mubr.msk.f32.mxu1 %vm2106_vm0, %v3014_v41 }
 0x255   :  { %787 = vmatprep.subr.mxu0 %v3027_v53  ;;  %1783 = vmatprep.subr.mxu1 %v3014_v41 }
 0x2f4   :  { %v511_v54 = vpop.f32.mrf.mxu0  ;;  %v582_v57 = vpop.f32.mrf.mxu1 }
 0x2f5   :  { %v512_v49 = vadd.f32 %v511_v54, %v3028_v1  ;;  %v583_v40 = vadd.f32 %v582_v57, %v2376_v47 }
 0x2f6   :  { %v513_v51 = vpop.f32.mrf.mxu0  ;;  %v1747_v60 = vpop.f32.mrf.mxu1 }
 0x2f7   :  { %v588_v61 = vadd.f32 %v1483_v55, %v512_v49  ;;  %v514_v62 = vadd.f32 %v513_v51, %v2373_v58 }
 0x2f9   :  { %v1484_v59 = vmul.f32 -1.442695, %v588_v61  ;;  %v598_v63 = vadd.f32 %v596_v0, %v514_v62 }
 0x2fb   :  { %1949 = vpow2.f32 %v1484_v59  ;;  %v1485_v53 = vmul.f32 -1.442695, %v598_v63 }
 0x2fd   :  { %1951 = vpow2.f32 %v1485_v53 }
 0x308   :  { %v1950_v52 = vpop.eup %1949 }
 0x309   :  { %v592_v50 = vadd.f32 1.0, %v1950_v52 }
 0x30a   :  { %v1952_v43 = vpop.eup %1951 }
 0x30b   :  { %1953 = vrcp.f32 %v592_v50  ;;  %v602_v48 = vadd.f32 1.0, %v1952_v43 }
 0x30d   :  { %1955 = vrcp.f32 %v602_v48 }
 0x318   :  { %v1954_v54 = vpop.eup %1953 }
 0x319   :  { %v605_v1 = vmul.f32 %v1954_v54, %v583_v40 }
 0x31a   :  { %v1956_v60 = vpop.eup %1955 }
 0x31b   :  { %v608_v49 = vadd.f32 %v606_v38, %v605_v1  ;;  %v610_v51 = vsub.f32 1.0, %v1956_v60  ;;  %v612_v62 = vmul.f32 %v1956_v60, %v2461_v56  ;;  %v2637_v60 = vld [vmem:[#allocation2 + $0x158] sm:$0xff] }
 0x31d   :  { %1957 = vtanh.f32 %v608_v49  ;;  %v2633_v49 = vld [vmem:[#allocation2 + $0x168] sm:$0xff] }
 0x32a   :  { %v1958_v61 = vpop.eup %1957 }
 0x32b   :  { %v611_v59 = vmul.f32 %v1958_v61, %v610_v51  ;;  %v2641_v51 = vld [vmem:[#allocation2 + $0x150] sm:$0xff]  ;;  %v2645_v61 = vld [vmem:[#allocation2 + $0x140] sm:$0xff] }
 0x32d   :  { %v2543_v53 = vadd.f32 %v612_v62, %v611_v59  ;;  %v2649_v59 = vld [vmem:[#allocation2 + $0x138] sm:$0xff]  ;;  %v2657_v62 = vld [vmem:[#allocation2 + $0x120] sm:$0xff] }
 0x32f   :  { %1486 = vst [vmem:[%s2980_s3 + $0x4] sm:$0x3] %v2543_v53  ;;  %681 = vmatmul.mubr.f32.vlgmr.msra.gmra.mxu0 %v2543_v53  ;;  %1781 = vmatmul.mubr.f32.vlgmr.msra.gmra.mxu1 %v2543_v53 }
 0x330   :  { %788 = vmatpush1.msra.mxu0 %v2139_v2  ;;  %1784 = vmatpush3.msra.mxu1 %v2173_v14  ;;  %v3029_v2 = vld [vmem:[#allocation9_spill] sm:$0xff] }
 0x331   :  { %789 = vmatprep.subr.mxu0 %v2141_v3  ;;  %1785 = vmatprep.subr.mxu1 %v3014_v41  ;;  %v3030_v3 = vld [vmem:[#allocation10_spill] sm:$0xff] }
 0x332   :  { %790 = vmatpush1.msra.mxu0 %v2144_v4  ;;  %1786 = vmatpush3.msra.mxu1 %v2179_v16  ;;  %v3031_v4 = vld [vmem:[#allocation13_spill] sm:$0xff] }
 0x333   :  { %791 = vmatprep.subr.mxu0 %v2147_v5  ;;  %1787 = vmatprep.subr.mxu1 %v3014_v41  ;;  %v3032_v5 = vld [vmem:[#allocation11_spill] sm:$0xff] }
 0x334   :  { %792 = vmatpush1.msra.mxu0 %v2150_v6  ;;  %1788 = vmatpush3.msra.mxu1 %v2185_v18  ;;  %v3033_v6 = vld [vmem:[#allocation12_spill] sm:$0xff] }
 0x335   :  { %793 = vmatprep.subr.mxu0 %v2153_v7  ;;  %1789 = vmatprep.subr.mxu1 %v3014_v41  ;;  %v3034_v7 = vld [vmem:[#allocation14_spill] sm:$0xff] }
 0x336   :  { %794 = vmatpush1.msra.mxu0 %v2156_v8  ;;  %1790 = vmatpush3.msra.mxu1 %v2195_v21  ;;  %v3035_v8 = vld [vmem:[#allocation8_spill] sm:$0xff] }
 0x337   :  { %795 = vmatprep.subr.mxu0 %v2159_v9  ;;  %1791 = vmatprep.subr.mxu1 %v3014_v41 }
 0x338   :  { %796 = vmatpush1.msra.mxu0 %v2162_v10  ;;  %1792 = vmatpush3.msra.mxu1 %v2205_v24  ;;  %v1487_v10 = vld [vmem:[%s2977_s0 + $0x12] sm:$0x3f] }
 0x339   :  { %797 = vmatprep.subr.mxu0 %v2165_v11  ;;  %1793 = vmatprep.subr.mxu1 %v3014_v41  ;;  %v777_v48 = vrot.slane %v1487_v10, 4 }
 0x33a   :  { %798 = vmatpush1.msra.mxu0 %v2168_v12  ;;  %1794 = vmatpush3.msra.mxu1 %v2215_v27  ;;  %v3036_v12 = vld [vmem:[#allocation15_spill] sm:$0xff] }
 0x33b   :  { %799 = vmatprep.subr.mxu0 %v2171_v13  ;;  %1795 = vmatprep.subr.mxu1 %v3014_v41 }
 0x33c   :  { %800 = vmatpush1.msra.mxu0 %v2176_v15  ;;  %1796 = vmatpush3.msra.mxu1 %v2225_v30 }
 0x33d   :  { %801 = vmatprep.subr.mxu0 %v2182_v17  ;;  %1797 = vmatprep.subr.mxu1 %v3014_v41 }
 0x33e   :  { %802 = vmatpush1.msra.mxu0 %v2188_v19  ;;  %1798 = vmatpush3.msra.mxu1 %v2235_v33 }
 0x33f   :  { %803 = vmatprep.subr.mxu0 %v2192_v20  ;;  %1799 = vmatprep.subr.mxu1 %v3014_v41 }
 0x340   :  { %804 = vmatpush1.msra.mxu0 %v2198_v22  ;;  %1800 = vmatpush3.msra.mxu1 %v2245_v36 }
 0x341   :  { %805 = vmatprep.subr.mxu0 %v2202_v23  ;;  %1801 = vmatprep.subr.mxu1 %v3014_v41  ;;  %v767_v23 = vrot.slane %v1487_v10, 2 }
 0x342   :  { %806 = vmatpush1.msra.mxu0 %v2208_v25  ;;  %1802 = vmatpush3.msra.mxu1 %v2255_v39 }
 0x343   :  { %807 = vmatprep.subr.mxu0 %v2212_v26  ;;  %1803 = vmatprep.subr.mxu1 %v3014_v41 }
 0x344   :  { %808 = vmatpush1.msra.mxu0 %v2218_v28  ;;  %1804 = vmatpush3.msra.mxu1 %v2265_v42 }
 0x345   :  { %809 = vmatprep.subr.mxu0 %v2222_v29  ;;  %1805 = vmatprep.subr.mxu1 %v3014_v41 }
 0x346   :  { %810 = vmatpush1.msra.mxu0 %v2228_v31  ;;  %1806 = vmatpush3.msra.mxu1 %v2273_v44 }
 0x347   :  { %811 = vmatprep.subr.mxu0 %v2232_v32  ;;  %1807 = vmatprep.subr.mxu1 %v3014_v41 }
 0x348   :  { %812 = vmatpush1.msra.mxu0 %v2238_v34  ;;  %1808 = vmatpush3.msra.mxu1 %v2279_v45 }
 0x349   :  { %813 = vmatprep.subr.mxu0 %v2242_v35  ;;  %1809 = vmatprep.subr.mxu1 %v3014_v41 }
 0x34a   :  { %814 = vmatpush1.msra.mxu0 %v2248_v37  ;;  %1810 = vmatpush3.msra.mxu1 %v2284_v46 }
 0x34b   :  { %815 = vmatprep.subr.mxu0 %v3029_v2  ;;  %1811 = vmatprep.subr.mxu1 %v3014_v41 }
 0x34c   :  { %816 = vmatpush1.msra.mxu0 %v3030_v3  ;;  %1812 = vmatpush3.msra.mxu1 %v3031_v4 }
 0x34d   :  { %817 = vmatprep.subr.mxu0 %v3032_v5  ;;  %1813 = vmatprep.subr.mxu1 %v3014_v41 }
 0x34e   :  { %818 = vmatpush1.msra.mxu0 %v3033_v6  ;;  %851 = vmatprep.mubr.f32.mxu0 %v3014_v41 }
 0x34f   :  { %1814 = vmatpush3.msra.mxu1 %v3034_v7  ;;  %1815 = vmatprep.mubr.msk.f32.mxu1 %vm2106_vm0, %v3014_v41 }
 0x350   :  { %958 = vmatprep.subr.mxu0 %v3035_v8  ;;  %1818 = vmatprep.subr.mxu1 %v3014_v41  ;;  %v2673_v8 = vld [vmem:[#allocation2 + $0xf0] sm:$0xff] }
 0x3ef   :  { %v682_v9 = vpop.f32.mrf.mxu0  ;;  %v753_v11 = vpop.f32.mrf.mxu1 }
 0x3f0   :  { %v683_v13 = vadd.f32 %v682_v9, %v3036_v12  ;;  %v754_v40 = vadd.f32 %v753_v11, %v2376_v47  ;;  %v2681_v9 = vld [vmem:[#allocation2 + $0xd8] sm:$0xff]  ;;  %v2697_v11 = vld [vmem:[#allocation2 + $0xa8] sm:$0xff] }
 0x3f1   :  { %v684_v15 = vpop.f32.mrf.mxu0  ;;  %v1782_v17 = vpop.f32.mrf.mxu1 }
 0x3f2   :  { %v759_v19 = vadd.f32 %v1487_v10, %v683_v13  ;;  %v685_v22 = vadd.f32 %v684_v15, %v2373_v58  ;;  %v2689_v10 = vld [vmem:[#allocation2 + $0xc0] sm:$0xff]  ;;  %v2705_v13 = vld [vmem:[#allocation2 + $0x90] sm:$0xff]  ;;  %v2713_v15 = vld [vmem:[#allocation2 + $0x78] sm:$0xff] }
 0x3f4   :  { %v1488_v20 = vmul.f32 -1.442695, %v759_v19  ;;  %v769_v25 = vadd.f32 %v767_v23, %v685_v22 }
 0x3f6   :  { %1959 = vpow2.f32 %v1488_v20  ;;  %v1489_v26 = vmul.f32 -1.442695, %v769_v25 }
 0x3f8   :  { %1961 = vpow2.f32 %v1489_v26 }
 0x403   :  { %v1960_v28 = vpop.eup %1959 }
 0x404   :  { %v763_v29 = vadd.f32 1.0, %v1960_v28 }
 0x405   :  { %v1962_v56 = vpop.eup %1961 }
 0x406   :  { %1963 = vrcp.f32 %v763_v29  ;;  %v773_v38 = vadd.f32 1.0, %v1962_v56 }
 0x408   :  { %1965 = vrcp.f32 %v773_v38 }
 0x413   :  { %v1964_v43 = vpop.eup %1963 }
 0x414   :  { %v776_v50 = vmul.f32 %v1964_v43, %v754_v40  ;;  %v2768_v43 = vld [vmem:[#allocation2 + $0x160] sm:$0xff] }
 0x415   :  { %v1966_v55 = vpop.eup %1965 }
 0x416   :  { %v779_v52 = vadd.f32 %v777_v48, %v776_v50  ;;  %v781_v57 = vsub.f32 1.0, %v1966_v55  ;;  %v783_v63 = vmul.f32 %v1966_v55, %v2543_v53  ;;  %v2665_v53 = vld [vmem:[#allocation2 + $0x108] sm:$0xff]  ;;  %v2762_v48 = vld [vmem:[#allocation2 + $0x178] sm:$0xff] }
 0x417   :  { %v2774_v50 = vld [vmem:[#allocation2 + $0x148] sm:$0xff]  ;;  %v2786_v55 = vld [vmem:[#allocation2 + $0x118] sm:$0xff] }
 0x418   :  { %1967 = vtanh.f32 %v779_v52  ;;  %v2780_v52 = vld [vmem:[#allocation2 + $0x130] sm:$0xff] }
 0x425   :  { %v1968_v1 = vpop.eup %1967 }
 0x426   :  { %v782_v0 = vmul.f32 %v1968_v1, %v781_v57  ;;  %v2792_v57 = vld [vmem:[#allocation2 + $0x100] sm:$0xff]  ;;  %v2798_v1 = vld [vmem:[#allocation2 + $0xe8] sm:$0xff] }
 0x428   :  { %v2625_v54 = vadd.f32 %v783_v63, %v782_v0  ;;  %v2804_v0 = vld [vmem:[#allocation2 + $0xd0] sm:$0xff]  ;;  %v2810_v63 = vld [vmem:[#allocation2 + $0xb8] sm:$0xff] }
 0x42a   :  { %1490 = vst [vmem:[%s2980_s3 + $0x6] sm:$0x3] %v2625_v54  ;;  %852 = vmatmul.mubr.f32.vlgmr.msra.gmra.mxu0 %v2625_v54  ;;  %1816 = vmatmul.mubr.f32.vlgmr.msra.gmra.mxu1 %v2625_v54 }
 0x42b   :  { %959 = vmatpush1.msra.mxu0 %v2633_v49  ;;  %1819 = vmatpush3.msra.mxu1 %v2173_v14  ;;  %v2653_v14 = vld [vmem:[#allocation2 + $0x128] sm:$0xff] }
 0x42c   :  { %960 = vmatprep.subr.mxu0 %v2637_v60  ;;  %1820 = vmatprep.subr.mxu1 %v3014_v41 }
 0x42d   :  { %961 = vmatpush1.msra.mxu0 %v2641_v51  ;;  %1821 = vmatpush3.msra.mxu1 %v2179_v16  ;;  %v2661_v16 = vld [vmem:[#allocation2 + $0x110] sm:$0xff] }
 0x42e   :  { %962 = vmatprep.subr.mxu0 %v2645_v61  ;;  %1822 = vmatprep.subr.mxu1 %v3014_v41 }
 0x42f   :  { %963 = vmatpush1.msra.mxu0 %v2649_v59  ;;  %1823 = vmatpush3.msra.mxu1 %v2185_v18  ;;  %v2669_v18 = vld [vmem:[#allocation2 + $0xf8] sm:$0xff] }
 0x430   :  { %964 = vmatprep.subr.mxu0 %v2653_v14  ;;  %1824 = vmatprep.subr.mxu1 %v3014_v41 }
 0x431   :  { %965 = vmatpush1.msra.mxu0 %v2657_v62  ;;  %1825 = vmatpush3.msra.mxu1 %v2195_v21  ;;  %v2677_v21 = vld [vmem:[#allocation2 + $0xe0] sm:$0xff] }
 0x432   :  { %966 = vmatprep.subr.mxu0 %v2661_v16  ;;  %1826 = vmatprep.subr.mxu1 %v3014_v41 }
 0x433   :  { %967 = vmatpush1.msra.mxu0 %v2665_v53  ;;  %1827 = vmatpush3.msra.mxu1 %v2205_v24  ;;  %v2685_v24 = vld [vmem:[#allocation2 + $0xc8] sm:$0xff] }
 0x434   :  { %968 = vmatprep.subr.mxu0 %v2669_v18  ;;  %1828 = vmatprep.subr.mxu1 %v3014_v41 }
 0x435   :  { %969 = vmatpush1.msra.mxu0 %v2673_v8  ;;  %1829 = vmatpush3.msra.mxu1 %v2215_v27  ;;  %v2693_v27 = vld [vmem:[#allocation2 + $0xb0] sm:$0xff] }
 0x436   :  { %970 = vmatprep.subr.mxu0 %v2677_v21  ;;  %1830 = vmatprep.subr.mxu1 %v3014_v41 }
 0x437   :  { %971 = vmatpush1.msra.mxu0 %v2681_v9  ;;  %1831 = vmatpush3.msra.mxu1 %v2225_v30  ;;  %v2701_v30 = vld [vmem:[#allocation2 + $0x98] sm:$0xff] }
 0x438   :  { %972 = vmatprep.subr.mxu0 %v2685_v24  ;;  %1832 = vmatprep.subr.mxu1 %v3014_v41 }
 0x439   :  { %973 = vmatpush1.msra.mxu0 %v2689_v10  ;;  %1833 = vmatpush3.msra.mxu1 %v2235_v33  ;;  %v2709_v33 = vld [vmem:[#allocation2 + $0x80] sm:$0xff] }
 0x43a   :  { %974 = vmatprep.subr.mxu0 %v2693_v27  ;;  %1834 = vmatprep.subr.mxu1 %v3014_v41 }
 0x43b   :  { %975 = vmatpush1.msra.mxu0 %v2697_v11  ;;  %1835 = vmatpush3.msra.mxu1 %v2245_v36  ;;  %v2717_v36 = vld [vmem:[#allocation2 + $0x68] sm:$0xff] }
 0x43c   :  { %976 = vmatprep.subr.mxu0 %v2701_v30  ;;  %1836 = vmatprep.subr.mxu1 %v3014_v41 }
 0x43d   :  { %977 = vmatpush1.msra.mxu0 %v2705_v13  ;;  %1837 = vmatpush3.msra.mxu1 %v2255_v39 }
 0x43e   :  { %978 = vmatprep.subr.mxu0 %v2709_v33  ;;  %1838 = vmatprep.subr.mxu1 %v3014_v41 }
 0x43f   :  { %979 = vmatpush1.msra.mxu0 %v2713_v15  ;;  %1839 = vmatpush3.msra.mxu1 %v2265_v42 }
 0x440   :  { %980 = vmatprep.subr.mxu0 %v2717_v36  ;;  %1840 = vmatprep.subr.mxu1 %v3014_v41 }
 0x441   :  { %981 = vmatpush1.msra.mxu0 %v2228_v31  ;;  %1841 = vmatpush3.msra.mxu1 %v2273_v44  ;;  %v2742_v31 = vld [vmem:[#allocation2 + $0x170] sm:$0xff] }
 0x442   :  { %982 = vmatprep.subr.mxu0 %v2232_v32  ;;  %1842 = vmatprep.subr.mxu1 %v3014_v41 }
 0x443   :  { %983 = vmatpush1.msra.mxu0 %v2238_v34  ;;  %1843 = vmatpush3.msra.mxu1 %v2279_v45  ;;  %v1491_v34 = vld [vmem:[%s2977_s0 + $0x18] sm:$0x3f] }
 0x444   :  { %984 = vmatprep.subr.mxu0 %v2242_v35  ;;  %1844 = vmatprep.subr.mxu1 %v3014_v41  ;;  %v948_v20 = vrot.slane %v1491_v34, 4 }
 0x445   :  { %985 = vmatpush1.msra.mxu0 %v2248_v37  ;;  %1845 = vmatpush3.msra.mxu1 %v2284_v46 }
 0x446   :  { %986 = vmatprep.subr.mxu0 %v3029_v2  ;;  %1846 = vmatprep.subr.mxu1 %v3014_v41  ;;  %v938_v2 = vrot.slane %v1491_v34, 2 }
 0x447   :  { %987 = vmatpush1.msra.mxu0 %v3030_v3  ;;  %1847 = vmatpush3.msra.mxu1 %v3031_v4 }
 0x448   :  { %988 = vmatprep.subr.mxu0 %v3032_v5  ;;  %1848 = vmatprep.subr.mxu1 %v3014_v41 }
 0x449   :  { %989 = vmatpush1.msra.mxu0 %v3033_v6  ;;  %1022 = vmatprep.mubr.f32.mxu0 %v3014_v41 }
 0x44a   :  { %1849 = vmatpush3.msra.mxu1 %v3034_v7  ;;  %1850 = vmatprep.mubr.msk.f32.mxu1 %vm2106_vm0, %v3014_v41 }
 0x44b   :  { %1129 = vmatprep.subr.mxu0 %v2742_v31  ;;  %1853 = vmatprep.subr.mxu1 %v3014_v41 }
 0x4ea   :  { %v853_v32 = vpop.f32.mrf.mxu0  ;;  %v924_v35 = vpop.f32.mrf.mxu1 }
 0x4eb   :  { %v854_v37 = vadd.f32 %v853_v32, %v3036_v12  ;;  %v925_v19 = vadd.f32 %v924_v35, %v2376_v47  ;;  %v2822_v32 = vld [vmem:[#allocation2 + $0x88] sm:$0xff]  ;;  %v2830_v35 = vld [vmem:[#allocation2 + $0x70] sm:$0xff] }
 0x4ec   :  { %v855_v39 = vpop.f32.mrf.mxu0  ;;  %v1817_v42 = vpop.f32.mrf.mxu1 }
 0x4ed   :  { %v930_v44 = vadd.f32 %v1491_v34, %v854_v37  ;;  %v856_v46 = vadd.f32 %v855_v39, %v2373_v58  ;;  %v2827_v34 = vld [vmem:[#allocation2 + $0x60] sm:$0xff]  ;;  %v2833_v37 = vld [vmem:[#allocation2 + $0x50] sm:$0xff]  ;;  %v2837_v39 = vld [vmem:[#allocation2 + $0x48] sm:$0xff] }
 0x4ee   :  { %v2840_v42 = vld [vmem:[#allocation2 + $0x58] sm:$0xff] }
 0x4ef   :  { %v1492_v45 = vmul.f32 -1.442695, %v930_v44  ;;  %v940_v3 = vadd.f32 %v938_v2, %v856_v46  ;;  %v2843_v44 = vld [vmem:[#allocation2 + $0x38] sm:$0xff]  ;;  %v2850_v46 = vld [vmem:[#allocation2 + $0x40] sm:$0xff] }
 0x4f0   :  { %v2853_v2 = vld [vmem:[#allocation2 + $0x20] sm:$0xff] }
 0x4f1   :  { %1969 = vpow2.f32 %v1492_v45  ;;  %v1493_v4 = vmul.f32 -1.442695, %v940_v3  ;;  %v2847_v45 = vld [vmem:[#allocation2 + $0x30] sm:$0xff]  ;;  %3037 = vst [vmem:[#allocation9_spill] sm:$0xff] %v2853_v2  ;;  %v2857_v3 = vld [vmem:[#allocation2 + $0x18] sm:$0xff] }
 0x4f2   :  { %3038 = vst [vmem:[#allocation10_spill] sm:$0xff] %v2857_v3 }
 0x4f3   :  { %1971 = vpow2.f32 %v1493_v4  ;;  %v2860_v4 = vld [vmem:[#allocation2 + $0x28] sm:$0xff] }
 0x4f4   :  { %3039 = vst [vmem:[#allocation13_spill] sm:$0xff] %v2860_v4 }
 0x4fe   :  { %v1970_v5 = vpop.eup %1969 }
 0x4ff   :  { %v934_v6 = vadd.f32 1.0, %v1970_v5  ;;  %v2863_v5 = vld [vmem:[#allocation2 + $0x8] sm:$0xff] }
 0x500   :  { %v1972_v7 = vpop.eup %1971  ;;  %3040 = vst [vmem:[#allocation11_spill] sm:$0xff] %v2863_v5 }
 0x501   :  { %1973 = vrcp.f32 %v934_v6  ;;  %v944_v17 = vadd.f32 1.0, %v1972_v7  ;;  %v2867_v6 = vld [vmem:[#allocation2] sm:$0xff]  ;;  %v2871_v7 = vld [vmem:[#allocation2 + $0x10] sm:$0xff] }
 0x502   :  { %3041 = vst [vmem:[#allocation12_spill] sm:$0xff] %v2867_v6  ;;  %3042 = vst [vmem:[#allocation14_spill] sm:$0xff] %v2871_v7 }
 0x503   :  { %1975 = vrcp.f32 %v944_v17 }
 0x50e   :  { %v1974_v22 = vpop.eup %1973 }
 0x50f   :  { %v947_v23 = vmul.f32 %v1974_v22, %v925_v19  ;;  %v1495_v19 = vld [vmem:[%s2977_s0 + $0x1e] sm:$0x3f] }
 0x510   :  { %v1976_v26 = vpop.eup %1975 }
 0x511   :  { %v950_v25 = vadd.f32 %v948_v20, %v947_v23  ;;  %v952_v28 = vsub.f32 1.0, %v1976_v26  ;;  %v954_v38 = vmul.f32 %v1976_v26, %v2625_v54  ;;  %v2816_v54 = vld [vmem:[#allocation2 + $0xa0] sm:$0xff] }
 0x513   :  { %1977 = vtanh.f32 %v950_v25 }
 0x520   :  { %v1978_v29 = vpop.eup %1977 }
 0x521   :  { %v953_v56 = vmul.f32 %v1978_v29, %v952_v28 }
 0x523   :  { %v2753_v40 = vadd.f32 %v954_v38, %v953_v56  ;;  %v1109_v56 = vrot.slane %v1495_v19, 2 }
 0x525   :  { %1494 = vst [vmem:[%s2980_s3 + $0x8] sm:$0x3] %v2753_v40  ;;  %1023 = vmatmul.mubr.f32.vlgmr.msra.gmra.mxu0 %v2753_v40  ;;  %1851 = vmatmul.mubr.f32.vlgmr.msra.gmra.mxu1 %v2753_v40 }
 0x526   :  { %1130 = vmatpush1.msra.mxu0 %v2633_v49  ;;  %1854 = vmatpush3.msra.mxu1 %v2762_v48 }
 0x527   :  { %1131 = vmatprep.subr.mxu0 %v2637_v60  ;;  %1855 = vmatprep.subr.mxu1 %v3014_v41 }
 0x528   :  { %1132 = vmatpush1.msra.mxu0 %v2641_v51  ;;  %1856 = vmatpush3.msra.mxu1 %v2768_v43 }
 0x529   :  { %1133 = vmatprep.subr.mxu0 %v2645_v61  ;;  %1857 = vmatprep.subr.mxu1 %v3014_v41 }
 0x52a   :  { %1134 = vmatpush1.msra.mxu0 %v2649_v59  ;;  %1858 = vmatpush3.msra.mxu1 %v2774_v50 }
 0x52b   :  { %1135 = vmatprep.subr.mxu0 %v2653_v14  ;;  %1859 = vmatprep.subr.mxu1 %v3014_v41 }
 0x52c   :  { %1136 = vmatpush1.msra.mxu0 %v2657_v62  ;;  %1860 = vmatpush3.msra.mxu1 %v2780_v52 }
 0x52d   :  { %1137 = vmatprep.subr.mxu0 %v2661_v16  ;;  %1861 = vmatprep.subr.mxu1 %v3014_v41 }
 0x52e   :  { %1138 = vmatpush1.msra.mxu0 %v2665_v53  ;;  %1862 = vmatpush3.msra.mxu1 %v2786_v55 }
 0x52f   :  { %1139 = vmatprep.subr.mxu0 %v2669_v18  ;;  %1863 = vmatprep.subr.mxu1 %v3014_v41 }
 0x530   :  { %1140 = vmatpush1.msra.mxu0 %v2673_v8  ;;  %1864 = vmatpush3.msra.mxu1 %v2792_v57 }
 0x531   :  { %1141 = vmatprep.subr.mxu0 %v2677_v21  ;;  %1865 = vmatprep.subr.mxu1 %v3014_v41 }
 0x532   :  { %1142 = vmatpush1.msra.mxu0 %v2681_v9  ;;  %1866 = vmatpush3.msra.mxu1 %v2798_v1 }
 0x533   :  { %1143 = vmatprep.subr.mxu0 %v2685_v24  ;;  %1867 = vmatprep.subr.mxu1 %v3014_v41 }
 0x534   :  { %1144 = vmatpush1.msra.mxu0 %v2689_v10  ;;  %1868 = vmatpush3.msra.mxu1 %v2804_v0 }
 0x535   :  { %1145 = vmatprep.subr.mxu0 %v2693_v27  ;;  %1869 = vmatprep.subr.mxu1 %v3014_v41 }
 0x536   :  { %1146 = vmatpush1.msra.mxu0 %v2697_v11  ;;  %1870 = vmatpush3.msra.mxu1 %v2810_v63 }
 0x537   :  { %1147 = vmatprep.subr.mxu0 %v2701_v30  ;;  %1871 = vmatprep.subr.mxu1 %v3014_v41 }
 0x538   :  { %1148 = vmatpush1.msra.mxu0 %v2705_v13  ;;  %1872 = vmatpush3.msra.mxu1 %v2816_v54 }
 0x539   :  { %1149 = vmatprep.subr.mxu0 %v2709_v33  ;;  %1873 = vmatprep.subr.mxu1 %v3014_v41 }
 0x53a   :  { %1150 = vmatpush1.msra.mxu0 %v2713_v15  ;;  %1874 = vmatpush3.msra.mxu1 %v2822_v32 }
 0x53b   :  { %1151 = vmatprep.subr.mxu0 %v2717_v36  ;;  %1875 = vmatprep.subr.mxu1 %v3014_v41 }
 0x53c   :  { %1152 = vmatpush1.msra.mxu0 %v2827_v34  ;;  %1876 = vmatpush3.msra.mxu1 %v2830_v35 }
 0x53d   :  { %1153 = vmatprep.subr.mxu0 %v2833_v37  ;;  %1877 = vmatprep.subr.mxu1 %v3014_v41 }
 0x53e   :  { %1154 = vmatpush1.msra.mxu0 %v2837_v39  ;;  %1878 = vmatpush3.msra.mxu1 %v2840_v42 }
 0x53f   :  { %1155 = vmatprep.subr.mxu0 %v2843_v44  ;;  %1879 = vmatprep.subr.mxu1 %v3014_v41 }
 0x540   :  { %1156 = vmatpush1.msra.mxu0 %v2847_v45  ;;  %1880 = vmatpush3.msra.mxu1 %v2850_v46 }
 0x541   :  { %1157 = vmatprep.subr.mxu0 %v2853_v2  ;;  %1881 = vmatprep.subr.mxu1 %v3014_v41  ;;  %v1119_v2 = vrot.slane %v1495_v19, 4 }
 0x542   :  { %1158 = vmatpush1.msra.mxu0 %v2857_v3  ;;  %1882 = vmatpush3.msra.mxu1 %v2860_v4 }
 0x543   :  { %1159 = vmatprep.subr.mxu0 %v2863_v5  ;;  %1883 = vmatprep.subr.mxu1 %v3014_v41 }
 0x544   :  { %1160 = vmatpush1.msra.mxu0 %v2867_v6  ;;  %1193 = vmatprep.mubr.f32.mxu0 %v3014_v41 }
 0x545   :  { %1884 = vmatpush3.msra.mxu1 %v2871_v7  ;;  %1885 = vmatprep.mubr.msk.f32.mxu1 %vm2106_vm0, %v3014_v41 }
 0x546   :  { %1300 = vmatprep.subr.mxu0 %v2742_v31  ;;  %1888 = vmatprep.subr.mxu1 %v3014_v41 }
 0x5e5   :  { %v1024_v17 = vpop.f32.mrf.mxu0  ;;  %v1095_v20 = vpop.f32.mrf.mxu1 }
 0x5e6   :  { %v1025_v22 = vadd.f32 %v1024_v17, %v3036_v12  ;;  %v1096_v3 = vadd.f32 %v1095_v20, %v2376_v47 }
 0x5e7   :  { %v1026_v23 = vpop.f32.mrf.mxu0  ;;  %v1852_v25 = vpop.f32.mrf.mxu1 }
 0x5e8   :  { %v1101_v26 = vadd.f32 %v1495_v19, %v1025_v22  ;;  %v1027_v29 = vadd.f32 %v1026_v23, %v2373_v58 }
 0x5ea   :  { %v1496_v28 = vmul.f32 -1.442695, %v1101_v26  ;;  %v1111_v38 = vadd.f32 %v1109_v56, %v1027_v29 }
 0x5ec   :  { %1979 = vpow2.f32 %v1496_v28  ;;  %v1497_v31 = vmul.f32 -1.442695, %v1111_v38 }
 0x5ee   :  { %1981 = vpow2.f32 %v1497_v31 }
 0x5f9   :  { %v1980_v7 = vpop.eup %1979 }
 0x5fa   :  { %v1105_v6 = vadd.f32 1.0, %v1980_v7 }
 0x5fb   :  { %v1982_v5 = vpop.eup %1981 }
 0x5fc   :  { %1983 = vrcp.f32 %v1105_v6  ;;  %v1115_v4 = vadd.f32 1.0, %v1982_v5 }
 0x5fe   :  { %1985 = vrcp.f32 %v1115_v4 }
 0x609   :  { %v1984_v17 = vpop.eup %1983 }
 0x60a   :  { %v1118_v12 = vmul.f32 %v1984_v17, %v1096_v3 }
 0x60b   :  { %v1986_v25 = vpop.eup %1985 }
 0x60c   :  { %v1121_v22 = vadd.f32 %v1119_v2, %v1118_v12  ;;  %v1123_v23 = vsub.f32 1.0, %v1986_v25  ;;  %v1125_v29 = vmul.f32 %v1986_v25, %v2753_v40  ;;  %v3043_v12 = vld [vmem:[#allocation9_spill] sm:$0xff] }
 0x60e   :  { %1987 = vtanh.f32 %v1121_v22 }
 0x61b   :  { %v1988_v26 = vpop.eup %1987 }
 0x61c   :  { %v1124_v28 = vmul.f32 %v1988_v26, %v1123_v23 }
 0x61e   :  { %v2885_v56 = vadd.f32 %v1125_v29, %v1124_v28 }
 0x620   :  { %1498 = vst [vmem:[%s2980_s3 + $0xa] sm:$0x3] %v2885_v56  ;;  %1194 = vmatmul.mubr.f32.vlgmr.msra.gmra.mxu0 %v2885_v56  ;;  %1886 = vmatmul.mubr.f32.vlgmr.msra.gmra.mxu1 %v2885_v56 }
 0x621   :  { %1301 = vmatpush1.msra.mxu0 %v2633_v49  ;;  %1889 = vmatpush3.msra.mxu1 %v2762_v48  ;;  %v3044_v49 = vld [vmem:[#allocation10_spill] sm:$0xff] }
 0x622   :  { %1302 = vmatprep.subr.mxu0 %v2637_v60  ;;  %1890 = vmatprep.subr.mxu1 %v3014_v41  ;;  %v3045_v60 = vld [vmem:[#allocation13_spill] sm:$0xff] }
 0x623   :  { %1303 = vmatpush1.msra.mxu0 %v2641_v51  ;;  %1891 = vmatpush3.msra.mxu1 %v2768_v43  ;;  %v3046_v51 = vld [vmem:[#allocation11_spill] sm:$0xff] }
 0x624   :  { %1304 = vmatprep.subr.mxu0 %v2645_v61  ;;  %1892 = vmatprep.subr.mxu1 %v3014_v41  ;;  %v3047_v61 = vld [vmem:[#allocation12_spill] sm:$0xff] }
 0x625   :  { %1305 = vmatpush1.msra.mxu0 %v2649_v59  ;;  %1893 = vmatpush3.msra.mxu1 %v2774_v50  ;;  %v3048_v59 = vld [vmem:[#allocation14_spill] sm:$0xff] }
 0x626   :  { %1306 = vmatprep.subr.mxu0 %v2653_v14  ;;  %1894 = vmatprep.subr.mxu1 %v3014_v41 }
 0x627   :  { %1307 = vmatpush1.msra.mxu0 %v2657_v62  ;;  %1895 = vmatpush3.msra.mxu1 %v2780_v52  ;;  %v1499_v62 = vld [vmem:[%s2977_s0 + $0x24] sm:$0x3f] }
 0x628   :  { %1308 = vmatprep.subr.mxu0 %v2661_v16  ;;  %1896 = vmatprep.subr.mxu1 %v3014_v41  ;;  %v1290_v40 = vrot.slane %v1499_v62, 4 }
 0x629   :  { %1309 = vmatpush1.msra.mxu0 %v2665_v53  ;;  %1897 = vmatpush3.msra.mxu1 %v2786_v55  ;;  %v3049_v53 = vld [vmem:[#allocation15_spill] sm:$0xff] }
 0x62a   :  { %1310 = vmatprep.subr.mxu0 %v2669_v18  ;;  %1898 = vmatprep.subr.mxu1 %v3014_v41 }
 0x62b   :  { %1311 = vmatpush1.msra.mxu0 %v2673_v8  ;;  %1899 = vmatpush3.msra.mxu1 %v2792_v57 }
 0x62c   :  { %1312 = vmatprep.subr.mxu0 %v2677_v21  ;;  %1900 = vmatprep.subr.mxu1 %v3014_v41 }
 0x62d   :  { %1313 = vmatpush1.msra.mxu0 %v2681_v9  ;;  %1901 = vmatpush3.msra.mxu1 %v2798_v1 }
 0x62e   :  { %1314 = vmatprep.subr.mxu0 %v2685_v24  ;;  %1902 = vmatprep.subr.mxu1 %v3014_v41 }
 0x62f   :  { %1315 = vmatpush1.msra.mxu0 %v2689_v10  ;;  %1903 = vmatpush3.msra.mxu1 %v2804_v0 }
 0x630   :  { %1316 = vmatprep.subr.mxu0 %v2693_v27  ;;  %1904 = vmatprep.subr.mxu1 %v3014_v41  ;;  %v1280_v27 = vrot.slane %v1499_v62, 2 }
 0x631   :  { %1317 = vmatpush1.msra.mxu0 %v2697_v11  ;;  %1905 = vmatpush3.msra.mxu1 %v2810_v63 }
 0x632   :  { %1318 = vmatprep.subr.mxu0 %v2701_v30  ;;  %1906 = vmatprep.subr.mxu1 %v3014_v41 }
 0x633   :  { %1319 = vmatpush1.msra.mxu0 %v2705_v13  ;;  %1907 = vmatpush3.msra.mxu1 %v2816_v54 }
 0x634   :  { %1320 = vmatprep.subr.mxu0 %v2709_v33  ;;  %1908 = vmatprep.subr.mxu1 %v3014_v41 }
 0x635   :  { %1321 = vmatpush1.msra.mxu0 %v2713_v15  ;;  %1909 = vmatpush3.msra.mxu1 %v2822_v32  ;;  %v1503_v32 = vld [vmem:[%s2977_s0 + $0x2a] sm:$0x3f] }
 0x636   :  { %1322 = vmatprep.subr.mxu0 %v2717_v36  ;;  %1910 = vmatprep.subr.mxu1 %v3014_v41  ;;  %v1461_v20 = vrot.slane %v1503_v32, 4 }
 0x637   :  { %1323 = vmatpush1.msra.mxu0 %v2827_v34  ;;  %1911 = vmatpush3.msra.mxu1 %v2830_v35 }
 0x638   :  { %1324 = vmatprep.subr.mxu0 %v2833_v37  ;;  %1912 = vmatprep.subr.mxu1 %v3014_v41 }
 0x639   :  { %1325 = vmatpush1.msra.mxu0 %v2837_v39  ;;  %1913 = vmatpush3.msra.mxu1 %v2840_v42 }
 0x63a   :  { %1326 = vmatprep.subr.mxu0 %v2843_v44  ;;  %1914 = vmatprep.subr.mxu1 %v3014_v41 }
 0x63b   :  { %1327 = vmatpush1.msra.mxu0 %v2847_v45  ;;  %1915 = vmatpush3.msra.mxu1 %v2850_v46  ;;  %v1451_v46 = vrot.slane %v1503_v32, 2 }
 0x63c   :  { %1328 = vmatprep.subr.mxu0 %v3043_v12  ;;  %1916 = vmatprep.subr.mxu1 %v3014_v41 }
 0x63d   :  { %1329 = vmatpush1.msra.mxu0 %v3044_v49  ;;  %1917 = vmatpush3.msra.mxu1 %v3045_v60 }
 0x63e   :  { %1330 = vmatprep.subr.mxu0 %v3046_v51  ;;  %1918 = vmatprep.subr.mxu1 %v3014_v41 }
 0x63f   :  { %1331 = vmatpush1.msra.mxu0 %v3047_v61  ;;  %1364 = vmatprep.mubr.f32.mxu0 %v3014_v41 }
 0x640   :  { %1919 = vmatpush3.msra.mxu1 %v3048_v59  ;;  %1920 = vmatprep.mubr.msk.f32.mxu1 %vm2106_vm0, %v3014_v41 }
 0x6e0   :  { %v1195_v14 = vpop.f32.mrf.mxu0  ;;  %v1266_v16 = vpop.f32.mrf.mxu1 }
 0x6e1   :  { %v1196_v18 = vadd.f32 %v1195_v14, %v3049_v53  ;;  %v1267_v36 = vadd.f32 %v1266_v16, %v2376_v47 }
 0x6e2   :  { %v1197_v8 = vpop.f32.mrf.mxu0  ;;  %v1887_v21 = vpop.f32.mrf.mxu1 }
 0x6e3   :  { %v1272_v9 = vadd.f32 %v1499_v62, %v1196_v18  ;;  %v1198_v10 = vadd.f32 %v1197_v8, %v2373_v58 }
 0x6e5   :  { %v1500_v24 = vmul.f32 -1.442695, %v1272_v9  ;;  %v1282_v11 = vadd.f32 %v1280_v27, %v1198_v10 }
 0x6e7   :  { %1989 = vpow2.f32 %v1500_v24  ;;  %v1501_v30 = vmul.f32 -1.442695, %v1282_v11 }
 0x6e9   :  { %1991 = vpow2.f32 %v1501_v30 }
 0x6f4   :  { %v1990_v41 = vpop.eup %1989 }
 0x6f5   :  { %v1276_v13 = vadd.f32 1.0, %v1990_v41 }
 0x6f6   :  { %v1992_v33 = vpop.eup %1991 }
 0x6f7   :  { %1993 = vrcp.f32 %v1276_v13  ;;  %v1286_v15 = vadd.f32 1.0, %v1992_v33 }
 0x6f9   :  { %1995 = vrcp.f32 %v1286_v15 }
 0x704   :  { %v1994_v48 = vpop.eup %1993 }
 0x705   :  { %v1289_v43 = vmul.f32 %v1994_v48, %v1267_v36 }
 0x706   :  { %v1996_v52 = vpop.eup %1995 }
 0x707   :  { %v1292_v50 = vadd.f32 %v1290_v40, %v1289_v43  ;;  %v1294_v55 = vsub.f32 1.0, %v1996_v52  ;;  %v1296_v0 = vmul.f32 %v1996_v52, %v2885_v56 }
 0x709   :  { %1997 = vtanh.f32 %v1292_v50 }
 0x716   :  { %v1998_v57 = vpop.eup %1997 }
 0x717   :  { %v1295_v1 = vmul.f32 %v1998_v57, %v1294_v55 }
 0x719   :  { %v1297_v63 = vadd.f32 %v1296_v0, %v1295_v1 }
 0x71b   :  { %1502 = vst [vmem:[%s2980_s3 + $0xc] sm:$0x3] %v1297_v63  ;;  %1365 = vmatmul.mubr.f32.vlgmr.msra.gmra.mxu0 %v1297_v63  ;;  %1921 = vmatmul.mubr.f32.vlgmr.msra.gmra.mxu1 %v1297_v63 }
 0x7db   :  { %v1366_v54 = vpop.f32.mrf.mxu0  ;;  %v1437_v34 = vpop.f32.mrf.mxu1 }
 0x7dc   :  { %v1367_v35 = vadd.f32 %v1366_v54, %v3049_v53  ;;  %v1438_v19 = vadd.f32 %v1437_v34, %v2376_v47 }
 0x7dd   :  { %v1368_v37 = vpop.f32.mrf.mxu0  ;;  %v1922_v39 = vpop.f32.mrf.mxu1 }
 0x7de   :  { %v1443_v42 = vadd.f32 %v1503_v32, %v1367_v35  ;;  %v1369_v45 = vadd.f32 %v1368_v37, %v2373_v58 }
 0x7e0   :  { %v1504_v44 = vmul.f32 -1.442695, %v1443_v42  ;;  %v1453_v2 = vadd.f32 %v1451_v46, %v1369_v45 }
 0x7e2   :  { %1999 = vpow2.f32 %v1504_v44  ;;  %v1505_v3 = vmul.f32 -1.442695, %v1453_v2 }
 0x7e4   :  { %2001 = vpow2.f32 %v1505_v3 }
 0x7ef   :  { %v2000_v4 = vpop.eup %1999 }
 0x7f0   :  { %v1447_v5 = vadd.f32 1.0, %v2000_v4 }
 0x7f1   :  { %v2002_v6 = vpop.eup %2001 }
 0x7f2   :  { %2003 = vrcp.f32 %v1447_v5  ;;  %v1457_v7 = vadd.f32 1.0, %v2002_v6 }
 0x7f4   :  { %2005 = vrcp.f32 %v1457_v7 }
 0x7ff   :  { %v2004_v38 = vpop.eup %2003 }
 0x800   :  { %v1460_v31 = vmul.f32 %v2004_v38, %v1438_v19 }
 0x801   :  { %v2006_v22 = vpop.eup %2005 }
 0x802   :  { %v1463_v17 = vadd.f32 %v1461_v20, %v1460_v31  ;;  %v1465_v58 = vsub.f32 1.0, %v2006_v22  ;;  %v1467_v26 = vmul.f32 %v2006_v22, %v1297_v63 }
 0x804   :  { %2007 = vtanh.f32 %v1463_v17 }
 0x811   :  { %v2008_v25 = vpop.eup %2007 }
 0x812   :  { %v1466_v23 = vmul.f32 %v2008_v25, %v1465_v58 }
 0x814   :  { %v1468_v28 = vadd.f32 %v1467_v26, %v1466_v23 }
 0x816   :  { %1506 = vst [vmem:[%s2980_s3 + $0xe] sm:$0x3] %v1468_v28 }
 0x817   :  { %1475 = vsyncpa [#allocation3], 1 }
 0x818   :  { %1476 = vsyncpa [#allocation5], 1 }

// kernel: gru_forward.8
= control target key start
LH: loop header
LB: loop body
LE: loop exit
PB: predicated region body
PF: predicated region fallthrough
CT: control target
= control target key end

     0   :  { %v3186_v3 = vmov 0.0   ;;  %vm2026_vm0 = vmmov 0   ;;  %v64_v49 = vlaneseq  ;;  %s3182_s1 = inlined_call_operand.vmem [shape: f32[128,384], index: 1, kind: input, shape index: {}]   ;;  %s3183_s2 = inlined_call_operand.vmem [shape: f32[1,384], index: 2, kind: input, shape index: {}]   ;;  %s3184_s0 = inlined_call_operand.vmem [shape: f32[8,2,384], index: 0, kind: input, shape index: {}]   ;;  %s3185_s3 = inlined_call_operand.vmem [shape: f32[8,2,128], index: 3, kind: output, shape index: {}]  }
   0x1   :  { %v2050_v0 = vld [vmem:[%s3182_s1 + $0x170] sm:$0xff]  ;;  %v2055_v1 = vld [vmem:[%s3182_s1 + $0x168] sm:$0xff]  ;;  %v2060_v2 = vld [vmem:[%s3182_s1 + $0x158] sm:$0xff]  ;;  %143 = vmatprep.mubr.f32.mxu0 %v3186_v3  ;;  %1615 = vmatprep.subr.mxu1 %v3186_v3 }
   0x2   :  { %3211 = vst [vmem:[#allocation2_spill] sm:$0xff] %v2050_v0  ;;  %79 = vmatprep.subr.mxu0 %v2050_v0  ;;  %v2068_v4 = vld [vmem:[%s3182_s1 + $0x150] sm:$0xff]  ;;  %1647 = vmatprep.mubr.msk.f32.mxu1 %vm2026_vm0, %v3186_v3  ;;  %v2076_v5 = vld [vmem:[%s3182_s1 + $0x140] sm:$0xff]  ;;  %v2082_v6 = vld [vmem:[%s3182_s1 + $0x138] sm:$0xff]  ;;  %v65_v50 = vshrl.u32 %v64_v49, 7 }
   0x3   :  { %80 = vmatpush1.msra.mxu0 %v2055_v1  ;;  %v2088_v7 = vld [vmem:[%s3182_s1 + $0x128] sm:$0xff]  ;;  %v2094_v8 = vld [vmem:[%s3182_s1 + $0x120] sm:$0xff]  ;;  %v2100_v9 = vld [vmem:[%s3182_s1 + $0x110] sm:$0xff] }
   0x4   :  { %81 = vmatprep.subr.mxu0 %v2060_v2  ;;  %v2106_v10 = vld [vmem:[%s3182_s1 + $0x108] sm:$0xff]  ;;  %v2112_v11 = vld [vmem:[%s3182_s1 + $0xf8] sm:$0xff]  ;;  %v2118_v12 = vld [vmem:[%s3182_s1 + $0xf0] sm:$0xff]  ;;  %v66_v51 = vsub.s32 0, %v65_v50  ;;  %v70_v54 = vsub.s32 1, %v65_v50 }
   0x5   :  { %82 = vmatpush1.msra.mxu0 %v2068_v4  ;;  %v2124_v13 = vld [vmem:[%s3182_s1 + $0xe0] sm:$0xff]  ;;  %v2129_v14 = vld [vmem:[%s3182_s1 + $0x178] sm:$0xff]  ;;  %v2147_v17 = vld [vmem:[%s3182_s1 + $0xc8] sm:$0xff] }
   0x6   :  { %83 = vmatprep.subr.mxu0 %v2076_v5  ;;  %v2135_v15 = vld [vmem:[%s3182_s1 + $0xd8] sm:$0xff]  ;;  %1616 = vmatpush3.msra.mxu1 %v2129_v14  ;;  %v2141_v16 = vld [vmem:[%s3182_s1 + $0x160] sm:$0xff]  ;;  %v2153_v18 = vld [vmem:[%s3182_s1 + $0x148] sm:$0xff] }
   0x7   :  { %84 = vmatpush1.msra.mxu0 %v2082_v6  ;;  %1617 = vmatprep.subr.mxu1 %v3186_v3  ;;  %v2159_v19 = vld [vmem:[%s3182_s1 + $0xc0] sm:$0xff]  ;;  %v2166_v20 = vld [vmem:[%s3182_s1 + $0xb0] sm:$0xff]  ;;  %v2178_v22 = vld [vmem:[%s3182_s1 + $0xa8] sm:$0xff] }
   0x8   :  { %85 = vmatprep.subr.mxu0 %v2088_v7  ;;  %1618 = vmatpush3.msra.mxu1 %v2141_v16  ;;  %v2172_v21 = vld [vmem:[%s3182_s1 + $0x130] sm:$0xff]  ;;  %v2185_v23 = vld [vmem:[%s3182_s1 + $0x98] sm:$0xff]  ;;  %v2204_v26 = vld [vmem:[%s3182_s1 + $0x80] sm:$0xff] }
   0x9   :  { %86 = vmatpush1.msra.mxu0 %v2094_v8  ;;  %1619 = vmatprep.subr.mxu1 %v3186_v3  ;;  %v2191_v24 = vld [vmem:[%s3182_s1 + $0x118] sm:$0xff]  ;;  %v2197_v25 = vld [vmem:[%s3182_s1 + $0x90] sm:$0xff]  ;;  %v2210_v27 = vld [vmem:[%s3182_s1 + $0x100] sm:$0xff] }
   0xa   :  { %87 = vmatprep.subr.mxu0 %v2100_v9  ;;  %1620 = vmatpush3.msra.mxu1 %v2153_v18  ;;  %v2216_v28 = vld [vmem:[%s3182_s1 + $0x78] sm:$0xff]  ;;  %v2223_v29 = vld [vmem:[%s3182_s1 + $0x68] sm:$0xff]  ;;  %v2235_v31 = vld [vmem:[%s3182_s1 + $0x60] sm:$0xff] }
   0xb   :  { %88 = vmatpush1.msra.mxu0 %v2106_v10  ;;  %1621 = vmatprep.subr.mxu1 %v3186_v3  ;;  %v2229_v30 = vld [vmem:[%s3182_s1 + $0xe8] sm:$0xff]  ;;  %v2242_v32 = vld [vmem:[%s3182_s1 + $0x50] sm:$0xff]  ;;  %v2261_v35 = vld [vmem:[%s3182_s1 + $0x38] sm:$0xff] }
   0xc   :  { %89 = vmatprep.subr.mxu0 %v2112_v11  ;;  %1622 = vmatpush3.msra.mxu1 %v2172_v21  ;;  %v2248_v33 = vld [vmem:[%s3182_s1 + $0xd0] sm:$0xff]  ;;  %v2254_v34 = vld [vmem:[%s3182_s1 + $0x48] sm:$0xff]  ;;  %v2267_v36 = vld [vmem:[%s3182_s1 + $0xb8] sm:$0xff] }
   0xd   :  { %90 = vmatpush1.msra.mxu0 %v2118_v12  ;;  %1623 = vmatprep.subr.mxu1 %v3186_v3  ;;  %v2273_v37 = vld [vmem:[%s3182_s1 + $0x30] sm:$0xff]  ;;  %v2280_v38 = vld [vmem:[%s3182_s1 + $0x20] sm:$0xff]  ;;  %v2292_v40 = vld [vmem:[%s3182_s1 + $0x18] sm:$0xff] }
   0xe   :  { %91 = vmatprep.subr.mxu0 %v2124_v13  ;;  %1624 = vmatpush3.msra.mxu1 %v2191_v24  ;;  %3212 = vst [vmem:[#allocation3_spill] sm:$0xff] %v2280_v38  ;;  %v2286_v39 = vld [vmem:[%s3182_s1 + $0xa0] sm:$0xff]  ;;  %3213 = vst [vmem:[#allocation4_spill] sm:$0xff] %v2292_v40  ;;  %v2299_v41 = vld [vmem:[%s3182_s1 + $0x8] sm:$0xff] }
   0xf   :  { %92 = vmatpush1.msra.mxu0 %v2135_v15  ;;  %1625 = vmatprep.subr.mxu1 %v3186_v3  ;;  %3214 = vst [vmem:[#allocation5_spill] sm:$0xff] %v2299_v41  ;;  %v2305_v42 = vld [vmem:[%s3182_s1 + $0x88] sm:$0xff]  ;;  %v2311_v43 = vld [vmem:[%s3182_s1] sm:$0xff]  ;;  %v2319_v44 = vld [vmem:[%s3182_s1 + $0x70] sm:$0xff] }
  0x10   :  { %93 = vmatprep.subr.mxu0 %v2147_v17  ;;  %1626 = vmatpush3.msra.mxu1 %v2210_v27  ;;  %3215 = vst [vmem:[#allocation6_spill] sm:$0xff] %v2311_v43  ;;  %v2328_v45 = vld [vmem:[%s3182_s1 + $0x58] sm:$0xff]  ;;  %v2336_v46 = vld [vmem:[%s3182_s1 + $0x40] sm:$0xff]  ;;  %v2345_v47 = vld [vmem:[%s3182_s1 + $0x28] sm:$0xff] }
  0x11   :  { %94 = vmatpush1.msra.mxu0 %v2159_v19  ;;  %1627 = vmatprep.subr.mxu1 %v3186_v3  ;;  %3216 = vst [vmem:[#allocation7_spill] sm:$0xff] %v2345_v47  ;;  %v2354_v48 = vld [vmem:[%s3182_s1 + $0x10] sm:$0xff]  ;;  %v62_v52 = vld [vmem:[%s3183_s2] sm:$0x7] }
  0x12   :  { %95 = vmatprep.subr.mxu0 %v2166_v20  ;;  %1628 = vmatpush3.msra.mxu1 %v2229_v30  ;;  %3217 = vst [vmem:[#allocation8_spill] sm:$0xff] %v2354_v48  ;;  %v2428_v53 = vrot.slane %v62_v52, %v66_v51  ;;  %v220_v56 = vld [vmem:[%s3184_s0] sm:$0x3f]  ;;  %v2434_v58 = vrot.slane %v62_v52, %v70_v54 }
  0x13   :  { %96 = vmatpush1.msra.mxu0 %v2178_v22  ;;  %1629 = vmatprep.subr.mxu1 %v3186_v3  ;;  %v229_v63 = vrot.slane %v220_v56, 2 }
  0x14   :  { %97 = vmatprep.subr.mxu0 %v2185_v23  ;;  %1630 = vmatpush3.msra.mxu1 %v2248_v33  ;;  %3218 = vst [vmem:[#allocation9_spill] sm:$0xff] %v2428_v53 }
  0x15   :  { %98 = vmatpush1.msra.mxu0 %v2197_v25  ;;  %1631 = vmatprep.subr.mxu1 %v3186_v3 }
  0x16   :  { %99 = vmatprep.subr.mxu0 %v2204_v26  ;;  %1632 = vmatpush3.msra.mxu1 %v2267_v36 }
  0x17   :  { %100 = vmatpush1.msra.mxu0 %v2216_v28  ;;  %1633 = vmatprep.subr.mxu1 %v3186_v3 }
  0x18   :  { %101 = vmatprep.subr.mxu0 %v2223_v29  ;;  %1634 = vmatpush3.msra.mxu1 %v2286_v39 }
  0x19   :  { %102 = vmatpush1.msra.mxu0 %v2235_v31  ;;  %1635 = vmatprep.subr.mxu1 %v3186_v3 }
  0x1a   :  { %103 = vmatprep.subr.mxu0 %v2242_v32  ;;  %1636 = vmatpush3.msra.mxu1 %v2305_v42 }
  0x1b   :  { %104 = vmatpush1.msra.mxu0 %v2254_v34  ;;  %1637 = vmatprep.subr.mxu1 %v3186_v3 }
  0x1c   :  { %105 = vmatprep.subr.mxu0 %v2261_v35  ;;  %1638 = vmatpush3.msra.mxu1 %v2319_v44 }
  0x1d   :  { %106 = vmatpush1.msra.mxu0 %v2273_v37  ;;  %1639 = vmatprep.subr.mxu1 %v3186_v3 }
  0x1e   :  { %107 = vmatprep.subr.mxu0 %v2280_v38  ;;  %1640 = vmatpush3.msra.mxu1 %v2328_v45 }
  0x1f   :  { %108 = vmatpush1.msra.mxu0 %v2292_v40  ;;  %1641 = vmatprep.subr.mxu1 %v3186_v3 }
  0x20   :  { %109 = vmatprep.subr.mxu0 %v2299_v41  ;;  %1642 = vmatpush3.msra.mxu1 %v2336_v46 }
  0x21   :  { %110 = vmatpush1.msra.mxu0 %v2311_v43  ;;  %1643 = vmatprep.subr.mxu1 %v3186_v3 }
  0x22   :  { %144 = vmatmul.mubr.f32.vlgmr.msra.gmra.mxu0 %v3186_v3  ;;  %248 = vmatprep.subr.mxu0 %v2050_v0 }
  0x23   :  { %249 = vmatpush1.msra.mxu0 %v2055_v1  ;;  %1644 = vmatpush3.msra.mxu1 %v2345_v47 }
  0x24   :  { %250 = vmatprep.subr.mxu0 %v2060_v2  ;;  %1645 = vmatprep.subr.mxu1 %v3186_v3 }
  0x25   :  { %251 = vmatpush1.msra.mxu0 %v2068_v4  ;;  %1646 = vmatpush3.msra.mxu1 %v2354_v48 }
  0x26   :  { %252 = vmatprep.subr.mxu0 %v2076_v5  ;;  %1648 = vmatmul.mubr.f32.vlgmr.msra.gmra.mxu1 %v3186_v3 }
  0x27   :  { %253 = vmatpush1.msra.mxu0 %v2082_v6  ;;  %1650 = vmatprep.subr.mxu1 %v3186_v3 }
  0x28   :  { %254 = vmatprep.subr.mxu0 %v2088_v7  ;;  %1651 = vmatpush3.msra.mxu1 %v2129_v14 }
  0x29   :  { %255 = vmatpush1.msra.mxu0 %v2094_v8  ;;  %1652 = vmatprep.subr.mxu1 %v3186_v3 }
  0x2a   :  { %256 = vmatprep.subr.mxu0 %v2100_v9  ;;  %1653 = vmatpush3.msra.mxu1 %v2141_v16 }
  0x2b   :  { %257 = vmatpush1.msra.mxu0 %v2106_v10  ;;  %1654 = vmatprep.subr.mxu1 %v3186_v3 }
  0x2c   :  { %258 = vmatprep.subr.mxu0 %v2112_v11  ;;  %1655 = vmatpush3.msra.mxu1 %v2153_v18 }
  0x2d   :  { %259 = vmatpush1.msra.mxu0 %v2118_v12  ;;  %1656 = vmatprep.subr.mxu1 %v3186_v3 }
  0x2e   :  { %260 = vmatprep.subr.mxu0 %v2124_v13  ;;  %1657 = vmatpush3.msra.mxu1 %v2172_v21 }
  0x2f   :  { %261 = vmatpush1.msra.mxu0 %v2135_v15  ;;  %1658 = vmatprep.subr.mxu1 %v3186_v3 }
  0x30   :  { %262 = vmatprep.subr.mxu0 %v2147_v17  ;;  %1659 = vmatpush3.msra.mxu1 %v2191_v24 }
  0x31   :  { %263 = vmatpush1.msra.mxu0 %v2159_v19  ;;  %1660 = vmatprep.subr.mxu1 %v3186_v3 }
  0x32   :  { %264 = vmatprep.subr.mxu0 %v2166_v20  ;;  %1661 = vmatpush3.msra.mxu1 %v2210_v27 }
  0x33   :  { %265 = vmatpush1.msra.mxu0 %v2178_v22  ;;  %1662 = vmatprep.subr.mxu1 %v3186_v3 }
  0x34   :  { %266 = vmatprep.subr.mxu0 %v2185_v23  ;;  %1663 = vmatpush3.msra.mxu1 %v2229_v30 }
  0x35   :  { %267 = vmatpush1.msra.mxu0 %v2197_v25  ;;  %1664 = vmatprep.subr.mxu1 %v3186_v3 }
  0x36   :  { %268 = vmatprep.subr.mxu0 %v2204_v26  ;;  %1665 = vmatpush3.msra.mxu1 %v2248_v33 }
  0x37   :  { %269 = vmatpush1.msra.mxu0 %v2216_v28  ;;  %1666 = vmatprep.subr.mxu1 %v3186_v3 }
  0x38   :  { %270 = vmatprep.subr.mxu0 %v2223_v29  ;;  %1667 = vmatpush3.msra.mxu1 %v2267_v36 }
  0x39   :  { %271 = vmatpush1.msra.mxu0 %v2235_v31  ;;  %1668 = vmatprep.subr.mxu1 %v3186_v3 }
  0x3a   :  { %272 = vmatprep.subr.mxu0 %v2242_v32  ;;  %1669 = vmatpush3.msra.mxu1 %v2286_v39 }
  0x3b   :  { %273 = vmatpush1.msra.mxu0 %v2254_v34  ;;  %1670 = vmatprep.subr.mxu1 %v3186_v3 }
  0x3c   :  { %274 = vmatprep.subr.mxu0 %v2261_v35  ;;  %1671 = vmatpush3.msra.mxu1 %v2305_v42 }
  0x3d   :  { %275 = vmatpush1.msra.mxu0 %v2273_v37  ;;  %1672 = vmatprep.subr.mxu1 %v3186_v3 }
  0x3e   :  { %276 = vmatprep.subr.mxu0 %v2280_v38  ;;  %1673 = vmatpush3.msra.mxu1 %v2319_v44 }
  0x3f   :  { %277 = vmatpush1.msra.mxu0 %v2292_v40  ;;  %1674 = vmatprep.subr.mxu1 %v3186_v3 }
  0x40   :  { %278 = vmatprep.subr.mxu0 %v2299_v41  ;;  %1675 = vmatpush3.msra.mxu1 %v2328_v45  ;;  %v74_v41 = vsub.s32 2, %v65_v50  ;;  %v3221_v50 = vld [vmem:[#allocation5_spill] sm:$0xff] }
  0x41   :  { %279 = vmatpush1.msra.mxu0 %v2311_v43  ;;  %312 = vmatprep.mubr.f32.mxu0 %v3186_v3 }
  0x42   :  { %1676 = vmatprep.subr.mxu1 %v3186_v3  ;;  %1682 = vmatprep.mubr.msk.f32.mxu1 %vm2026_vm0, %v3186_v3 }
  0x43   :  { %1677 = vmatpush3.msra.mxu1 %v2336_v46  ;;  %419 = vmatprep.subr.mxu0 %v2050_v0 }
  0x44   :  { %1678 = vmatprep.subr.mxu1 %v3186_v3 }
  0x45   :  { %1679 = vmatpush3.msra.mxu1 %v2345_v47  ;;  %v2437_v47 = vrot.slane %v62_v52, %v74_v41  ;;  %v3219_v41 = vmov 0.0   ;;  %v3222_v52 = vld [vmem:[#allocation6_spill] sm:$0xff] }
  0x46   :  { %1680 = vmatprep.subr.mxu1 %v3186_v3 }
  0x47   :  { %1681 = vmatpush3.msra.mxu1 %v2354_v48 }
  0x48   :  { %1685 = vmatprep.subr.mxu1 %v3186_v3 }
  0xe2   :  { %v145_v55 = vpop.f32.mrf.mxu0 }
  0xe3   :  { %v146_v57 = vadd.f32 %v145_v55, %v2428_v53 }
  0xe4   :  { %v147_v59 = vpop.f32.mrf.mxu0 }
  0xe5   :  { %v221_v60 = vadd.f32 %v220_v56, %v146_v57  ;;  %v148_v62 = vadd.f32 %v147_v59, %v2434_v58 }
  0xe6   :  { %v216_v51 = vpop.f32.mrf.mxu1 }
  0xe7   :  { %v1449_v61 = vmul.f32 -1.442695, %v221_v60  ;;  %v231_v49 = vadd.f32 %v229_v63, %v148_v62  ;;  %v217_v57 = vadd.f32 %v216_v51, %v2437_v47  ;;  %v239_v60 = vrot.slane %v220_v56, 4  ;;  %v3224_v56 = vld [vmem:[#allocation2_spill] sm:$0xff] }
  0xe8   :  { %v1649_v3 = vpop.f32.mrf.mxu1 }
  0xe9   :  { %1897 = vpow2.f32 %v1449_v61  ;;  %v1450_v0 = vmul.f32 -1.442695, %v231_v49 }
  0xeb   :  { %1899 = vpow2.f32 %v1450_v0 }
  0xf6   :  { %v1898_v48 = vpop.eup %1897 }
  0xf7   :  { %v225_v43 = vadd.f32 1.0, %v1898_v48 }
  0xf8   :  { %v1900_v54 = vpop.eup %1899 }
  0xf9   :  { %1901 = vrcp.f32 %v225_v43  ;;  %v235_v55 = vadd.f32 1.0, %v1900_v54  ;;  %v3220_v43 = vld [vmem:[#allocation7_spill] sm:$0xff] }
  0xfa   :  { %v1451_v54 = vld [vmem:[%s3184_s0 + $0x6] sm:$0x3f] }
  0xfb   :  { %1903 = vrcp.f32 %v235_v55 }
 0x106   :  { %v1902_v53 = vpop.eup %1901 }
 0x107   :  { %v238_v59 = vmul.f32 %v1902_v53, %v217_v57  ;;  %v3223_v53 = vld [vmem:[#allocation8_spill] sm:$0xff]  ;;  %v3225_v57 = vld [vmem:[#allocation9_spill] sm:$0xff] }
 0x108   :  { %v1904_v62 = vpop.eup %1903 }
 0x109   :  { %v241_v61 = vadd.f32 %v239_v60, %v238_v59  ;;  %v243_v3 = vsub.f32 1.0, %v1904_v62  ;;  %v245_v49 = vmul.f32 0.0, %v1904_v62 }
 0x10b   :  { %1905 = vtanh.f32 %v241_v61 }
 0x118   :  { %v1906_v63 = vpop.eup %1905 }
 0x119   :  { %v244_v0 = vmul.f32 %v1906_v63, %v243_v3 }
 0x11b   :  { %v2440_v48 = vadd.f32 %v245_v49, %v244_v0  ;;  %v399_v0 = vrot.slane %v1451_v54, 2 }
 0x11d   :  { %247 = vst [vmem:[%s3185_s3] sm:$0x3] %v2440_v48  ;;  %313 = vmatmul.mubr.f32.vlgmr.msra.gmra.mxu0 %v2440_v48  ;;  %1683 = vmatmul.mubr.f32.vlgmr.msra.gmra.mxu1 %v2440_v48 }
 0x11e   :  { %420 = vmatpush1.msra.mxu0 %v2055_v1  ;;  %1686 = vmatpush3.msra.mxu1 %v2129_v14 }
 0x11f   :  { %421 = vmatprep.subr.mxu0 %v2060_v2  ;;  %1687 = vmatprep.subr.mxu1 %v3219_v41 }
 0x120   :  { %422 = vmatpush1.msra.mxu0 %v2068_v4  ;;  %1688 = vmatpush3.msra.mxu1 %v2141_v16 }
 0x121   :  { %423 = vmatprep.subr.mxu0 %v2076_v5  ;;  %1689 = vmatprep.subr.mxu1 %v3219_v41 }
 0x122   :  { %424 = vmatpush1.msra.mxu0 %v2082_v6  ;;  %1690 = vmatpush3.msra.mxu1 %v2153_v18 }
 0x123   :  { %425 = vmatprep.subr.mxu0 %v2088_v7  ;;  %1691 = vmatprep.subr.mxu1 %v3219_v41 }
 0x124   :  { %426 = vmatpush1.msra.mxu0 %v2094_v8  ;;  %1692 = vmatpush3.msra.mxu1 %v2172_v21 }
 0x125   :  { %427 = vmatprep.subr.mxu0 %v2100_v9  ;;  %1693 = vmatprep.subr.mxu1 %v3219_v41 }
 0x126   :  { %428 = vmatpush1.msra.mxu0 %v2106_v10  ;;  %1694 = vmatpush3.msra.mxu1 %v2191_v24 }
 0x127   :  { %429 = vmatprep.subr.mxu0 %v2112_v11  ;;  %1695 = vmatprep.subr.mxu1 %v3219_v41 }
 0x128   :  { %430 = vmatpush1.msra.mxu0 %v2118_v12  ;;  %1696 = vmatpush3.msra.mxu1 %v2210_v27 }
 0x129   :  { %431 = vmatprep.subr.mxu0 %v2124_v13  ;;  %1697 = vmatprep.subr.mxu1 %v3219_v41 }
 0x12a   :  { %432 = vmatpush1.msra.mxu0 %v2135_v15  ;;  %1698 = vmatpush3.msra.mxu1 %v2229_v30 }
 0x12b   :  { %433 = vmatprep.subr.mxu0 %v2147_v17  ;;  %1699 = vmatprep.subr.mxu1 %v3219_v41 }
 0x12c   :  { %434 = vmatpush1.msra.mxu0 %v2159_v19  ;;  %1700 = vmatpush3.msra.mxu1 %v2248_v33 }
 0x12d   :  { %435 = vmatprep.subr.mxu0 %v2166_v20  ;;  %1701 = vmatprep.subr.mxu1 %v3219_v41 }
 0x12e   :  { %436 = vmatpush1.msra.mxu0 %v2178_v22  ;;  %1702 = vmatpush3.msra.mxu1 %v2267_v36 }
 0x12f   :  { %437 = vmatprep.subr.mxu0 %v2185_v23  ;;  %1703 = vmatprep.subr.mxu1 %v3219_v41 }
 0x130   :  { %438 = vmatpush1.msra.mxu0 %v2197_v25  ;;  %1704 = vmatpush3.msra.mxu1 %v2286_v39 }
 0x131   :  { %439 = vmatprep.subr.mxu0 %v2204_v26  ;;  %1705 = vmatprep.subr.mxu1 %v3219_v41 }
 0x132   :  { %440 = vmatpush1.msra.mxu0 %v2216_v28  ;;  %1706 = vmatpush3.msra.mxu1 %v2305_v42 }
 0x133   :  { %441 = vmatprep.subr.mxu0 %v2223_v29  ;;  %1707 = vmatprep.subr.mxu1 %v3219_v41 }
 0x134   :  { %442 = vmatpush1.msra.mxu0 %v2235_v31  ;;  %1708 = vmatpush3.msra.mxu1 %v2319_v44 }
 0x135   :  { %443 = vmatprep.subr.mxu0 %v2242_v32  ;;  %1709 = vmatprep.subr.mxu1 %v3219_v41 }
 0x136   :  { %444 = vmatpush1.msra.mxu0 %v2254_v34  ;;  %1710 = vmatpush3.msra.mxu1 %v2328_v45 }
 0x137   :  { %445 = vmatprep.subr.mxu0 %v2261_v35  ;;  %1711 = vmatprep.subr.mxu1 %v3219_v41 }
 0x138   :  { %446 = vmatpush1.msra.mxu0 %v2273_v37  ;;  %1712 = vmatpush3.msra.mxu1 %v2336_v46 }
 0x139   :  { %447 = vmatprep.subr.mxu0 %v2280_v38  ;;  %1713 = vmatprep.subr.mxu1 %v3219_v41  ;;  %v409_v38 = vrot.slane %v1451_v54, 4 }
 0x13a   :  { %448 = vmatpush1.msra.mxu0 %v2292_v40  ;;  %1714 = vmatpush3.msra.mxu1 %v3220_v43 }
 0x13b   :  { %449 = vmatprep.subr.mxu0 %v3221_v50  ;;  %1715 = vmatprep.subr.mxu1 %v3219_v41 }
 0x13c   :  { %450 = vmatpush1.msra.mxu0 %v3222_v52  ;;  %483 = vmatprep.mubr.f32.mxu0 %v3219_v41 }
 0x13d   :  { %1716 = vmatpush3.msra.mxu1 %v3223_v53  ;;  %1717 = vmatprep.mubr.msk.f32.mxu1 %vm2026_vm0, %v3219_v41 }
 0x13e   :  { %590 = vmatprep.subr.mxu0 %v3224_v56  ;;  %1720 = vmatprep.subr.mxu1 %v3219_v41 }
 0x1dd   :  { %v314_v51 = vpop.f32.mrf.mxu0  ;;  %v385_v55 = vpop.f32.mrf.mxu1 }
 0x1de   :  { %v315_v60 = vadd.f32 %v314_v51, %v3225_v57  ;;  %v386_v40 = vadd.f32 %v385_v55, %v2437_v47  ;;  %v1455_v55 = vld [vmem:[%s3184_s0 + $0xc] sm:$0x3f] }
 0x1df   :  { %v316_v59 = vpop.f32.mrf.mxu0  ;;  %v1684_v61 = vpop.f32.mrf.mxu1 }
 0x1e0   :  { %v391_v62 = vadd.f32 %v1451_v54, %v315_v60  ;;  %v317_v63 = vadd.f32 %v316_v59, %v2434_v58 }
 0x1e2   :  { %v1452_v3 = vmul.f32 -1.442695, %v391_v62  ;;  %v401_v49 = vadd.f32 %v399_v0, %v317_v63  ;;  %v3233_v0 = vld [vmem:[#allocation9_spill] sm:$0xff] }
 0x1e4   :  { %1907 = vpow2.f32 %v1452_v3  ;;  %v1453_v56 = vmul.f32 -1.442695, %v401_v49 }
 0x1e6   :  { %1909 = vpow2.f32 %v1453_v56 }
 0x1f1   :  { %v1908_v53 = vpop.eup %1907 }
 0x1f2   :  { %v395_v52 = vadd.f32 1.0, %v1908_v53  ;;  %v3232_v53 = vld [vmem:[#allocation2_spill] sm:$0xff] }
 0x1f3   :  { %v1910_v50 = vpop.eup %1909 }
 0x1f4   :  { %1911 = vrcp.f32 %v395_v52  ;;  %v405_v43 = vadd.f32 1.0, %v1910_v50  ;;  %v3230_v50 = vld [vmem:[#allocation6_spill] sm:$0xff]  ;;  %v3231_v52 = vld [vmem:[#allocation8_spill] sm:$0xff] }
 0x1f6   :  { %1913 = vrcp.f32 %v405_v43  ;;  %v3229_v43 = vld [vmem:[#allocation5_spill] sm:$0xff] }
 0x201   :  { %v1912_v51 = vpop.eup %1911 }
 0x202   :  { %v408_v57 = vmul.f32 %v1912_v51, %v386_v40  ;;  %v3227_v40 = vld [vmem:[#allocation4_spill] sm:$0xff] }
 0x203   :  { %v1914_v61 = vpop.eup %1913 }
 0x204   :  { %v411_v60 = vadd.f32 %v409_v38, %v408_v57  ;;  %v413_v59 = vsub.f32 1.0, %v1914_v61  ;;  %v415_v63 = vmul.f32 %v1914_v61, %v2440_v48  ;;  %v3226_v38 = vld [vmem:[#allocation3_spill] sm:$0xff] }
 0x205   :  { %v3228_v48 = vld [vmem:[#allocation7_spill] sm:$0xff] }
 0x206   :  { %1915 = vtanh.f32 %v411_v60 }
 0x213   :  { %v1916_v62 = vpop.eup %1915 }
 0x214   :  { %v414_v3 = vmul.f32 %v1916_v62, %v413_v59 }
 0x216   :  { %v2522_v56 = vadd.f32 %v415_v63, %v414_v3  ;;  %v570_v3 = vrot.slane %v1455_v55, 2 }
 0x218   :  { %1454 = vst [vmem:[%s3185_s3 + $0x2] sm:$0x3] %v2522_v56  ;;  %484 = vmatmul.mubr.f32.vlgmr.msra.gmra.mxu0 %v2522_v56  ;;  %1718 = vmatmul.mubr.f32.vlgmr.msra.gmra.mxu1 %v2522_v56 }
 0x219   :  { %591 = vmatpush1.msra.mxu0 %v2055_v1  ;;  %1721 = vmatpush3.msra.mxu1 %v2129_v14 }
 0x21a   :  { %592 = vmatprep.subr.mxu0 %v2060_v2  ;;  %1722 = vmatprep.subr.mxu1 %v3219_v41 }
 0x21b   :  { %593 = vmatpush1.msra.mxu0 %v2068_v4  ;;  %1723 = vmatpush3.msra.mxu1 %v2141_v16 }
 0x21c   :  { %594 = vmatprep.subr.mxu0 %v2076_v5  ;;  %1724 = vmatprep.subr.mxu1 %v3219_v41 }
 0x21d   :  { %595 = vmatpush1.msra.mxu0 %v2082_v6  ;;  %1725 = vmatpush3.msra.mxu1 %v2153_v18 }
 0x21e   :  { %596 = vmatprep.subr.mxu0 %v2088_v7  ;;  %1726 = vmatprep.subr.mxu1 %v3219_v41 }
 0x21f   :  { %597 = vmatpush1.msra.mxu0 %v2094_v8  ;;  %1727 = vmatpush3.msra.mxu1 %v2172_v21 }
 0x220   :  { %598 = vmatprep.subr.mxu0 %v2100_v9  ;;  %1728 = vmatprep.subr.mxu1 %v3219_v41 }
 0x221   :  { %599 = vmatpush1.msra.mxu0 %v2106_v10  ;;  %1729 = vmatpush3.msra.mxu1 %v2191_v24 }
 0x222   :  { %600 = vmatprep.subr.mxu0 %v2112_v11  ;;  %1730 = vmatprep.subr.mxu1 %v3219_v41 }
 0x223   :  { %601 = vmatpush1.msra.mxu0 %v2118_v12  ;;  %1731 = vmatpush3.msra.mxu1 %v2210_v27 }
 0x224   :  { %602 = vmatprep.subr.mxu0 %v2124_v13  ;;  %1732 = vmatprep.subr.mxu1 %v3219_v41 }
 0x225   :  { %603 = vmatpush1.msra.mxu0 %v2135_v15  ;;  %1733 = vmatpush3.msra.mxu1 %v2229_v30 }
 0x226   :  { %604 = vmatprep.subr.mxu0 %v2147_v17  ;;  %1734 = vmatprep.subr.mxu1 %v3219_v41 }
 0x227   :  { %605 = vmatpush1.msra.mxu0 %v2159_v19  ;;  %1735 = vmatpush3.msra.mxu1 %v2248_v33 }
 0x228   :  { %606 = vmatprep.subr.mxu0 %v2166_v20  ;;  %1736 = vmatprep.subr.mxu1 %v3219_v41 }
 0x229   :  { %607 = vmatpush1.msra.mxu0 %v2178_v22  ;;  %1737 = vmatpush3.msra.mxu1 %v2267_v36 }
 0x22a   :  { %608 = vmatprep.subr.mxu0 %v2185_v23  ;;  %1738 = vmatprep.subr.mxu1 %v3219_v41 }
 0x22b   :  { %609 = vmatpush1.msra.mxu0 %v2197_v25  ;;  %1739 = vmatpush3.msra.mxu1 %v2286_v39 }
 0x22c   :  { %610 = vmatprep.subr.mxu0 %v2204_v26  ;;  %1740 = vmatprep.subr.mxu1 %v3219_v41 }
 0x22d   :  { %611 = vmatpush1.msra.mxu0 %v2216_v28  ;;  %1741 = vmatpush3.msra.mxu1 %v2305_v42 }
 0x22e   :  { %612 = vmatprep.subr.mxu0 %v2223_v29  ;;  %1742 = vmatprep.subr.mxu1 %v3219_v41 }
 0x22f   :  { %613 = vmatpush1.msra.mxu0 %v2235_v31  ;;  %1743 = vmatpush3.msra.mxu1 %v2319_v44 }
 0x230   :  { %614 = vmatprep.subr.mxu0 %v2242_v32  ;;  %1744 = vmatprep.subr.mxu1 %v3219_v41 }
 0x231   :  { %615 = vmatpush1.msra.mxu0 %v2254_v34  ;;  %1745 = vmatpush3.msra.mxu1 %v2328_v45 }
 0x232   :  { %616 = vmatprep.subr.mxu0 %v2261_v35  ;;  %1746 = vmatprep.subr.mxu1 %v3219_v41 }
 0x233   :  { %617 = vmatpush1.msra.mxu0 %v2273_v37  ;;  %1747 = vmatpush3.msra.mxu1 %v2336_v46 }
 0x234   :  { %618 = vmatprep.subr.mxu0 %v3226_v38  ;;  %1748 = vmatprep.subr.mxu1 %v3219_v41  ;;  %v580_v38 = vrot.slane %v1455_v55, 4 }
 0x235   :  { %619 = vmatpush1.msra.mxu0 %v3227_v40  ;;  %1749 = vmatpush3.msra.mxu1 %v3228_v48 }
 0x236   :  { %620 = vmatprep.subr.mxu0 %v3229_v43  ;;  %1750 = vmatprep.subr.mxu1 %v3219_v41 }
 0x237   :  { %621 = vmatpush1.msra.mxu0 %v3230_v50  ;;  %654 = vmatprep.mubr.f32.mxu0 %v3219_v41 }
 0x238   :  { %1751 = vmatpush3.msra.mxu1 %v3231_v52  ;;  %1752 = vmatprep.mubr.msk.f32.mxu1 %vm2026_vm0, %v3219_v41 }
 0x239   :  { %761 = vmatprep.subr.mxu0 %v3232_v53  ;;  %1755 = vmatprep.subr.mxu1 %v3219_v41 }
 0x2d8   :  { %v485_v54 = vpop.f32.mrf.mxu0  ;;  %v556_v57 = vpop.f32.mrf.mxu1 }
 0x2d9   :  { %v486_v49 = vadd.f32 %v485_v54, %v3233_v0  ;;  %v557_v40 = vadd.f32 %v556_v57, %v2437_v47 }
 0x2da   :  { %v487_v51 = vpop.f32.mrf.mxu0  ;;  %v1719_v60 = vpop.f32.mrf.mxu1 }
 0x2db   :  { %v562_v61 = vadd.f32 %v1455_v55, %v486_v49  ;;  %v488_v62 = vadd.f32 %v487_v51, %v2434_v58 }
 0x2dd   :  { %v1456_v59 = vmul.f32 -1.442695, %v562_v61  ;;  %v572_v63 = vadd.f32 %v570_v3, %v488_v62 }
 0x2df   :  { %1917 = vpow2.f32 %v1456_v59  ;;  %v1457_v53 = vmul.f32 -1.442695, %v572_v63  ;;  %v2697_v63 = vld [vmem:[%s3182_s1 + $0x168] sm:$0xff] }
 0x2e1   :  { %1919 = vpow2.f32 %v1457_v53 }
 0x2ec   :  { %v1918_v52 = vpop.eup %1917 }
 0x2ed   :  { %v566_v50 = vadd.f32 1.0, %v1918_v52 }
 0x2ee   :  { %v1920_v43 = vpop.eup %1919 }
 0x2ef   :  { %1921 = vrcp.f32 %v566_v50  ;;  %v576_v48 = vadd.f32 1.0, %v1920_v43 }
 0x2f1   :  { %1923 = vrcp.f32 %v576_v48 }
 0x2fc   :  { %v1922_v54 = vpop.eup %1921 }
 0x2fd   :  { %v579_v0 = vmul.f32 %v1922_v54, %v557_v40  ;;  %v2704_v54 = vld [vmem:[%s3182_s1 + $0x158] sm:$0xff] }
 0x2fe   :  { %v1924_v60 = vpop.eup %1923 }
 0x2ff   :  { %v582_v49 = vadd.f32 %v580_v38, %v579_v0  ;;  %v584_v51 = vsub.f32 1.0, %v1924_v60  ;;  %v586_v62 = vmul.f32 %v1924_v60, %v2522_v56  ;;  %v2725_v60 = vld [vmem:[%s3182_s1 + $0x138] sm:$0xff] }
 0x301   :  { %1925 = vtanh.f32 %v582_v49  ;;  %v2711_v49 = vld [vmem:[%s3182_s1 + $0x150] sm:$0xff] }
 0x30e   :  { %v1926_v61 = vpop.eup %1925 }
 0x30f   :  { %v585_v59 = vmul.f32 %v1926_v61, %v584_v51  ;;  %v2739_v51 = vld [vmem:[%s3182_s1 + $0x120] sm:$0xff]  ;;  %v2753_v61 = vld [vmem:[%s3182_s1 + $0x108] sm:$0xff] }
 0x311   :  { %v2604_v53 = vadd.f32 %v586_v62, %v585_v59  ;;  %v2767_v59 = vld [vmem:[%s3182_s1 + $0xf0] sm:$0xff]  ;;  %v2781_v62 = vld [vmem:[%s3182_s1 + $0xd8] sm:$0xff] }
 0x313   :  { %1458 = vst [vmem:[%s3185_s3 + $0x4] sm:$0x3] %v2604_v53  ;;  %655 = vmatmul.mubr.f32.vlgmr.msra.gmra.mxu0 %v2604_v53  ;;  %1753 = vmatmul.mubr.f32.vlgmr.msra.gmra.mxu1 %v2604_v53 }
 0x314   :  { %762 = vmatpush1.msra.mxu0 %v2055_v1  ;;  %1756 = vmatpush3.msra.mxu1 %v2129_v14  ;;  %v3234_v1 = vld [vmem:[#allocation3_spill] sm:$0xff] }
 0x315   :  { %763 = vmatprep.subr.mxu0 %v2060_v2  ;;  %1757 = vmatprep.subr.mxu1 %v3219_v41  ;;  %v3235_v2 = vld [vmem:[#allocation4_spill] sm:$0xff] }
 0x316   :  { %764 = vmatpush1.msra.mxu0 %v2068_v4  ;;  %1758 = vmatpush3.msra.mxu1 %v2141_v16  ;;  %v3236_v4 = vld [vmem:[#allocation7_spill] sm:$0xff] }
 0x317   :  { %765 = vmatprep.subr.mxu0 %v2076_v5  ;;  %1759 = vmatprep.subr.mxu1 %v3219_v41  ;;  %v3237_v5 = vld [vmem:[#allocation5_spill] sm:$0xff] }
 0x318   :  { %766 = vmatpush1.msra.mxu0 %v2082_v6  ;;  %1760 = vmatpush3.msra.mxu1 %v2153_v18  ;;  %v3238_v6 = vld [vmem:[#allocation6_spill] sm:$0xff] }
 0x319   :  { %767 = vmatprep.subr.mxu0 %v2088_v7  ;;  %1761 = vmatprep.subr.mxu1 %v3219_v41  ;;  %v3239_v7 = vld [vmem:[#allocation8_spill] sm:$0xff] }
 0x31a   :  { %768 = vmatpush1.msra.mxu0 %v2094_v8  ;;  %1762 = vmatpush3.msra.mxu1 %v2172_v21  ;;  %v3240_v8 = vld [vmem:[#allocation2_spill] sm:$0xff] }
 0x31b   :  { %769 = vmatprep.subr.mxu0 %v2100_v9  ;;  %1763 = vmatprep.subr.mxu1 %v3219_v41 }
 0x31c   :  { %770 = vmatpush1.msra.mxu0 %v2106_v10  ;;  %1764 = vmatpush3.msra.mxu1 %v2191_v24  ;;  %v1459_v10 = vld [vmem:[%s3184_s0 + $0x12] sm:$0x3f] }
 0x31d   :  { %771 = vmatprep.subr.mxu0 %v2112_v11  ;;  %1765 = vmatprep.subr.mxu1 %v3219_v41  ;;  %v751_v38 = vrot.slane %v1459_v10, 4 }
 0x31e   :  { %772 = vmatpush1.msra.mxu0 %v2118_v12  ;;  %1766 = vmatpush3.msra.mxu1 %v2210_v27  ;;  %v3241_v12 = vld [vmem:[#allocation9_spill] sm:$0xff] }
 0x31f   :  { %773 = vmatprep.subr.mxu0 %v2124_v13  ;;  %1767 = vmatprep.subr.mxu1 %v3219_v41 }
 0x320   :  { %774 = vmatpush1.msra.mxu0 %v2135_v15  ;;  %1768 = vmatpush3.msra.mxu1 %v2229_v30 }
 0x321   :  { %775 = vmatprep.subr.mxu0 %v2147_v17  ;;  %1769 = vmatprep.subr.mxu1 %v3219_v41 }
 0x322   :  { %776 = vmatpush1.msra.mxu0 %v2159_v19  ;;  %1770 = vmatpush3.msra.mxu1 %v2248_v33 }
 0x323   :  { %777 = vmatprep.subr.mxu0 %v2166_v20  ;;  %1771 = vmatprep.subr.mxu1 %v3219_v41 }
 0x324   :  { %778 = vmatpush1.msra.mxu0 %v2178_v22  ;;  %1772 = vmatpush3.msra.mxu1 %v2267_v36 }
 0x325   :  { %779 = vmatprep.subr.mxu0 %v2185_v23  ;;  %1773 = vmatprep.subr.mxu1 %v3219_v41  ;;  %v741_v23 = vrot.slane %v1459_v10, 2 }
 0x326   :  { %780 = vmatpush1.msra.mxu0 %v2197_v25  ;;  %1774 = vmatpush3.msra.mxu1 %v2286_v39 }
 0x327   :  { %781 = vmatprep.subr.mxu0 %v2204_v26  ;;  %1775 = vmatprep.subr.mxu1 %v3219_v41 }
 0x328   :  { %782 = vmatpush1.msra.mxu0 %v2216_v28  ;;  %1776 = vmatpush3.msra.mxu1 %v2305_v42 }
 0x329   :  { %783 = vmatprep.subr.mxu0 %v2223_v29  ;;  %1777 = vmatprep.subr.mxu1 %v3219_v41 }
 0x32a   :  { %784 = vmatpush1.msra.mxu0 %v2235_v31  ;;  %1778 = vmatpush3.msra.mxu1 %v2319_v44 }
 0x32b   :  { %785 = vmatprep.subr.mxu0 %v2242_v32  ;;  %1779 = vmatprep.subr.mxu1 %v3219_v41 }
 0x32c   :  { %786 = vmatpush1.msra.mxu0 %v2254_v34  ;;  %1780 = vmatpush3.msra.mxu1 %v2328_v45 }
 0x32d   :  { %787 = vmatprep.subr.mxu0 %v2261_v35  ;;  %1781 = vmatprep.subr.mxu1 %v3219_v41 }
 0x32e   :  { %788 = vmatpush1.msra.mxu0 %v2273_v37  ;;  %1782 = vmatpush3.msra.mxu1 %v2336_v46 }
 0x32f   :  { %789 = vmatprep.subr.mxu0 %v3234_v1  ;;  %1783 = vmatprep.subr.mxu1 %v3219_v41 }
 0x330   :  { %790 = vmatpush1.msra.mxu0 %v3235_v2  ;;  %1784 = vmatpush3.msra.mxu1 %v3236_v4 }
 0x331   :  { %791 = vmatprep.subr.mxu0 %v3237_v5  ;;  %1785 = vmatprep.subr.mxu1 %v3219_v41 }
 0x332   :  { %792 = vmatpush1.msra.mxu0 %v3238_v6  ;;  %825 = vmatprep.mubr.f32.mxu0 %v3219_v41 }
 0x333   :  { %1786 = vmatpush3.msra.mxu1 %v3239_v7  ;;  %1787 = vmatprep.mubr.msk.f32.mxu1 %vm2026_vm0, %v3219_v41 }
 0x334   :  { %932 = vmatprep.subr.mxu0 %v3240_v8  ;;  %1790 = vmatprep.subr.mxu1 %v3219_v41  ;;  %v2809_v8 = vld [vmem:[%s3182_s1 + $0xa8] sm:$0xff] }
 0x3d3   :  { %v656_v9 = vpop.f32.mrf.mxu0  ;;  %v727_v11 = vpop.f32.mrf.mxu1 }
 0x3d4   :  { %v657_v13 = vadd.f32 %v656_v9, %v3241_v12  ;;  %v728_v56 = vadd.f32 %v727_v11, %v2437_v47  ;;  %v2823_v9 = vld [vmem:[%s3182_s1 + $0x90] sm:$0xff]  ;;  %v2851_v11 = vld [vmem:[%s3182_s1 + $0x60] sm:$0xff] }
 0x3d5   :  { %v658_v15 = vpop.f32.mrf.mxu0  ;;  %v1754_v17 = vpop.f32.mrf.mxu1 }
 0x3d6   :  { %v733_v19 = vadd.f32 %v1459_v10, %v657_v13  ;;  %v659_v22 = vadd.f32 %v658_v15, %v2434_v58  ;;  %v2837_v10 = vld [vmem:[%s3182_s1 + $0x78] sm:$0xff] }
 0x3d8   :  { %v1460_v20 = vmul.f32 -1.442695, %v733_v19  ;;  %v743_v25 = vadd.f32 %v741_v23, %v659_v22 }
 0x3da   :  { %1927 = vpow2.f32 %v1460_v20  ;;  %v1461_v26 = vmul.f32 -1.442695, %v743_v25 }
 0x3dc   :  { %1929 = vpow2.f32 %v1461_v26 }
 0x3e7   :  { %v1928_v28 = vpop.eup %1927 }
 0x3e8   :  { %v737_v29 = vadd.f32 1.0, %v1928_v28 }
 0x3e9   :  { %v1930_v31 = vpop.eup %1929 }
 0x3ea   :  { %1931 = vrcp.f32 %v737_v29  ;;  %v747_v32 = vadd.f32 1.0, %v1930_v31 }
 0x3ec   :  { %1933 = vrcp.f32 %v747_v32 }
 0x3f7   :  { %v1932_v40 = vpop.eup %1931 }
 0x3f8   :  { %v750_v48 = vmul.f32 %v1932_v40, %v728_v56 }
 0x3f9   :  { %v1934_v50 = vpop.eup %1933 }
 0x3fa   :  { %v753_v43 = vadd.f32 %v751_v38, %v750_v48  ;;  %v755_v52 = vsub.f32 1.0, %v1934_v50  ;;  %v757_v0 = vmul.f32 %v1934_v50, %v2604_v53  ;;  %v2795_v53 = vld [vmem:[%s3182_s1 + $0xc0] sm:$0xff]  ;;  %v2905_v48 = vld [vmem:[%s3182_s1 + $0x178] sm:$0xff]  ;;  %v2923_v50 = vld [vmem:[%s3182_s1 + $0x148] sm:$0xff] }
 0x3fc   :  { %1935 = vtanh.f32 %v753_v43  ;;  %v2914_v43 = vld [vmem:[%s3182_s1 + $0x160] sm:$0xff] }
 0x409   :  { %v1936_v55 = vpop.eup %1935 }
 0x40a   :  { %v756_v57 = vmul.f32 %v1936_v55, %v755_v52  ;;  %v2932_v52 = vld [vmem:[%s3182_s1 + $0x130] sm:$0xff]  ;;  %v2941_v55 = vld [vmem:[%s3182_s1 + $0x118] sm:$0xff] }
 0x40c   :  { %v2686_v3 = vadd.f32 %v757_v0, %v756_v57  ;;  %v2950_v57 = vld [vmem:[%s3182_s1 + $0x100] sm:$0xff]  ;;  %v2959_v0 = vld [vmem:[%s3182_s1 + $0xe8] sm:$0xff] }
 0x40e   :  { %1462 = vst [vmem:[%s3185_s3 + $0x6] sm:$0x3] %v2686_v3  ;;  %826 = vmatmul.mubr.f32.vlgmr.msra.gmra.mxu0 %v2686_v3  ;;  %1788 = vmatmul.mubr.f32.vlgmr.msra.gmra.mxu1 %v2686_v3 }
 0x40f   :  { %933 = vmatpush1.msra.mxu0 %v2697_v63  ;;  %1791 = vmatpush3.msra.mxu1 %v2129_v14  ;;  %v2718_v14 = vld [vmem:[%s3182_s1 + $0x140] sm:$0xff] }
 0x410   :  { %934 = vmatprep.subr.mxu0 %v2704_v54  ;;  %1792 = vmatprep.subr.mxu1 %v3219_v41 }
 0x411   :  { %935 = vmatpush1.msra.mxu0 %v2711_v49  ;;  %1793 = vmatpush3.msra.mxu1 %v2141_v16  ;;  %v2732_v16 = vld [vmem:[%s3182_s1 + $0x128] sm:$0xff] }
 0x412   :  { %936 = vmatprep.subr.mxu0 %v2718_v14  ;;  %1794 = vmatprep.subr.mxu1 %v3219_v41 }
 0x413   :  { %937 = vmatpush1.msra.mxu0 %v2725_v60  ;;  %1795 = vmatpush3.msra.mxu1 %v2153_v18  ;;  %v2746_v18 = vld [vmem:[%s3182_s1 + $0x110] sm:$0xff] }
 0x414   :  { %938 = vmatprep.subr.mxu0 %v2732_v16  ;;  %1796 = vmatprep.subr.mxu1 %v3219_v41 }
 0x415   :  { %939 = vmatpush1.msra.mxu0 %v2739_v51  ;;  %1797 = vmatpush3.msra.mxu1 %v2172_v21  ;;  %v2760_v21 = vld [vmem:[%s3182_s1 + $0xf8] sm:$0xff] }
 0x416   :  { %940 = vmatprep.subr.mxu0 %v2746_v18  ;;  %1798 = vmatprep.subr.mxu1 %v3219_v41 }
 0x417   :  { %941 = vmatpush1.msra.mxu0 %v2753_v61  ;;  %1799 = vmatpush3.msra.mxu1 %v2191_v24  ;;  %v2774_v24 = vld [vmem:[%s3182_s1 + $0xe0] sm:$0xff] }
 0x418   :  { %942 = vmatprep.subr.mxu0 %v2760_v21  ;;  %1800 = vmatprep.subr.mxu1 %v3219_v41 }
 0x419   :  { %943 = vmatpush1.msra.mxu0 %v2767_v59  ;;  %1801 = vmatpush3.msra.mxu1 %v2210_v27  ;;  %v2788_v27 = vld [vmem:[%s3182_s1 + $0xc8] sm:$0xff] }
 0x41a   :  { %944 = vmatprep.subr.mxu0 %v2774_v24  ;;  %1802 = vmatprep.subr.mxu1 %v3219_v41 }
 0x41b   :  { %945 = vmatpush1.msra.mxu0 %v2781_v62  ;;  %1803 = vmatpush3.msra.mxu1 %v2229_v30  ;;  %v2802_v30 = vld [vmem:[%s3182_s1 + $0xb0] sm:$0xff] }
 0x41c   :  { %946 = vmatprep.subr.mxu0 %v2788_v27  ;;  %1804 = vmatprep.subr.mxu1 %v3219_v41 }
 0x41d   :  { %947 = vmatpush1.msra.mxu0 %v2795_v53  ;;  %1805 = vmatpush3.msra.mxu1 %v2248_v33  ;;  %v2816_v33 = vld [vmem:[%s3182_s1 + $0x98] sm:$0xff] }
 0x41e   :  { %948 = vmatprep.subr.mxu0 %v2802_v30  ;;  %1806 = vmatprep.subr.mxu1 %v3219_v41 }
 0x41f   :  { %949 = vmatpush1.msra.mxu0 %v2809_v8  ;;  %1807 = vmatpush3.msra.mxu1 %v2267_v36  ;;  %v2830_v36 = vld [vmem:[%s3182_s1 + $0x80] sm:$0xff] }
 0x420   :  { %950 = vmatprep.subr.mxu0 %v2816_v33  ;;  %1808 = vmatprep.subr.mxu1 %v3219_v41 }
 0x421   :  { %951 = vmatpush1.msra.mxu0 %v2823_v9  ;;  %1809 = vmatpush3.msra.mxu1 %v2286_v39  ;;  %v2844_v39 = vld [vmem:[%s3182_s1 + $0x68] sm:$0xff] }
 0x422   :  { %952 = vmatprep.subr.mxu0 %v2830_v36  ;;  %1810 = vmatprep.subr.mxu1 %v3219_v41 }
 0x423   :  { %953 = vmatpush1.msra.mxu0 %v2837_v10  ;;  %1811 = vmatpush3.msra.mxu1 %v2305_v42  ;;  %v2858_v42 = vld [vmem:[%s3182_s1 + $0x50] sm:$0xff] }
 0x424   :  { %954 = vmatprep.subr.mxu0 %v2844_v39  ;;  %1812 = vmatprep.subr.mxu1 %v3219_v41 }
 0x425   :  { %955 = vmatpush1.msra.mxu0 %v2851_v11  ;;  %1813 = vmatpush3.msra.mxu1 %v2319_v44 }
 0x426   :  { %956 = vmatprep.subr.mxu0 %v2858_v42  ;;  %1814 = vmatprep.subr.mxu1 %v3219_v41 }
 0x427   :  { %957 = vmatpush1.msra.mxu0 %v2254_v34  ;;  %1815 = vmatpush3.msra.mxu1 %v2328_v45  ;;  %v2882_v34 = vld [vmem:[%s3182_s1 + $0x170] sm:$0xff] }
 0x428   :  { %958 = vmatprep.subr.mxu0 %v2261_v35  ;;  %1816 = vmatprep.subr.mxu1 %v3219_v41 }
 0x429   :  { %959 = vmatpush1.msra.mxu0 %v2273_v37  ;;  %1817 = vmatpush3.msra.mxu1 %v2336_v46  ;;  %v1463_v37 = vld [vmem:[%s3184_s0 + $0x18] sm:$0x3f] }
 0x42a   :  { %960 = vmatprep.subr.mxu0 %v3234_v1  ;;  %1818 = vmatprep.subr.mxu1 %v3219_v41  ;;  %v922_v23 = vrot.slane %v1463_v37, 4 }
 0x42b   :  { %961 = vmatpush1.msra.mxu0 %v3235_v2  ;;  %1819 = vmatpush3.msra.mxu1 %v3236_v4 }
 0x42c   :  { %962 = vmatprep.subr.mxu0 %v3237_v5  ;;  %1820 = vmatprep.subr.mxu1 %v3219_v41 }
 0x42d   :  { %963 = vmatpush1.msra.mxu0 %v3238_v6  ;;  %996 = vmatprep.mubr.f32.mxu0 %v3219_v41  ;;  %v912_v6 = vrot.slane %v1463_v37, 2 }
 0x42e   :  { %1821 = vmatpush3.msra.mxu1 %v3239_v7  ;;  %1822 = vmatprep.mubr.msk.f32.mxu1 %vm2026_vm0, %v3219_v41 }
 0x42f   :  { %1103 = vmatprep.subr.mxu0 %v2882_v34  ;;  %1825 = vmatprep.subr.mxu1 %v3219_v41 }
 0x4ce   :  { %v827_v35 = vpop.f32.mrf.mxu0  ;;  %v898_v44 = vpop.f32.mrf.mxu1 }
 0x4cf   :  { %v828_v45 = vadd.f32 %v827_v35, %v3241_v12  ;;  %v899_v22 = vadd.f32 %v898_v44, %v2437_v47  ;;  %v2977_v35 = vld [vmem:[%s3182_s1 + $0xb8] sm:$0xff]  ;;  %v2995_v44 = vld [vmem:[%s3182_s1 + $0x88] sm:$0xff] }
 0x4d0   :  { %v829_v46 = vpop.f32.mrf.mxu0  ;;  %v1789_v1 = vpop.f32.mrf.mxu1 }
 0x4d1   :  { %v904_v2 = vadd.f32 %v1463_v37, %v828_v45  ;;  %v830_v5 = vadd.f32 %v829_v46, %v2434_v58  ;;  %v2986_v37 = vld [vmem:[%s3182_s1 + $0xa0] sm:$0xff]  ;;  %v3004_v45 = vld [vmem:[%s3182_s1 + $0x70] sm:$0xff]  ;;  %v3012_v46 = vld [vmem:[%s3182_s1 + $0x48] sm:$0xff] }
 0x4d2   :  { %v3018_v1 = vld [vmem:[%s3182_s1 + $0x58] sm:$0xff] }
 0x4d3   :  { %v1464_v4 = vmul.f32 -1.442695, %v904_v2  ;;  %v914_v7 = vadd.f32 %v912_v6, %v830_v5  ;;  %v3024_v2 = vld [vmem:[%s3182_s1 + $0x38] sm:$0xff]  ;;  %v3037_v5 = vld [vmem:[%s3182_s1 + $0x40] sm:$0xff] }
 0x4d4   :  { %v3043_v6 = vld [vmem:[%s3182_s1 + $0x20] sm:$0xff] }
 0x4d5   :  { %1937 = vpow2.f32 %v1464_v4  ;;  %v1465_v13 = vmul.f32 -1.442695, %v914_v7  ;;  %v3031_v4 = vld [vmem:[%s3182_s1 + $0x30] sm:$0xff]  ;;  %3242 = vst [vmem:[#allocation3_spill] sm:$0xff] %v3043_v6  ;;  %v3050_v7 = vld [vmem:[%s3182_s1 + $0x18] sm:$0xff] }
 0x4d6   :  { %3243 = vst [vmem:[#allocation4_spill] sm:$0xff] %v3050_v7 }
 0x4d7   :  { %1939 = vpow2.f32 %v1465_v13  ;;  %v3056_v13 = vld [vmem:[%s3182_s1 + $0x28] sm:$0xff] }
 0x4d8   :  { %3244 = vst [vmem:[#allocation7_spill] sm:$0xff] %v3056_v13 }
 0x4e2   :  { %v1938_v15 = vpop.eup %1937 }
 0x4e3   :  { %v908_v17 = vadd.f32 1.0, %v1938_v15  ;;  %v3062_v15 = vld [vmem:[%s3182_s1 + $0x8] sm:$0xff] }
 0x4e4   :  { %v1940_v19 = vpop.eup %1939  ;;  %3245 = vst [vmem:[#allocation5_spill] sm:$0xff] %v3062_v15 }
 0x4e5   :  { %1941 = vrcp.f32 %v908_v17  ;;  %v918_v20 = vadd.f32 1.0, %v1940_v19  ;;  %v3069_v17 = vld [vmem:[%s3182_s1] sm:$0xff]  ;;  %v3076_v19 = vld [vmem:[%s3182_s1 + $0x10] sm:$0xff] }
 0x4e6   :  { %3246 = vst [vmem:[#allocation6_spill] sm:$0xff] %v3069_v17  ;;  %3247 = vst [vmem:[#allocation8_spill] sm:$0xff] %v3076_v19 }
 0x4e7   :  { %1943 = vrcp.f32 %v918_v20 }
 0x4f2   :  { %v1942_v25 = vpop.eup %1941 }
 0x4f3   :  { %v921_v26 = vmul.f32 %v1942_v25, %v899_v22  ;;  %v1467_v22 = vld [vmem:[%s3184_s0 + $0x1e] sm:$0x3f] }
 0x4f4   :  { %v1944_v29 = vpop.eup %1943 }
 0x4f5   :  { %v924_v28 = vadd.f32 %v922_v23, %v921_v26  ;;  %v926_v31 = vsub.f32 1.0, %v1944_v29  ;;  %v928_v38 = vmul.f32 %v1944_v29, %v2686_v3  ;;  %v2968_v3 = vld [vmem:[%s3182_s1 + $0xd0] sm:$0xff] }
 0x4f7   :  { %1945 = vtanh.f32 %v924_v28 }
 0x504   :  { %v1946_v32 = vpop.eup %1945 }
 0x505   :  { %v927_v56 = vmul.f32 %v1946_v32, %v926_v31 }
 0x507   :  { %v2893_v40 = vadd.f32 %v928_v38, %v927_v56  ;;  %v1083_v56 = vrot.slane %v1467_v22, 2 }
 0x509   :  { %1466 = vst [vmem:[%s3185_s3 + $0x8] sm:$0x3] %v2893_v40  ;;  %997 = vmatmul.mubr.f32.vlgmr.msra.gmra.mxu0 %v2893_v40  ;;  %1823 = vmatmul.mubr.f32.vlgmr.msra.gmra.mxu1 %v2893_v40 }
 0x50a   :  { %1104 = vmatpush1.msra.mxu0 %v2697_v63  ;;  %1826 = vmatpush3.msra.mxu1 %v2905_v48 }
 0x50b   :  { %1105 = vmatprep.subr.mxu0 %v2704_v54  ;;  %1827 = vmatprep.subr.mxu1 %v3219_v41 }
 0x50c   :  { %1106 = vmatpush1.msra.mxu0 %v2711_v49  ;;  %1828 = vmatpush3.msra.mxu1 %v2914_v43 }
 0x50d   :  { %1107 = vmatprep.subr.mxu0 %v2718_v14  ;;  %1829 = vmatprep.subr.mxu1 %v3219_v41 }
 0x50e   :  { %1108 = vmatpush1.msra.mxu0 %v2725_v60  ;;  %1830 = vmatpush3.msra.mxu1 %v2923_v50 }
 0x50f   :  { %1109 = vmatprep.subr.mxu0 %v2732_v16  ;;  %1831 = vmatprep.subr.mxu1 %v3219_v41 }
 0x510   :  { %1110 = vmatpush1.msra.mxu0 %v2739_v51  ;;  %1832 = vmatpush3.msra.mxu1 %v2932_v52 }
 0x511   :  { %1111 = vmatprep.subr.mxu0 %v2746_v18  ;;  %1833 = vmatprep.subr.mxu1 %v3219_v41 }
 0x512   :  { %1112 = vmatpush1.msra.mxu0 %v2753_v61  ;;  %1834 = vmatpush3.msra.mxu1 %v2941_v55 }
 0x513   :  { %1113 = vmatprep.subr.mxu0 %v2760_v21  ;;  %1835 = vmatprep.subr.mxu1 %v3219_v41 }
 0x514   :  { %1114 = vmatpush1.msra.mxu0 %v2767_v59  ;;  %1836 = vmatpush3.msra.mxu1 %v2950_v57 }
 0x515   :  { %1115 = vmatprep.subr.mxu0 %v2774_v24  ;;  %1837 = vmatprep.subr.mxu1 %v3219_v41 }
 0x516   :  { %1116 = vmatpush1.msra.mxu0 %v2781_v62  ;;  %1838 = vmatpush3.msra.mxu1 %v2959_v0 }
 0x517   :  { %1117 = vmatprep.subr.mxu0 %v2788_v27  ;;  %1839 = vmatprep.subr.mxu1 %v3219_v41 }
 0x518   :  { %1118 = vmatpush1.msra.mxu0 %v2795_v53  ;;  %1840 = vmatpush3.msra.mxu1 %v2968_v3 }
 0x519   :  { %1119 = vmatprep.subr.mxu0 %v2802_v30  ;;  %1841 = vmatprep.subr.mxu1 %v3219_v41 }
 0x51a   :  { %1120 = vmatpush1.msra.mxu0 %v2809_v8  ;;  %1842 = vmatpush3.msra.mxu1 %v2977_v35 }
 0x51b   :  { %1121 = vmatprep.subr.mxu0 %v2816_v33  ;;  %1843 = vmatprep.subr.mxu1 %v3219_v41 }
 0x51c   :  { %1122 = vmatpush1.msra.mxu0 %v2823_v9  ;;  %1844 = vmatpush3.msra.mxu1 %v2986_v37 }
 0x51d   :  { %1123 = vmatprep.subr.mxu0 %v2830_v36  ;;  %1845 = vmatprep.subr.mxu1 %v3219_v41 }
 0x51e   :  { %1124 = vmatpush1.msra.mxu0 %v2837_v10  ;;  %1846 = vmatpush3.msra.mxu1 %v2995_v44 }
 0x51f   :  { %1125 = vmatprep.subr.mxu0 %v2844_v39  ;;  %1847 = vmatprep.subr.mxu1 %v3219_v41 }
 0x520   :  { %1126 = vmatpush1.msra.mxu0 %v2851_v11  ;;  %1848 = vmatpush3.msra.mxu1 %v3004_v45 }
 0x521   :  { %1127 = vmatprep.subr.mxu0 %v2858_v42  ;;  %1849 = vmatprep.subr.mxu1 %v3219_v41 }
 0x522   :  { %1128 = vmatpush1.msra.mxu0 %v3012_v46  ;;  %1850 = vmatpush3.msra.mxu1 %v3018_v1 }
 0x523   :  { %1129 = vmatprep.subr.mxu0 %v3024_v2  ;;  %1851 = vmatprep.subr.mxu1 %v3219_v41 }
 0x524   :  { %1130 = vmatpush1.msra.mxu0 %v3031_v4  ;;  %1852 = vmatpush3.msra.mxu1 %v3037_v5 }
 0x525   :  { %1131 = vmatprep.subr.mxu0 %v3043_v6  ;;  %1853 = vmatprep.subr.mxu1 %v3219_v41  ;;  %v1093_v6 = vrot.slane %v1467_v22, 4 }
 0x526   :  { %1132 = vmatpush1.msra.mxu0 %v3050_v7  ;;  %1854 = vmatpush3.msra.mxu1 %v3056_v13 }
 0x527   :  { %1133 = vmatprep.subr.mxu0 %v3062_v15  ;;  %1855 = vmatprep.subr.mxu1 %v3219_v41 }
 0x528   :  { %1134 = vmatpush1.msra.mxu0 %v3069_v17  ;;  %1167 = vmatprep.mubr.f32.mxu0 %v3219_v41 }
 0x529   :  { %1856 = vmatpush3.msra.mxu1 %v3076_v19  ;;  %1857 = vmatprep.mubr.msk.f32.mxu1 %vm2026_vm0, %v3219_v41 }
 0x52a   :  { %1274 = vmatprep.subr.mxu0 %v2882_v34  ;;  %1860 = vmatprep.subr.mxu1 %v3219_v41 }
 0x5c9   :  { %v998_v20 = vpop.f32.mrf.mxu0  ;;  %v1069_v23 = vpop.f32.mrf.mxu1 }
 0x5ca   :  { %v999_v25 = vadd.f32 %v998_v20, %v3241_v12  ;;  %v1070_v7 = vadd.f32 %v1069_v23, %v2437_v47 }
 0x5cb   :  { %v1000_v26 = vpop.f32.mrf.mxu0  ;;  %v1824_v28 = vpop.f32.mrf.mxu1 }
 0x5cc   :  { %v1075_v29 = vadd.f32 %v1467_v22, %v999_v25  ;;  %v1001_v32 = vadd.f32 %v1000_v26, %v2434_v58 }
 0x5ce   :  { %v1468_v31 = vmul.f32 -1.442695, %v1075_v29  ;;  %v1085_v38 = vadd.f32 %v1083_v56, %v1001_v32 }
 0x5d0   :  { %1947 = vpow2.f32 %v1468_v31  ;;  %v1469_v34 = vmul.f32 -1.442695, %v1085_v38 }
 0x5d2   :  { %1949 = vpow2.f32 %v1469_v34 }
 0x5dd   :  { %v1948_v19 = vpop.eup %1947 }
 0x5de   :  { %v1079_v17 = vadd.f32 1.0, %v1948_v19 }
 0x5df   :  { %v1950_v15 = vpop.eup %1949 }
 0x5e0   :  { %1951 = vrcp.f32 %v1079_v17  ;;  %v1089_v13 = vadd.f32 1.0, %v1950_v15 }
 0x5e2   :  { %1953 = vrcp.f32 %v1089_v13 }
 0x5ed   :  { %v1952_v20 = vpop.eup %1951 }
 0x5ee   :  { %v1092_v12 = vmul.f32 %v1952_v20, %v1070_v7 }
 0x5ef   :  { %v1954_v28 = vpop.eup %1953 }
 0x5f0   :  { %v1095_v25 = vadd.f32 %v1093_v6, %v1092_v12  ;;  %v1097_v26 = vsub.f32 1.0, %v1954_v28  ;;  %v1099_v32 = vmul.f32 %v1954_v28, %v2893_v40  ;;  %v3248_v12 = vld [vmem:[#allocation3_spill] sm:$0xff] }
 0x5f2   :  { %1955 = vtanh.f32 %v1095_v25 }
 0x5ff   :  { %v1956_v29 = vpop.eup %1955 }
 0x600   :  { %v1098_v31 = vmul.f32 %v1956_v29, %v1097_v26 }
 0x602   :  { %v3090_v56 = vadd.f32 %v1099_v32, %v1098_v31 }
 0x604   :  { %1470 = vst [vmem:[%s3185_s3 + $0xa] sm:$0x3] %v3090_v56  ;;  %1168 = vmatmul.mubr.f32.vlgmr.msra.gmra.mxu0 %v3090_v56  ;;  %1858 = vmatmul.mubr.f32.vlgmr.msra.gmra.mxu1 %v3090_v56 }
 0x605   :  { %1275 = vmatpush1.msra.mxu0 %v2697_v63  ;;  %1861 = vmatpush3.msra.mxu1 %v2905_v48  ;;  %v3249_v63 = vld [vmem:[#allocation4_spill] sm:$0xff] }
 0x606   :  { %1276 = vmatprep.subr.mxu0 %v2704_v54  ;;  %1862 = vmatprep.subr.mxu1 %v3219_v41  ;;  %v3250_v54 = vld [vmem:[#allocation7_spill] sm:$0xff] }
 0x607   :  { %1277 = vmatpush1.msra.mxu0 %v2711_v49  ;;  %1863 = vmatpush3.msra.mxu1 %v2914_v43  ;;  %v3251_v49 = vld [vmem:[#allocation5_spill] sm:$0xff] }
 0x608   :  { %1278 = vmatprep.subr.mxu0 %v2718_v14  ;;  %1864 = vmatprep.subr.mxu1 %v3219_v41  ;;  %v3252_v14 = vld [vmem:[#allocation6_spill] sm:$0xff] }
 0x609   :  { %1279 = vmatpush1.msra.mxu0 %v2725_v60  ;;  %1865 = vmatpush3.msra.mxu1 %v2923_v50  ;;  %v3253_v60 = vld [vmem:[#allocation8_spill] sm:$0xff] }
 0x60a   :  { %1280 = vmatprep.subr.mxu0 %v2732_v16  ;;  %1866 = vmatprep.subr.mxu1 %v3219_v41 }
 0x60b   :  { %1281 = vmatpush1.msra.mxu0 %v2739_v51  ;;  %1867 = vmatpush3.msra.mxu1 %v2932_v52  ;;  %v1471_v51 = vld [vmem:[%s3184_s0 + $0x24] sm:$0x3f] }
 0x60c   :  { %1282 = vmatprep.subr.mxu0 %v2746_v18  ;;  %1868 = vmatprep.subr.mxu1 %v3219_v41 }
 0x60d   :  { %1283 = vmatpush1.msra.mxu0 %v2753_v61  ;;  %1869 = vmatpush3.msra.mxu1 %v2941_v55  ;;  %v3254_v61 = vld [vmem:[#allocation9_spill] sm:$0xff] }
 0x60e   :  { %1284 = vmatprep.subr.mxu0 %v2760_v21  ;;  %1870 = vmatprep.subr.mxu1 %v3219_v41 }
 0x60f   :  { %1285 = vmatpush1.msra.mxu0 %v2767_v59  ;;  %1871 = vmatpush3.msra.mxu1 %v2950_v57 }
 0x610   :  { %1286 = vmatprep.subr.mxu0 %v2774_v24  ;;  %1872 = vmatprep.subr.mxu1 %v3219_v41 }
 0x611   :  { %1287 = vmatpush1.msra.mxu0 %v2781_v62  ;;  %1873 = vmatpush3.msra.mxu1 %v2959_v0 }
 0x612   :  { %1288 = vmatprep.subr.mxu0 %v2788_v27  ;;  %1874 = vmatprep.subr.mxu1 %v3219_v41 }
 0x613   :  { %1289 = vmatpush1.msra.mxu0 %v2795_v53  ;;  %1875 = vmatpush3.msra.mxu1 %v2968_v3 }
 0x614   :  { %1290 = vmatprep.subr.mxu0 %v2802_v30  ;;  %1876 = vmatprep.subr.mxu1 %v3219_v41  ;;  %v1254_v30 = vrot.slane %v1471_v51, 2 }
 0x615   :  { %1291 = vmatpush1.msra.mxu0 %v2809_v8  ;;  %1877 = vmatpush3.msra.mxu1 %v2977_v35  ;;  %v1475_v35 = vld [vmem:[%s3184_s0 + $0x2a] sm:$0x3f] }
 0x616   :  { %1292 = vmatprep.subr.mxu0 %v2816_v33  ;;  %1878 = vmatprep.subr.mxu1 %v3219_v41  ;;  %v1435_v23 = vrot.slane %v1475_v35, 4 }
 0x617   :  { %1293 = vmatpush1.msra.mxu0 %v2823_v9  ;;  %1879 = vmatpush3.msra.mxu1 %v2986_v37 }
 0x618   :  { %1294 = vmatprep.subr.mxu0 %v2830_v36  ;;  %1880 = vmatprep.subr.mxu1 %v3219_v41 }
 0x619   :  { %1295 = vmatpush1.msra.mxu0 %v2837_v10  ;;  %1881 = vmatpush3.msra.mxu1 %v2995_v44 }
 0x61a   :  { %1296 = vmatprep.subr.mxu0 %v2844_v39  ;;  %1882 = vmatprep.subr.mxu1 %v3219_v41 }
 0x61b   :  { %1297 = vmatpush1.msra.mxu0 %v2851_v11  ;;  %1883 = vmatpush3.msra.mxu1 %v3004_v45  ;;  %v1264_v11 = vrot.slane %v1471_v51, 4 }
 0x61c   :  { %1298 = vmatprep.subr.mxu0 %v2858_v42  ;;  %1884 = vmatprep.subr.mxu1 %v3219_v41 }
 0x61d   :  { %1299 = vmatpush1.msra.mxu0 %v3012_v46  ;;  %1885 = vmatpush3.msra.mxu1 %v3018_v1 }
 0x61e   :  { %1300 = vmatprep.subr.mxu0 %v3024_v2  ;;  %1886 = vmatprep.subr.mxu1 %v3219_v41 }
 0x61f   :  { %1301 = vmatpush1.msra.mxu0 %v3031_v4  ;;  %1887 = vmatpush3.msra.mxu1 %v3037_v5  ;;  %v1425_v5 = vrot.slane %v1475_v35, 2 }
 0x620   :  { %1302 = vmatprep.subr.mxu0 %v3248_v12  ;;  %1888 = vmatprep.subr.mxu1 %v3219_v41 }
 0x621   :  { %1303 = vmatpush1.msra.mxu0 %v3249_v63  ;;  %1889 = vmatpush3.msra.mxu1 %v3250_v54 }
 0x622   :  { %1304 = vmatprep.subr.mxu0 %v3251_v49  ;;  %1890 = vmatprep.subr.mxu1 %v3219_v41 }
 0x623   :  { %1305 = vmatpush1.msra.mxu0 %v3252_v14  ;;  %1338 = vmatprep.mubr.f32.mxu0 %v3219_v41 }
 0x624   :  { %1891 = vmatpush3.msra.mxu1 %v3253_v60  ;;  %1892 = vmatprep.mubr.msk.f32.mxu1 %vm2026_vm0, %v3219_v41 }
 0x6c4   :  { %v1169_v16 = vpop.f32.mrf.mxu0  ;;  %v1240_v18 = vpop.f32.mrf.mxu1 }
 0x6c5   :  { %v1170_v21 = vadd.f32 %v1169_v16, %v3254_v61  ;;  %v1241_v39 = vadd.f32 %v1240_v18, %v2437_v47 }
 0x6c6   :  { %v1171_v59 = vpop.f32.mrf.mxu0  ;;  %v1859_v24 = vpop.f32.mrf.mxu1 }
 0x6c7   :  { %v1246_v62 = vadd.f32 %v1471_v51, %v1170_v21  ;;  %v1172_v53 = vadd.f32 %v1171_v59, %v2434_v58 }
 0x6c9   :  { %v1472_v27 = vmul.f32 -1.442695, %v1246_v62  ;;  %v1256_v8 = vadd.f32 %v1254_v30, %v1172_v53 }
 0x6cb   :  { %1957 = vpow2.f32 %v1472_v27  ;;  %v1473_v33 = vmul.f32 -1.442695, %v1256_v8 }
 0x6cd   :  { %1959 = vpow2.f32 %v1473_v33 }
 0x6d8   :  { %v1958_v41 = vpop.eup %1957 }
 0x6d9   :  { %v1250_v9 = vadd.f32 1.0, %v1958_v41 }
 0x6da   :  { %v1960_v36 = vpop.eup %1959 }
 0x6db   :  { %1961 = vrcp.f32 %v1250_v9  ;;  %v1260_v10 = vadd.f32 1.0, %v1960_v36 }
 0x6dd   :  { %1963 = vrcp.f32 %v1260_v10 }
 0x6e8   :  { %v1962_v42 = vpop.eup %1961 }
 0x6e9   :  { %v1263_v40 = vmul.f32 %v1962_v42, %v1241_v39 }
 0x6ea   :  { %v1964_v43 = vpop.eup %1963 }
 0x6eb   :  { %v1266_v48 = vadd.f32 %v1264_v11, %v1263_v40  ;;  %v1268_v50 = vsub.f32 1.0, %v1964_v43  ;;  %v1270_v57 = vmul.f32 %v1964_v43, %v3090_v56 }
 0x6ed   :  { %1965 = vtanh.f32 %v1266_v48 }
 0x6fa   :  { %v1966_v52 = vpop.eup %1965 }
 0x6fb   :  { %v1269_v55 = vmul.f32 %v1966_v52, %v1268_v50 }
 0x6fd   :  { %v1271_v0 = vadd.f32 %v1270_v57, %v1269_v55 }
 0x6ff   :  { %1474 = vst [vmem:[%s3185_s3 + $0xc] sm:$0x3] %v1271_v0  ;;  %1339 = vmatmul.mubr.f32.vlgmr.msra.gmra.mxu0 %v1271_v0  ;;  %1893 = vmatmul.mubr.f32.vlgmr.msra.gmra.mxu1 %v1271_v0 }
 0x7bf   :  { %v1340_v3 = vpop.f32.mrf.mxu0  ;;  %v1411_v37 = vpop.f32.mrf.mxu1 }
 0x7c0   :  { %v1341_v44 = vadd.f32 %v1340_v3, %v3254_v61  ;;  %v1412_v22 = vadd.f32 %v1411_v37, %v2437_v47 }
 0x7c1   :  { %v1342_v45 = vpop.f32.mrf.mxu0  ;;  %v1894_v46 = vpop.f32.mrf.mxu1 }
 0x7c2   :  { %v1417_v1 = vadd.f32 %v1475_v35, %v1341_v44  ;;  %v1343_v4 = vadd.f32 %v1342_v45, %v2434_v58 }
 0x7c4   :  { %v1476_v2 = vmul.f32 -1.442695, %v1417_v1  ;;  %v1427_v6 = vadd.f32 %v1425_v5, %v1343_v4 }
 0x7c6   :  { %1967 = vpow2.f32 %v1476_v2  ;;  %v1477_v7 = vmul.f32 -1.442695, %v1427_v6 }
 0x7c8   :  { %1969 = vpow2.f32 %v1477_v7 }
 0x7d3   :  { %v1968_v13 = vpop.eup %1967 }
 0x7d4   :  { %v1421_v15 = vadd.f32 1.0, %v1968_v13 }
 0x7d5   :  { %v1970_v17 = vpop.eup %1969 }
 0x7d6   :  { %1971 = vrcp.f32 %v1421_v15  ;;  %v1431_v19 = vadd.f32 1.0, %v1970_v17 }
 0x7d8   :  { %1973 = vrcp.f32 %v1431_v19 }
 0x7e3   :  { %v1972_v38 = vpop.eup %1971 }
 0x7e4   :  { %v1434_v34 = vmul.f32 %v1972_v38, %v1412_v22 }
 0x7e5   :  { %v1974_v25 = vpop.eup %1973 }
 0x7e6   :  { %v1437_v20 = vadd.f32 %v1435_v23, %v1434_v34  ;;  %v1439_v58 = vsub.f32 1.0, %v1974_v25  ;;  %v1441_v29 = vmul.f32 %v1974_v25, %v1271_v0 }
 0x7e8   :  { %1975 = vtanh.f32 %v1437_v20 }
 0x7f5   :  { %v1976_v28 = vpop.eup %1975 }
 0x7f6   :  { %v1440_v26 = vmul.f32 %v1976_v28, %v1439_v58 }
 0x7f8   :  { %v1442_v31 = vadd.f32 %v1441_v29, %v1440_v26 }
 0x7fa   :  { %1478 = vst [vmem:[%s3185_s3 + $0xe] sm:$0x3] %v1442_v31 }

// kernel: gru_forward.9
= control target key start
LH: loop header
LB: loop body
LE: loop exit
PB: predicated region body
PF: predicated region fallthrough
CT: control target
= control target key end

     0   :  { %v356_v1 = vmov 0.0   ;;  %vm357_vm0 = vmmov 0   ;;  %s531_s0 = inlined_call_operand.vmem [shape: f32[2,128], index: 0, kind: input, shape index: {}]   ;;  %s532_s1 = inlined_call_operand.vmem [shape: f32[128,128], index: 1, kind: input, shape index: {}]   ;;  %s533_s2 = inlined_call_operand.vmem [shape: f32[1,128], index: 2, kind: input, shape index: {}]   ;;  %s534_s3 = inlined_call_operand.vmem [shape: f32[128,4], index: 3, kind: input, shape index: {}]   ;;  %s535_s4 = inlined_call_operand.vmem [shape: f32[1,4], index: 4, kind: input, shape index: {}]   ;;  %s536_s5 = inlined_call_operand.hbm [shape: f32[2,4], index: 5, kind: output, shape index: {}]  }
   0x1   :  { %v37_v0 = vld [vmem:[%s532_s1 + $0x78] sm:$0xff]  ;;  %261 = vmatprep.subr.mxu0 %v356_v1  ;;  %v36_v2 = vld [vmem:[%s532_s1 + $0x70] sm:$0xff]  ;;  %293 = vmatprep.mubr.msk.f32.mxu0 %vm357_vm0, %v356_v1  ;;  %v35_v3 = vld [vmem:[%s532_s1 + $0x68] sm:$0xff] }
   0x2   :  { %262 = vmatpush3.msra.mxu0 %v37_v0  ;;  %296 = vmatprep.subr.mxu1 %v356_v1  ;;  %v34_v4 = vld [vmem:[%s532_s1 + $0x60] sm:$0xff]  ;;  %v131_v5 = vld [vmem:[%s534_s3 + $0x78] sm:$0xff]  ;;  %v130_v6 = vld [vmem:[%s534_s3 + $0x70] sm:$0xff] }
   0x3   :  { %263 = vmatprep.subr.mxu0 %v356_v1  ;;  %328 = vmatprep.mubr.msk.f32.mxu1 %vm357_vm0, %v356_v1  ;;  %v33_v7 = vld [vmem:[%s532_s1 + $0x58] sm:$0xff]  ;;  %v129_v8 = vld [vmem:[%s534_s3 + $0x68] sm:$0xff]  ;;  %v32_v9 = vld [vmem:[%s532_s1 + $0x50] sm:$0xff] }
   0x4   :  { %264 = vmatpush3.msra.mxu0 %v36_v2  ;;  %297 = vmatpush3.msra.mxu1 %v131_v5  ;;  %v128_v10 = vld [vmem:[%s534_s3 + $0x60] sm:$0xff] }
   0x5   :  { %265 = vmatprep.subr.mxu0 %v356_v1  ;;  %298 = vmatprep.subr.mxu1 %v356_v1 }
   0x6   :  { %266 = vmatpush3.msra.mxu0 %v35_v3  ;;  %299 = vmatpush3.msra.mxu1 %v130_v6 }
   0x7   :  { %267 = vmatprep.subr.mxu0 %v356_v1  ;;  %300 = vmatprep.subr.mxu1 %v356_v1 }
   0x8   :  { %268 = vmatpush3.msra.mxu0 %v34_v4  ;;  %301 = vmatpush3.msra.mxu1 %v129_v8 }
   0x9   :  { %269 = vmatprep.subr.mxu0 %v356_v1 }
   0xa   :  { %270 = vmatpush3.msra.mxu0 %v33_v7 }
   0xb   :  { %10 = vsyncpa [#allocation3], 0  ;;  %271 = vmatprep.subr.mxu0 %v356_v1  ;;  %v31_v11 = vld [vmem:[%s532_s1 + $0x48] sm:$0xff]  ;;  %302 = vmatprep.subr.mxu1 %v356_v1  ;;  %v127_v12 = vld [vmem:[%s534_s3 + $0x58] sm:$0xff]  ;;  %s358_s11 = smov [#allocation2]   ;;  %vm209_vm1 = vcmask 25600  }
   0xc   :  { %272 = vmatpush3.msra.mxu0 %v32_v9  ;;  %303 = vmatpush3.msra.mxu1 %v128_v10  ;;  %v30_v13 = vld [vmem:[%s532_s1 + $0x40] sm:$0xff]  ;;  %v126_v14 = vld [vmem:[%s534_s3 + $0x50] sm:$0xff]  ;;  %v29_v15 = vld [vmem:[%s532_s1 + $0x38] sm:$0xff]  ;;  %s217_s12 = sshll.u32 %s358_s11, 4  ;;  %s218_s12 = int_to_ptr.vmem [resolvable:$true] %s217_s12 }
   0xd   :  { %273 = vmatprep.subr.mxu0 %v356_v1  ;;  %304 = vmatprep.subr.mxu1 %v356_v1  ;;  %v125_v16 = vld [vmem:[%s534_s3 + $0x48] sm:$0xff]  ;;  %v28_v17 = vld [vmem:[%s532_s1 + $0x30] sm:$0xff]  ;;  %v124_v18 = vld [vmem:[%s534_s3 + $0x40] sm:$0xff]  ;;  %p339_p1 = scmp.lt.s32.totalorder %s218_s12, %s218_s12 }
   0xe   :  { %274 = vmatpush3.msra.mxu0 %v31_v11  ;;  %305 = vmatpush3.msra.mxu1 %v127_v12  ;;  %v27_v19 = vld [vmem:[%s532_s1 + $0x28] sm:$0xff]  ;;  %v123_v20 = vld [vmem:[%s534_s3 + $0x38] sm:$0xff]  ;;  %v26_v21 = vld [vmem:[%s532_s1 + $0x20] sm:$0xff] }
   0xf   :  { %275 = vmatprep.subr.mxu0 %v356_v1  ;;  %306 = vmatprep.subr.mxu1 %v356_v1  ;;  %v122_v22 = vld [vmem:[%s534_s3 + $0x30] sm:$0xff]  ;;  %v25_v23 = vld [vmem:[%s532_s1 + $0x18] sm:$0xff]  ;;  %v121_v24 = vld [vmem:[%s534_s3 + $0x28] sm:$0xff] }
  0x10   :  { %276 = vmatpush3.msra.mxu0 %v30_v13  ;;  %307 = vmatpush3.msra.mxu1 %v126_v14  ;;  %v24_v25 = vld [vmem:[%s532_s1 + $0x10] sm:$0xff]  ;;  %v120_v26 = vld [vmem:[%s534_s3 + $0x20] sm:$0xff]  ;;  %v23_v27 = vld [vmem:[%s532_s1 + $0x8] sm:$0xff] }
  0x11   :  { %277 = vmatprep.subr.mxu0 %v356_v1  ;;  %308 = vmatprep.subr.mxu1 %v356_v1  ;;  %v119_v28 = vld [vmem:[%s534_s3 + $0x18] sm:$0xff]  ;;  %v22_v29 = vld [vmem:[%s532_s1] sm:$0xff]  ;;  %v118_v31 = vld [vmem:[%s534_s3 + $0x10] sm:$0xff] }
  0x12   :  { %278 = vmatpush3.msra.mxu0 %v29_v15  ;;  %309 = vmatpush3.msra.mxu1 %v125_v16  ;;  %v21_v30 = vld [vmem:[%s531_s0] sm:$0x3]  ;;  %v117_v32 = vld [vmem:[%s534_s3 + $0x8] sm:$0xff] }
  0x13   :  { %279 = vmatprep.subr.mxu0 %v356_v1  ;;  %310 = vmatprep.subr.mxu1 %v356_v1  ;;  %v116_v33 = vld [vmem:[%s534_s3] sm:$0xff]  ;;  %s334_s3 = scalar_lea.vmem %s218_s12, 32 }
  0x14   :  { %280 = vmatpush3.msra.mxu0 %v28_v17  ;;  %311 = vmatpush3.msra.mxu1 %v124_v18  ;;  %v225_v34 = vld [vmem:[%s533_s2] ss:$0 sm:$0xff]  ;;  %p335_p0 = scmp.ne.s32.totalorder %s218_s12, %s334_s3  ;;  %p340_p2 = scmp.lt.s32.totalorder %s334_s3, %s334_s3 }
  0x15   :  { %281 = vmatprep.subr.mxu0 %v356_v1  ;;  %312 = vmatprep.subr.mxu1 %v356_v1  ;;  %v226_v39 = vld [vmem:[%s535_s4] ss:$0 sm:$0xff] }
  0x16   :  { %282 = vmatpush3.msra.mxu0 %v27_v19  ;;  %313 = vmatpush3.msra.mxu1 %v123_v20  ;;  %p341_p3 = por %p340_p2, %p339_p1 }
  0x17   :  { %283 = vmatprep.subr.mxu0 %v356_v1  ;;  %314 = vmatprep.subr.mxu1 %v356_v1 }
  0x18   :  { %284 = vmatpush3.msra.mxu0 %v26_v21  ;;  %315 = vmatpush3.msra.mxu1 %v122_v22  ;;  %p342_p4 = pnand %p341_p3, %p335_p0 }
  0x19   :  { %285 = vmatprep.subr.mxu0 %v356_v1  ;;  %316 = vmatprep.subr.mxu1 %v356_v1 }
  0x1a   :  { %286 = vmatpush3.msra.mxu0 %v25_v23  ;;  %317 = vmatpush3.msra.mxu1 %v121_v24 }
  0x1b   :  { %287 = vmatprep.subr.mxu0 %v356_v1  ;;  %318 = vmatprep.subr.mxu1 %v356_v1 }
  0x1c   :  { %288 = vmatpush3.msra.mxu0 %v24_v25  ;;  %319 = vmatpush3.msra.mxu1 %v120_v26 }
  0x1d   :  { %289 = vmatprep.subr.mxu0 %v356_v1  ;;  %320 = vmatprep.subr.mxu1 %v356_v1 }
  0x1e   :  { %290 = vmatpush3.msra.mxu0 %v23_v27  ;;  %321 = vmatpush3.msra.mxu1 %v119_v28 }
  0x1f   :  { %291 = vmatprep.subr.mxu0 %v356_v1  ;;  %322 = vmatprep.subr.mxu1 %v356_v1 }
  0x20   :  { %292 = vmatpush3.msra.mxu0 %v22_v29  ;;  %323 = vmatpush3.msra.mxu1 %v118_v31 }
  0x21   :  { %294 = vmatmul.mubr.f32.vlgmr.msra.gmra.mxu0 %v21_v30  ;;  %324 = vmatprep.subr.mxu1 %v356_v1 }
  0x22   :  { %325 = vmatpush3.msra.mxu1 %v117_v32 }
  0x23   :  { %326 = vmatprep.subr.mxu1 %v356_v1 }
  0x24   :  { %327 = vmatpush3.msra.mxu1 %v116_v33 }
  0xe1   :  { %v111_v35 = vpop.f32.mrf.mxu0 }
  0xe2   :  { %v112_v36 = vadd.f32 %v225_v34, %v111_v35 }
  0xe3   :  { %v295_v37 = vpop.f32.mrf.mxu0 }
  0xe4   :  { %v115_v38 = vmax.f32 %v112_v36, 0.0 }
  0xe6   :  { %329 = vmatmul.mubr.f32.vlgmr.msra.gmra.mxu1 %v115_v38 }
 0x1a6   :  { %v205_v40 = vpop.f32.mrf.mxu1 }
 0x1a7   :  { %v206_v41 = vadd.f32 %v226_v39, %v205_v40 }
 0x1a8   :  { %v330_v42 = vpop.f32.mrf.mxu1 }
 0x1a9   :  { %210 = vst.msk [vmem:[#allocation2] sm:$0x3] %vm209_vm1, %v206_v41 }
 0x1aa   :  { %345 = shalt.err (!%p342_p4)
}
 0x1ab   :  { %220 = dma.vmem_to_hbm [thread:$0]  %s218_s12, 32, %s536_s5, [#allocation3]  }
 0x1ac   :  { %354 = dma.done.wait [#allocation3], 32  }
 0x1ad   :  { %355 = vsyncadd [#allocation3], 4294967264 }
 0x1ae   :  { %224 = vsyncpa [#allocation3], 1 }

</bundles_post_ra>
